<compile_context>
chip_gen: v7x
topology: tpu7x:2x2x1
jax: 0.10.0
libtpu: 0.0.40
codegen_flags: <defaults>
</compile_context>

<pallas_src>
import functools

import jax
import jax.numpy as jnp
from jax.experimental import pallas as pl
from jax.experimental.pallas import tpu as pltpu

NEG_SLOPE = 0.01  # nn.LeakyReLU default negative_slope


# ----------------------------------------------------------------------------
# Conv3d(k=4, s=2, p=1) + LeakyReLU: in-kernel tap accumulation
# ----------------------------------------------------------------------------
def _conv_taps_kernel(x_ref, w_ref, b_ref, o_ref, *, tm, offs):
    """One M-tile of a stride-2 4^3 conv, decomposed into 8 unit-stride taps.

    x_ref: (rows, C8)     f32, full space-to-depth input slab (VMEM resident)
    w_ref: (8, Cout, C8)  bf16, per-tap packed weights (VMEM resident)
    b_ref: (Cout, 1)      f32
    o_ref: (Cout, tm)     f32  -- transposed (lane-dense) output tile
    """
    r0 = pl.multiple_of(pl.program_id(0) * tm, tm)
    cout = o_ref.shape[0]
    acc = jnp.zeros((cout, tm), jnp.float32)
    for j, off in enumerate(offs):                    # static unroll, 8 taps
        xj = x_ref[pl.ds(r0 + off, tm), :].astype(jnp.bfloat16)   # (tm, C8)
        wj = w_ref[j]                                              # (Cout, C8)
        # (Cout, C8) . (tm, C8)^T -> (Cout, tm): contract last dims (q@k^T style)
        acc = acc + jax.lax.dot_general(
            wj, xj, (((1,), (1,)), ((), ())),
            preferred_element_type=jnp.float32)
    acc = acc + b_ref[...]
    acc = jnp.where(acc >= 0.0, acc, NEG_SLOPE * acc)   # fused LeakyReLU
    o_ref[...] = acc.astype(o_ref.dtype)


def conv3d_s2_lrelu(x, w_packed, b):
    """x: (B, T, H, W, Cin) -> (B, T/2, H/2, W/2, Cout); Conv3d(4,2,1)+LeakyReLU."""
    B, T, H, W, Cin = x.shape
    To, Ho, Wo = T // 2, H // 2, W // 2
    To1, Ho1, Wo1 = To + 1, Ho + 1, Wo + 1
    Cout = w_packed.shape[1]
    C8 = 8 * Cin

    # pad=1, then space-to-depth(2): (B, To+1, Ho+1, Wo+1, 8*Cin).  Same byte
    # count as the padded input (no im2col blow-up), ~4 cheap XLA ops.
    xp = jnp.pad(x, ((0, 0), (1, 1), (1, 1), (1, 1), (0, 0)))
    xs = xp.reshape(B, To1, 2, Ho1, 2, Wo1, 2, Cin).transpose(0, 1, 3, 5, 2, 4, 6, 7)
    xs2 = xs.reshape(B * To1 * Ho1 * Wo1, C8).astype(jnp.float32)

    Mfull = xs2.shape[0]
    # Remaining kernel-2 / stride-1 conv taps == static row offsets into xs2.
    offs = [dt * Ho1 * Wo1 + dh * Wo1 + dw
            for dt in (0, 1) for dh in (0, 1) for dw in (0, 1)]
    tm = min(512, pl.cdiv(Mfull, 128) * 128)
    Mpad = pl.cdiv(Mfull, tm) * tm
    rows = Mpad + max(offs)              # pad so every tap read stays in-bounds
    x2p = jnp.pad(xs2, ((0, rows - Mfull), (0, 0)))

    yt = pl.pallas_call(
        functools.partial(_conv_taps_kernel, tm=tm, offs=offs),
        out_shape=jax.ShapeDtypeStruct((Cout, Mpad), jnp.float32),
        grid=(Mpad // tm,),
        in_specs=[
            pl.BlockSpec((rows, C8), lambda i: (0, 0)),        # resident input
            pl.BlockSpec((8, Cout, C8), lambda i: (0, 0, 0)),  # resident weights
            pl.BlockSpec((Cout, 1), lambda i: (0, 0)),
        ],
        out_specs=pl.BlockSpec((Cout, tm), lambda i: (0, i)),  # lane-dense tile
        compiler_params=pltpu.CompilerParams(
            dimension_semantics=("parallel",)),
    )(x2p, w_packed, b)

    # (Cout, Mpad) -> (B, To, Ho, Wo, Cout): drop pad rows + invalid edge rows.
    y = yt[:, :Mfull].T.reshape(B, To1, Ho1, Wo1, Cout)
    return y[:, :To, :Ho, :Wo, :]


# ----------------------------------------------------------------------------
# Fused tail: Linear + LeakyReLU, fc_mu, fc_log_var, reparameterize (1 call)
# ----------------------------------------------------------------------------
def _tail_kernel(xf_ref, wl_ref, bl_ref, wmu_ref, bmu_ref, wlv_ref, blv_ref,
                 eps_ref, z_ref, mu_ref, lv_ref):
    xb = xf_ref[...].astype(jnp.bfloat16)
    h = jnp.dot(xb, wl_ref[...], preferred_element_type=jnp.float32) + bl_ref[...]
    h = jnp.where(h >= 0.0, h, NEG_SLOPE * h)          # Linear + LeakyReLU
    hb = h.astype(jnp.bfloat16)
    mu = jnp.dot(hb, wmu_ref[...], preferred_element_type=jnp.float32) + bmu_ref[...]
    lv = jnp.dot(hb, wlv_ref[...], preferred_element_type=jnp.float32) + blv_ref[...]
    # reparameterize: z = mu + eps * exp(0.5 * log_var)   (exp runs on the EUP)
    z_ref[...] = mu + eps_ref[...] * jnp.exp(0.5 * lv)
    mu_ref[...] = mu
    lv_ref[...] = lv


def tail_forward(params, xf, eps):
    B = xf.shape[0]
    latent = params["fc_mu"][0].shape[1]
    return pl.pallas_call(
        _tail_kernel,
        out_shape=(jax.ShapeDtypeStruct((B, latent), jnp.float32),) * 3,
    )(xf, params["lin"][0], params["lin"][1],
      params["fc_mu"][0], params["fc_mu"][1],
      params["fc_log_var"][0], params["fc_log_var"][1], eps)


# ----------------------------------------------------------------------------
# Parameter init (mirrors kaiming_normal_(fan_in, leaky_relu) with a=0)
# ----------------------------------------------------------------------------
def _kaiming_normal(key, shape, fan_in):
    std = (2.0 ** 0.5) / (fan_in ** 0.5)   # gain = sqrt(2) (torch default a=0)
    return std * jax.random.normal(key, shape, dtype=jnp.float32)


def _pack_conv_weight(w):
    """(4,4,4,Cin,Cout) -> (8, Cout, 8*Cin): taps (dt,dh,dw), cols (rt,rh,rw,c)."""
    Cin, Cout = w.shape[3], w.shape[4]
    wr = w.reshape(2, 2, 2, 2, 2, 2, Cin, Cout)   # (dt,rt,dh,rh,dw,rw,Cin,Cout)
    wp = wr.transpose(0, 2, 4, 7, 1, 3, 5, 6)     # (dt,dh,dw,Cout,rt,rh,rw,Cin)
    return wp.reshape(8, Cout, 8 * Cin)


def init_params(key, input_shape, hidden_shape, hidden_dim, latent_dim):
    n_frames, height, width, n_channel = input_shape
    hs = hidden_shape
    keys = jax.random.split(key, 9)
    cins = [n_channel, hs[0], hs[1], hs[2]]
    couts = [hs[0], hs[1], hs[2], hs[3]]
    params = {"convs": []}
    for i in range(4):
        fan_in = cins[i] * 4 * 4 * 4
        w = _kaiming_normal(keys[i], (4, 4, 4, cins[i], couts[i]), fan_in)
        params["convs"].append((
            _pack_conv_weight(w).astype(jnp.bfloat16),   # bf16 MXU weights
            jnp.zeros((couts[i], 1), jnp.float32),       # bias (Cout, 1)
        ))
    lin_in = int(hs[3] * width * height * n_frames / (16 * 16 * 16))
    params["lin"] = (
        _kaiming_normal(keys[4], (lin_in, hidden_dim), lin_in).astype(jnp.bfloat16),
        jnp.zeros((1, hidden_dim), jnp.float32))
    bound = 1.0 / (hidden_dim ** 0.5)   # default nn.Linear bias init (fc_mu/fc_log_var)
    params["fc_mu"] = (
        _kaiming_normal(keys[5], (hidden_dim, latent_dim), hidden_dim).astype(jnp.bfloat16),
        jax.random.uniform(keys[6], (1, latent_dim), jnp.float32, -bound, bound))
    params["fc_log_var"] = (
        _kaiming_normal(keys[7], (hidden_dim, latent_dim), hidden_dim).astype(jnp.bfloat16),
        jax.random.uniform(keys[8], (1, latent_dim), jnp.float32, -bound, bound))
    return params


# ----------------------------------------------------------------------------
# Forward pass (matches VideoEncoder.forward: returns (z, mu, log_var))
# ----------------------------------------------------------------------------
def video_encoder_forward(params, x_ncthw, eps):
    # PyTorch NCDHW -> channel-last NDHWC.
    x = jnp.transpose(x_ncthw, (0, 2, 3, 4, 1)).astype(jnp.float32)
    # TODO(synk): the reference's NaN debug prints are omitted.
    for (w, b) in params["convs"]:
        x = conv3d_s2_lrelu(x, w, b)       # Conv3d(4,2,1) + LeakyReLU, one pallas_call
    B = x.shape[0]
    # Flatten in PyTorch (C, T, H, W) row-major order.
    xf = jnp.transpose(x, (0, 4, 1, 2, 3)).reshape(B, -1)
    # TODO(synk): nn.Dropout treated as identity (eval mode / p=0).
    return tail_forward(params, xf, eps)   # Linear+LReLU, fc_mu, fc_log_var, reparam fused


if __name__ == "__main__":
    key = jax.random.PRNGKey(0)
    k_param, k_x, k_eps = jax.random.split(key, 3)

    B = 2
    input_shape = (16, 16, 16, 3)      # (n_frames, height, width, n_channel)
    hidden_shape = (8, 16, 16, 32)     # hs[0..3]
    hidden_dim = 32
    latent_dim = 8

    params = init_params(k_param, input_shape, hidden_shape, hidden_dim, latent_dim)

    # PyTorch-style input: (B, C, T, H, W)
    x = jax.random.normal(
        k_x, (B, input_shape[3], input_shape[0], input_shape[1], input_shape[2]),
        dtype=jnp.float32)
    eps = jax.random.normal(k_eps, (B, latent_dim), dtype=jnp.float32)

    fwd = jax.jit(functools.partial(video_encoder_forward, params))
    z, mu, log_var = fwd(x, eps)
    jax.block_until_ready((z, mu, log_var))

    assert z.shape == (B, latent_dim)
    assert mu.shape == (B, latent_dim)
    assert log_var.shape == (B, latent_dim)
    assert not bool(jnp.any(jnp.isnan(z)))
    print("KERNEL_OK")
</pallas_src>

<mosaic_0001>
module attributes {stable_mosaic.version = 11 : i64} {
  func.func @_conv_taps_kernel(%arg0: i32, %arg1: memref<1627x24xf32, #tpu.memory_space<vmem>>, %arg2: memref<8x8x24xbf16, #tpu.memory_space<vmem>>, %arg3: memref<8x1xf32, #tpu.memory_space<vmem>>, %arg4: memref<8x512xf32, #tpu.memory_space<vmem>>) attributes {dimension_semantics = [#tpu.dimension_semantics<parallel>], iteration_bounds = array<i64: 3>, scalar_prefetch = 0 : i64, scratch_operands = 0 : i64, tpu.core_type = #tpu.core_type<tc>, window_params = [{pipeline_mode = #tpu.pipeline_mode<synchronous>, transform_indices = @transform_0, window_bounds = array<i64: 1627, 24>}, {pipeline_mode = #tpu.pipeline_mode<synchronous>, transform_indices = @transform_1, window_bounds = array<i64: 8, 8, 24>}, {pipeline_mode = #tpu.pipeline_mode<synchronous>, transform_indices = @transform_2, window_bounds = array<i64: 8, 1>}, {transform_indices = @transform_3, window_bounds = array<i64: 8, 512>}]} {
    %c512_i32 = arith.constant 512 : i32
    %0 = arith.muli %arg0, %c512_i32 : i32
    %1 = tpu.assume_multiple %0, 512 : i32
    %cst = arith.constant 0.000000e+00 : f32
    %2 = vector.broadcast %cst : f32 to vector<8x512xf32>
    %c0_i32 = arith.constant 0 : i32
    %3 = arith.addi %1, %c0_i32 : i32
    %4 = arith.index_cast %3 : i32 to index
    %c0 = arith.constant 0 : index
    %5 = vector.load %arg1[%4, %c0] : memref<1627x24xf32, #tpu.memory_space<vmem>>, vector<512x24xf32>
    %6 = arith.truncf %5 : vector<512x24xf32> to vector<512x24xbf16>
    %c0_0 = arith.constant 0 : index
    %c0_1 = arith.constant 0 : index
    %c0_2 = arith.constant 0 : index
    %7 = vector.load %arg2[%c0_0, %c0_1, %c0_2] : memref<8x8x24xbf16, #tpu.memory_space<vmem>>, vector<1x8x24xbf16>
    %8 = vector.shape_cast %7 : vector<1x8x24xbf16> to vector<8x24xbf16>
    %cst_3 = arith.constant dense<0.000000e+00> : vector<8x512xf32>
    %9 = tpu.matmul %8, %6, %cst_3 {dimension_numbers = #tpu.dot_dimension_numbers<[1], [1], [0], [0], [0, 0, 1, 0], [], []>} : vector<8x24xbf16>, vector<512x24xbf16>, vector<8x512xf32> -> vector<8x512xf32>
    %10 = arith.addf %2, %9 : vector<8x512xf32>
    %c1_i32 = arith.constant 1 : i32
    %11 = arith.addi %1, %c1_i32 : i32
    %12 = arith.index_cast %11 : i32 to index
    %c0_4 = arith.constant 0 : index
    %13 = vector.load %arg1[%12, %c0_4] : memref<1627x24xf32, #tpu.memory_space<vmem>>, vector<512x24xf32>
    %14 = arith.truncf %13 : vector<512x24xf32> to vector<512x24xbf16>
    %c1 = arith.constant 1 : index
    %c0_5 = arith.constant 0 : index
    %c0_6 = arith.constant 0 : index
    %15 = vector.load %arg2[%c1, %c0_5, %c0_6] : memref<8x8x24xbf16, #tpu.memory_space<vmem>>, vector<1x8x24xbf16>
    %16 = vector.shape_cast %15 : vector<1x8x24xbf16> to vector<8x24xbf16>
    %cst_7 = arith.constant dense<0.000000e+00> : vector<8x512xf32>
    %17 = tpu.matmul %16, %14, %cst_7 {dimension_numbers = #tpu.dot_dimension_numbers<[1], [1], [0], [0], [0, 0, 1, 0], [], []>} : vector<8x24xbf16>, vector<512x24xbf16>, vector<8x512xf32> -> vector<8x512xf32>
    %18 = arith.addf %10, %17 : vector<8x512xf32>
    %c9_i32 = arith.constant 9 : i32
    %19 = arith.addi %1, %c9_i32 : i32
    %20 = arith.index_cast %19 : i32 to index
    %c0_8 = arith.constant 0 : index
    %21 = vector.load %arg1[%20, %c0_8] : memref<1627x24xf32, #tpu.memory_space<vmem>>, vector<512x24xf32>
    %22 = arith.truncf %21 : vector<512x24xf32> to vector<512x24xbf16>
    %c2 = arith.constant 2 : index
    %c0_9 = arith.constant 0 : index
    %c0_10 = arith.constant 0 : index
    %23 = vector.load %arg2[%c2, %c0_9, %c0_10] : memref<8x8x24xbf16, #tpu.memory_space<vmem>>, vector<1x8x24xbf16>
    %24 = vector.shape_cast %23 : vector<1x8x24xbf16> to vector<8x24xbf16>
    %cst_11 = arith.constant dense<0.000000e+00> : vector<8x512xf32>
    %25 = tpu.matmul %24, %22, %cst_11 {dimension_numbers = #tpu.dot_dimension_numbers<[1], [1], [0], [0], [0, 0, 1, 0], [], []>} : vector<8x24xbf16>, vector<512x24xbf16>, vector<8x512xf32> -> vector<8x512xf32>
    %26 = arith.addf %18, %25 : vector<8x512xf32>
    %c10_i32 = arith.constant 10 : i32
    %27 = arith.addi %1, %c10_i32 : i32
    %28 = arith.index_cast %27 : i32 to index
    %c0_12 = arith.constant 0 : index
    %29 = vector.load %arg1[%28, %c0_12] : memref<1627x24xf32, #tpu.memory_space<vmem>>, vector<512x24xf32>
    %30 = arith.truncf %29 : vector<512x24xf32> to vector<512x24xbf16>
    %c3 = arith.constant 3 : index
    %c0_13 = arith.constant 0 : index
    %c0_14 = arith.constant 0 : index
    %31 = vector.load %arg2[%c3, %c0_13, %c0_14] : memref<8x8x24xbf16, #tpu.memory_space<vmem>>, vector<1x8x24xbf16>
    %32 = vector.shape_cast %31 : vector<1x8x24xbf16> to vector<8x24xbf16>
    %cst_15 = arith.constant dense<0.000000e+00> : vector<8x512xf32>
    %33 = tpu.matmul %32, %30, %cst_15 {dimension_numbers = #tpu.dot_dimension_numbers<[1], [1], [0], [0], [0, 0, 1, 0], [], []>} : vector<8x24xbf16>, vector<512x24xbf16>, vector<8x512xf32> -> vector<8x512xf32>
    %34 = arith.addf %26, %33 : vector<8x512xf32>
    %c81_i32 = arith.constant 81 : i32
    %35 = arith.addi %1, %c81_i32 : i32
    %36 = arith.index_cast %35 : i32 to index
    %c0_16 = arith.constant 0 : index
    %37 = vector.load %arg1[%36, %c0_16] : memref<1627x24xf32, #tpu.memory_space<vmem>>, vector<512x24xf32>
    %38 = arith.truncf %37 : vector<512x24xf32> to vector<512x24xbf16>
    %c4 = arith.constant 4 : index
    %c0_17 = arith.constant 0 : index
    %c0_18 = arith.constant 0 : index
    %39 = vector.load %arg2[%c4, %c0_17, %c0_18] : memref<8x8x24xbf16, #tpu.memory_space<vmem>>, vector<1x8x24xbf16>
    %40 = vector.shape_cast %39 : vector<1x8x24xbf16> to vector<8x24xbf16>
    %cst_19 = arith.constant dense<0.000000e+00> : vector<8x512xf32>
    %41 = tpu.matmul %40, %38, %cst_19 {dimension_numbers = #tpu.dot_dimension_numbers<[1], [1], [0], [0], [0, 0, 1, 0], [], []>} : vector<8x24xbf16>, vector<512x24xbf16>, vector<8x512xf32> -> vector<8x512xf32>
    %42 = arith.addf %34, %41 : vector<8x512xf32>
    %c82_i32 = arith.constant 82 : i32
    %43 = arith.addi %1, %c82_i32 : i32
    %44 = arith.index_cast %43 : i32 to index
    %c0_20 = arith.constant 0 : index
    %45 = vector.load %arg1[%44, %c0_20] : memref<1627x24xf32, #tpu.memory_space<vmem>>, vector<512x24xf32>
    %46 = arith.truncf %45 : vector<512x24xf32> to vector<512x24xbf16>
    %c5 = arith.constant 5 : index
    %c0_21 = arith.constant 0 : index
    %c0_22 = arith.constant 0 : index
    %47 = vector.load %arg2[%c5, %c0_21, %c0_22] : memref<8x8x24xbf16, #tpu.memory_space<vmem>>, vector<1x8x24xbf16>
    %48 = vector.shape_cast %47 : vector<1x8x24xbf16> to vector<8x24xbf16>
    %cst_23 = arith.constant dense<0.000000e+00> : vector<8x512xf32>
    %49 = tpu.matmul %48, %46, %cst_23 {dimension_numbers = #tpu.dot_dimension_numbers<[1], [1], [0], [0], [0, 0, 1, 0], [], []>} : vector<8x24xbf16>, vector<512x24xbf16>, vector<8x512xf32> -> vector<8x512xf32>
    %50 = arith.addf %42, %49 : vector<8x512xf32>
    %c90_i32 = arith.constant 90 : i32
    %51 = arith.addi %1, %c90_i32 : i32
    %52 = arith.index_cast %51 : i32 to index
    %c0_24 = arith.constant 0 : index
    %53 = vector.load %arg1[%52, %c0_24] : memref<1627x24xf32, #tpu.memory_space<vmem>>, vector<512x24xf32>
    %54 = arith.truncf %53 : vector<512x24xf32> to vector<512x24xbf16>
    %c6 = arith.constant 6 : index
    %c0_25 = arith.constant 0 : index
    %c0_26 = arith.constant 0 : index
    %55 = vector.load %arg2[%c6, %c0_25, %c0_26] : memref<8x8x24xbf16, #tpu.memory_space<vmem>>, vector<1x8x24xbf16>
    %56 = vector.shape_cast %55 : vector<1x8x24xbf16> to vector<8x24xbf16>
    %cst_27 = arith.constant dense<0.000000e+00> : vector<8x512xf32>
    %57 = tpu.matmul %56, %54, %cst_27 {dimension_numbers = #tpu.dot_dimension_numbers<[1], [1], [0], [0], [0, 0, 1, 0], [], []>} : vector<8x24xbf16>, vector<512x24xbf16>, vector<8x512xf32> -> vector<8x512xf32>
    %58 = arith.addf %50, %57 : vector<8x512xf32>
    %c91_i32 = arith.constant 91 : i32
    %59 = arith.addi %1, %c91_i32 : i32
    %60 = arith.index_cast %59 : i32 to index
    %c0_28 = arith.constant 0 : index
    %61 = vector.load %arg1[%60, %c0_28] : memref<1627x24xf32, #tpu.memory_space<vmem>>, vector<512x24xf32>
    %62 = arith.truncf %61 : vector<512x24xf32> to vector<512x24xbf16>
    %c7 = arith.constant 7 : index
    %c0_29 = arith.constant 0 : index
    %c0_30 = arith.constant 0 : index
    %63 = vector.load %arg2[%c7, %c0_29, %c0_30] : memref<8x8x24xbf16, #tpu.memory_space<vmem>>, vector<1x8x24xbf16>
    %64 = vector.shape_cast %63 : vector<1x8x24xbf16> to vector<8x24xbf16>
    %cst_31 = arith.constant dense<0.000000e+00> : vector<8x512xf32>
    %65 = tpu.matmul %64, %62, %cst_31 {dimension_numbers = #tpu.dot_dimension_numbers<[1], [1], [0], [0], [0, 0, 1, 0], [], []>} : vector<8x24xbf16>, vector<512x24xbf16>, vector<8x512xf32> -> vector<8x512xf32>
    %66 = arith.addf %58, %65 : vector<8x512xf32>
    %c0_32 = arith.constant 0 : index
    %c0_33 = arith.constant 0 : index
    %67 = vector.load %arg3[%c0_32, %c0_33] : memref<8x1xf32, #tpu.memory_space<vmem>>, vector<8x1xf32>
    %68 = vector.broadcast %67 : vector<8x1xf32> to vector<8x512xf32>
    %69 = arith.addf %66, %68 : vector<8x512xf32>
    %cst_34 = arith.constant 0.000000e+00 : f32
    %70 = vector.broadcast %cst_34 : f32 to vector<8x512xf32>
    %71 = arith.cmpf oge, %69, %70 : vector<8x512xf32>
    %cst_35 = arith.constant 0.00999999977 : f32
    %72 = vector.broadcast %cst_35 : f32 to vector<8x512xf32>
    %73 = arith.mulf %72, %69 : vector<8x512xf32>
    %74 = arith.select %71, %69, %73 : vector<8x512xi1>, vector<8x512xf32>
    %c0_36 = arith.constant 0 : index
    %c0_37 = arith.constant 0 : index
    %75 = vector.load %arg4[%c0_36, %c0_37] : memref<8x512xf32, #tpu.memory_space<vmem>>, vector<8x512xf32>
    tpu.vector_store %arg4[%c0_36, %c0_37], %74 {strides = array<i32>} : memref<8x512xf32, #tpu.memory_space<vmem>>, vector<8x512xf32>,
    return
  }
  func.func @transform_0(%arg0: i32) -> (i32, i32) {
    %c0_i32 = arith.constant 0 : i32
    %c0_i32_0 = arith.constant 0 : i32
    %c0_i32_1 = arith.constant 0 : i32
    return %c0_i32, %c0_i32_0 : i32, i32
  }
  func.func @transform_1(%arg0: i32) -> (i32, i32, i32) {
    %c0_i32 = arith.constant 0 : i32
    %c0_i32_0 = arith.constant 0 : i32
    %c0_i32_1 = arith.constant 0 : i32
    %c0_i32_2 = arith.constant 0 : i32
    return %c0_i32, %c0_i32_0, %c0_i32_1 : i32, i32, i32
  }
  func.func @transform_2(%arg0: i32) -> (i32, i32) {
    %c0_i32 = arith.constant 0 : i32
    %c0_i32_0 = arith.constant 0 : i32
    %c0_i32_1 = arith.constant 0 : i32
    return %c0_i32, %c0_i32_0 : i32, i32
  }
  func.func @transform_3(%arg0: i32) -> (i32, i32) {
    %c0_i32 = arith.constant 0 : i32
    %c0_i32_0 = arith.constant 0 : i32
    return %c0_i32, %arg0 : i32, i32
  }
}

module attributes {stable_mosaic.version = 11 : i64} {
  func.func @_conv_taps_kernel(%arg0: i32, %arg1: memref<287x64xf32, #tpu.memory_space<vmem>>, %arg2: memref<8x16x64xbf16, #tpu.memory_space<vmem>>, %arg3: memref<16x1xf32, #tpu.memory_space<vmem>>, %arg4: memref<16x256xf32, #tpu.memory_space<vmem>>) attributes {dimension_semantics = [#tpu.dimension_semantics<parallel>], iteration_bounds = array<i64: 1>, scalar_prefetch = 0 : i64, scratch_operands = 0 : i64, tpu.core_type = #tpu.core_type<tc>, window_params = [{pipeline_mode = #tpu.pipeline_mode<synchronous>, transform_indices = @transform_0, window_bounds = array<i64: 287, 64>}, {pipeline_mode = #tpu.pipeline_mode<synchronous>, transform_indices = @transform_1, window_bounds = array<i64: 8, 16, 64>}, {pipeline_mode = #tpu.pipeline_mode<synchronous>, transform_indices = @transform_2, window_bounds = array<i64: 16, 1>}, {transform_indices = @transform_3, window_bounds = array<i64: 16, 256>}]} {
    %c256_i32 = arith.constant 256 : i32
    %0 = arith.muli %arg0, %c256_i32 : i32
    %1 = tpu.assume_multiple %0, 256 : i32
    %cst = arith.constant 0.000000e+00 : f32
    %2 = vector.broadcast %cst : f32 to vector<16x256xf32>
    %c0_i32 = arith.constant 0 : i32
    %3 = arith.addi %1, %c0_i32 : i32
    %4 = arith.index_cast %3 : i32 to index
    %c0 = arith.constant 0 : index
    %5 = vector.load %arg1[%4, %c0] : memref<287x64xf32, #tpu.memory_space<vmem>>, vector<256x64xf32>
    %6 = arith.truncf %5 : vector<256x64xf32> to vector<256x64xbf16>
    %c0_0 = arith.constant 0 : index
    %c0_1 = arith.constant 0 : index
    %c0_2 = arith.constant 0 : index
    %7 = vector.load %arg2[%c0_0, %c0_1, %c0_2] : memref<8x16x64xbf16, #tpu.memory_space<vmem>>, vector<1x16x64xbf16>
    %8 = vector.shape_cast %7 : vector<1x16x64xbf16> to vector<16x64xbf16>
    %cst_3 = arith.constant dense<0.000000e+00> : vector<16x256xf32>
    %9 = tpu.matmul %8, %6, %cst_3 {dimension_numbers = #tpu.dot_dimension_numbers<[1], [1], [0], [0], [0, 0, 1, 0], [], []>} : vector<16x64xbf16>, vector<256x64xbf16>, vector<16x256xf32> -> vector<16x256xf32>
    %10 = arith.addf %2, %9 : vector<16x256xf32>
    %c1_i32 = arith.constant 1 : i32
    %11 = arith.addi %1, %c1_i32 : i32
    %12 = arith.index_cast %11 : i32 to index
    %c0_4 = arith.constant 0 : index
    %13 = vector.load %arg1[%12, %c0_4] : memref<287x64xf32, #tpu.memory_space<vmem>>, vector<256x64xf32>
    %14 = arith.truncf %13 : vector<256x64xf32> to vector<256x64xbf16>
    %c1 = arith.constant 1 : index
    %c0_5 = arith.constant 0 : index
    %c0_6 = arith.constant 0 : index
    %15 = vector.load %arg2[%c1, %c0_5, %c0_6] : memref<8x16x64xbf16, #tpu.memory_space<vmem>>, vector<1x16x64xbf16>
    %16 = vector.shape_cast %15 : vector<1x16x64xbf16> to vector<16x64xbf16>
    %cst_7 = arith.constant dense<0.000000e+00> : vector<16x256xf32>
    %17 = tpu.matmul %16, %14, %cst_7 {dimension_numbers = #tpu.dot_dimension_numbers<[1], [1], [0], [0], [0, 0, 1, 0], [], []>} : vector<16x64xbf16>, vector<256x64xbf16>, vector<16x256xf32> -> vector<16x256xf32>
    %18 = arith.addf %10, %17 : vector<16x256xf32>
    %c5_i32 = arith.constant 5 : i32
    %19 = arith.addi %1, %c5_i32 : i32
    %20 = arith.index_cast %19 : i32 to index
    %c0_8 = arith.constant 0 : index
    %21 = vector.load %arg1[%20, %c0_8] : memref<287x64xf32, #tpu.memory_space<vmem>>, vector<256x64xf32>
    %22 = arith.truncf %21 : vector<256x64xf32> to vector<256x64xbf16>
    %c2 = arith.constant 2 : index
    %c0_9 = arith.constant 0 : index
    %c0_10 = arith.constant 0 : index
    %23 = vector.load %arg2[%c2, %c0_9, %c0_10] : memref<8x16x64xbf16, #tpu.memory_space<vmem>>, vector<1x16x64xbf16>
    %24 = vector.shape_cast %23 : vector<1x16x64xbf16> to vector<16x64xbf16>
    %cst_11 = arith.constant dense<0.000000e+00> : vector<16x256xf32>
    %25 = tpu.matmul %24, %22, %cst_11 {dimension_numbers = #tpu.dot_dimension_numbers<[1], [1], [0], [0], [0, 0, 1, 0], [], []>} : vector<16x64xbf16>, vector<256x64xbf16>, vector<16x256xf32> -> vector<16x256xf32>
    %26 = arith.addf %18, %25 : vector<16x256xf32>
    %c6_i32 = arith.constant 6 : i32
    %27 = arith.addi %1, %c6_i32 : i32
    %28 = arith.index_cast %27 : i32 to index
    %c0_12 = arith.constant 0 : index
    %29 = vector.load %arg1[%28, %c0_12] : memref<287x64xf32, #tpu.memory_space<vmem>>, vector<256x64xf32>
    %30 = arith.truncf %29 : vector<256x64xf32> to vector<256x64xbf16>
    %c3 = arith.constant 3 : index
    %c0_13 = arith.constant 0 : index
    %c0_14 = arith.constant 0 : index
    %31 = vector.load %arg2[%c3, %c0_13, %c0_14] : memref<8x16x64xbf16, #tpu.memory_space<vmem>>, vector<1x16x64xbf16>
    %32 = vector.shape_cast %31 : vector<1x16x64xbf16> to vector<16x64xbf16>
    %cst_15 = arith.constant dense<0.000000e+00> : vector<16x256xf32>
    %33 = tpu.matmul %32, %30, %cst_15 {dimension_numbers = #tpu.dot_dimension_numbers<[1], [1], [0], [0], [0, 0, 1, 0], [], []>} : vector<16x64xbf16>, vector<256x64xbf16>, vector<16x256xf32> -> vector<16x256xf32>
    %34 = arith.addf %26, %33 : vector<16x256xf32>
    %c25_i32 = arith.constant 25 : i32
    %35 = arith.addi %1, %c25_i32 : i32
    %36 = arith.index_cast %35 : i32 to index
    %c0_16 = arith.constant 0 : index
    %37 = vector.load %arg1[%36, %c0_16] : memref<287x64xf32, #tpu.memory_space<vmem>>, vector<256x64xf32>
    %38 = arith.truncf %37 : vector<256x64xf32> to vector<256x64xbf16>
    %c4 = arith.constant 4 : index
    %c0_17 = arith.constant 0 : index
    %c0_18 = arith.constant 0 : index
    %39 = vector.load %arg2[%c4, %c0_17, %c0_18] : memref<8x16x64xbf16, #tpu.memory_space<vmem>>, vector<1x16x64xbf16>
    %40 = vector.shape_cast %39 : vector<1x16x64xbf16> to vector<16x64xbf16>
    %cst_19 = arith.constant dense<0.000000e+00> : vector<16x256xf32>
    %41 = tpu.matmul %40, %38, %cst_19 {dimension_numbers = #tpu.dot_dimension_numbers<[1], [1], [0], [0], [0, 0, 1, 0], [], []>} : vector<16x64xbf16>, vector<256x64xbf16>, vector<16x256xf32> -> vector<16x256xf32>
    %42 = arith.addf %34, %41 : vector<16x256xf32>
    %c26_i32 = arith.constant 26 : i32
    %43 = arith.addi %1, %c26_i32 : i32
    %44 = arith.index_cast %43 : i32 to index
    %c0_20 = arith.constant 0 : index
    %45 = vector.load %arg1[%44, %c0_20] : memref<287x64xf32, #tpu.memory_space<vmem>>, vector<256x64xf32>
    %46 = arith.truncf %45 : vector<256x64xf32> to vector<256x64xbf16>
    %c5 = arith.constant 5 : index
    %c0_21 = arith.constant 0 : index
    %c0_22 = arith.constant 0 : index
    %47 = vector.load %arg2[%c5, %c0_21, %c0_22] : memref<8x16x64xbf16, #tpu.memory_space<vmem>>, vector<1x16x64xbf16>
    %48 = vector.shape_cast %47 : vector<1x16x64xbf16> to vector<16x64xbf16>
    %cst_23 = arith.constant dense<0.000000e+00> : vector<16x256xf32>
    %49 = tpu.matmul %48, %46, %cst_23 {dimension_numbers = #tpu.dot_dimension_numbers<[1], [1], [0], [0], [0, 0, 1, 0], [], []>} : vector<16x64xbf16>, vector<256x64xbf16>, vector<16x256xf32> -> vector<16x256xf32>
    %50 = arith.addf %42, %49 : vector<16x256xf32>
    %c30_i32 = arith.constant 30 : i32
    %51 = arith.addi %1, %c30_i32 : i32
    %52 = arith.index_cast %51 : i32 to index
    %c0_24 = arith.constant 0 : index
    %53 = vector.load %arg1[%52, %c0_24] : memref<287x64xf32, #tpu.memory_space<vmem>>, vector<256x64xf32>
    %54 = arith.truncf %53 : vector<256x64xf32> to vector<256x64xbf16>
    %c6 = arith.constant 6 : index
    %c0_25 = arith.constant 0 : index
    %c0_26 = arith.constant 0 : index
    %55 = vector.load %arg2[%c6, %c0_25, %c0_26] : memref<8x16x64xbf16, #tpu.memory_space<vmem>>, vector<1x16x64xbf16>
    %56 = vector.shape_cast %55 : vector<1x16x64xbf16> to vector<16x64xbf16>
    %cst_27 = arith.constant dense<0.000000e+00> : vector<16x256xf32>
    %57 = tpu.matmul %56, %54, %cst_27 {dimension_numbers = #tpu.dot_dimension_numbers<[1], [1], [0], [0], [0, 0, 1, 0], [], []>} : vector<16x64xbf16>, vector<256x64xbf16>, vector<16x256xf32> -> vector<16x256xf32>
    %58 = arith.addf %50, %57 : vector<16x256xf32>
    %c31_i32 = arith.constant 31 : i32
    %59 = arith.addi %1, %c31_i32 : i32
    %60 = arith.index_cast %59 : i32 to index
    %c0_28 = arith.constant 0 : index
    %61 = vector.load %arg1[%60, %c0_28] : memref<287x64xf32, #tpu.memory_space<vmem>>, vector<256x64xf32>
    %62 = arith.truncf %61 : vector<256x64xf32> to vector<256x64xbf16>
    %c7 = arith.constant 7 : index
    %c0_29 = arith.constant 0 : index
    %c0_30 = arith.constant 0 : index
    %63 = vector.load %arg2[%c7, %c0_29, %c0_30] : memref<8x16x64xbf16, #tpu.memory_space<vmem>>, vector<1x16x64xbf16>
    %64 = vector.shape_cast %63 : vector<1x16x64xbf16> to vector<16x64xbf16>
    %cst_31 = arith.constant dense<0.000000e+00> : vector<16x256xf32>
    %65 = tpu.matmul %64, %62, %cst_31 {dimension_numbers = #tpu.dot_dimension_numbers<[1], [1], [0], [0], [0, 0, 1, 0], [], []>} : vector<16x64xbf16>, vector<256x64xbf16>, vector<16x256xf32> -> vector<16x256xf32>
    %66 = arith.addf %58, %65 : vector<16x256xf32>
    %c0_32 = arith.constant 0 : index
    %c0_33 = arith.constant 0 : index
    %67 = vector.load %arg3[%c0_32, %c0_33] : memref<16x1xf32, #tpu.memory_space<vmem>>, vector<16x1xf32>
    %68 = vector.broadcast %67 : vector<16x1xf32> to vector<16x256xf32>
    %69 = arith.addf %66, %68 : vector<16x256xf32>
    %cst_34 = arith.constant 0.000000e+00 : f32
    %70 = vector.broadcast %cst_34 : f32 to vector<16x256xf32>
    %71 = arith.cmpf oge, %69, %70 : vector<16x256xf32>
    %cst_35 = arith.constant 0.00999999977 : f32
    %72 = vector.broadcast %cst_35 : f32 to vector<16x256xf32>
    %73 = arith.mulf %72, %69 : vector<16x256xf32>
    %74 = arith.select %71, %69, %73 : vector<16x256xi1>, vector<16x256xf32>
    %c0_36 = arith.constant 0 : index
    %c0_37 = arith.constant 0 : index
    %75 = vector.load %arg4[%c0_36, %c0_37] : memref<16x256xf32, #tpu.memory_space<vmem>>, vector<16x256xf32>
    tpu.vector_store %arg4[%c0_36, %c0_37], %74 {strides = array<i32>} : memref<16x256xf32, #tpu.memory_space<vmem>>, vector<16x256xf32>,
    return
  }
  func.func @transform_0(%arg0: i32) -> (i32, i32) {
    %c0_i32 = arith.constant 0 : i32
    %c0_i32_0 = arith.constant 0 : i32
    %c0_i32_1 = arith.constant 0 : i32
    return %c0_i32, %c0_i32_0 : i32, i32
  }
  func.func @transform_1(%arg0: i32) -> (i32, i32, i32) {
    %c0_i32 = arith.constant 0 : i32
    %c0_i32_0 = arith.constant 0 : i32
    %c0_i32_1 = arith.constant 0 : i32
    %c0_i32_2 = arith.constant 0 : i32
    return %c0_i32, %c0_i32_0, %c0_i32_1 : i32, i32, i32
  }
  func.func @transform_2(%arg0: i32) -> (i32, i32) {
    %c0_i32 = arith.constant 0 : i32
    %c0_i32_0 = arith.constant 0 : i32
    %c0_i32_1 = arith.constant 0 : i32
    return %c0_i32, %c0_i32_0 : i32, i32
  }
  func.func @transform_3(%arg0: i32) -> (i32, i32) {
    %c0_i32 = arith.constant 0 : i32
    %c0_i32_0 = arith.constant 0 : i32
    return %c0_i32, %arg0 : i32, i32
  }
}

module attributes {stable_mosaic.version = 11 : i64} {
  func.func @_conv_taps_kernel(%arg0: i32, %arg1: memref<141x128xf32, #tpu.memory_space<vmem>>, %arg2: memref<8x16x128xbf16, #tpu.memory_space<vmem>>, %arg3: memref<16x1xf32, #tpu.memory_space<vmem>>, %arg4: memref<16x128xf32, #tpu.memory_space<vmem>>) attributes {dimension_semantics = [#tpu.dimension_semantics<parallel>], iteration_bounds = array<i64: 1>, scalar_prefetch = 0 : i64, scratch_operands = 0 : i64, tpu.core_type = #tpu.core_type<tc>, window_params = [{pipeline_mode = #tpu.pipeline_mode<synchronous>, transform_indices = @transform_0, window_bounds = array<i64: 141, 128>}, {pipeline_mode = #tpu.pipeline_mode<synchronous>, transform_indices = @transform_1, window_bounds = array<i64: 8, 16, 128>}, {pipeline_mode = #tpu.pipeline_mode<synchronous>, transform_indices = @transform_2, window_bounds = array<i64: 16, 1>}, {transform_indices = @transform_3, window_bounds = array<i64: 16, 128>}]} {
    %c128_i32 = arith.constant 128 : i32
    %0 = arith.muli %arg0, %c128_i32 : i32
    %1 = tpu.assume_multiple %0, 128 : i32
    %cst = arith.constant 0.000000e+00 : f32
    %2 = vector.broadcast %cst : f32 to vector<16x128xf32>
    %c0_i32 = arith.constant 0 : i32
    %3 = arith.addi %1, %c0_i32 : i32
    %4 = arith.index_cast %3 : i32 to index
    %c0 = arith.constant 0 : index
    %5 = vector.load %arg1[%4, %c0] : memref<141x128xf32, #tpu.memory_space<vmem>>, vector<128x128xf32>
    %6 = arith.truncf %5 : vector<128x128xf32> to vector<128x128xbf16>
    %c0_0 = arith.constant 0 : index
    %c0_1 = arith.constant 0 : index
    %c0_2 = arith.constant 0 : index
    %7 = vector.load %arg2[%c0_0, %c0_1, %c0_2] : memref<8x16x128xbf16, #tpu.memory_space<vmem>>, vector<1x16x128xbf16>
    %8 = vector.shape_cast %7 : vector<1x16x128xbf16> to vector<16x128xbf16>
    %cst_3 = arith.constant dense<0.000000e+00> : vector<16x128xf32>
    %9 = tpu.matmul %8, %6, %cst_3 {dimension_numbers = #tpu.dot_dimension_numbers<[1], [1], [0], [0], [0, 0, 1, 0], [], []>} : vector<16x128xbf16>, vector<128x128xbf16>, vector<16x128xf32> -> vector<16x128xf32>
    %10 = arith.addf %2, %9 : vector<16x128xf32>
    %c1_i32 = arith.constant 1 : i32
    %11 = arith.addi %1, %c1_i32 : i32
    %12 = arith.index_cast %11 : i32 to index
    %c0_4 = arith.constant 0 : index
    %13 = vector.load %arg1[%12, %c0_4] : memref<141x128xf32, #tpu.memory_space<vmem>>, vector<128x128xf32>
    %14 = arith.truncf %13 : vector<128x128xf32> to vector<128x128xbf16>
    %c1 = arith.constant 1 : index
    %c0_5 = arith.constant 0 : index
    %c0_6 = arith.constant 0 : index
    %15 = vector.load %arg2[%c1, %c0_5, %c0_6] : memref<8x16x128xbf16, #tpu.memory_space<vmem>>, vector<1x16x128xbf16>
    %16 = vector.shape_cast %15 : vector<1x16x128xbf16> to vector<16x128xbf16>
    %cst_7 = arith.constant dense<0.000000e+00> : vector<16x128xf32>
    %17 = tpu.matmul %16, %14, %cst_7 {dimension_numbers = #tpu.dot_dimension_numbers<[1], [1], [0], [0], [0, 0, 1, 0], [], []>} : vector<16x128xbf16>, vector<128x128xbf16>, vector<16x128xf32> -> vector<16x128xf32>
    %18 = arith.addf %10, %17 : vector<16x128xf32>
    %c3_i32 = arith.constant 3 : i32
    %19 = arith.addi %1, %c3_i32 : i32
    %20 = arith.index_cast %19 : i32 to index
    %c0_8 = arith.constant 0 : index
    %21 = vector.load %arg1[%20, %c0_8] : memref<141x128xf32, #tpu.memory_space<vmem>>, vector<128x128xf32>
    %22 = arith.truncf %21 : vector<128x128xf32> to vector<128x128xbf16>
    %c2 = arith.constant 2 : index
    %c0_9 = arith.constant 0 : index
    %c0_10 = arith.constant 0 : index
    %23 = vector.load %arg2[%c2, %c0_9, %c0_10] : memref<8x16x128xbf16, #tpu.memory_space<vmem>>, vector<1x16x128xbf16>
    %24 = vector.shape_cast %23 : vector<1x16x128xbf16> to vector<16x128xbf16>
    %cst_11 = arith.constant dense<0.000000e+00> : vector<16x128xf32>
    %25 = tpu.matmul %24, %22, %cst_11 {dimension_numbers = #tpu.dot_dimension_numbers<[1], [1], [0], [0], [0, 0, 1, 0], [], []>} : vector<16x128xbf16>, vector<128x128xbf16>, vector<16x128xf32> -> vector<16x128xf32>
    %26 = arith.addf %18, %25 : vector<16x128xf32>
    %c4_i32 = arith.constant 4 : i32
    %27 = arith.addi %1, %c4_i32 : i32
    %28 = arith.index_cast %27 : i32 to index
    %c0_12 = arith.constant 0 : index
    %29 = vector.load %arg1[%28, %c0_12] : memref<141x128xf32, #tpu.memory_space<vmem>>, vector<128x128xf32>
    %30 = arith.truncf %29 : vector<128x128xf32> to vector<128x128xbf16>
    %c3 = arith.constant 3 : index
    %c0_13 = arith.constant 0 : index
    %c0_14 = arith.constant 0 : index
    %31 = vector.load %arg2[%c3, %c0_13, %c0_14] : memref<8x16x128xbf16, #tpu.memory_space<vmem>>, vector<1x16x128xbf16>
    %32 = vector.shape_cast %31 : vector<1x16x128xbf16> to vector<16x128xbf16>
    %cst_15 = arith.constant dense<0.000000e+00> : vector<16x128xf32>
    %33 = tpu.matmul %32, %30, %cst_15 {dimension_numbers = #tpu.dot_dimension_numbers<[1], [1], [0], [0], [0, 0, 1, 0], [], []>} : vector<16x128xbf16>, vector<128x128xbf16>, vector<16x128xf32> -> vector<16x128xf32>
    %34 = arith.addf %26, %33 : vector<16x128xf32>
    %c9_i32 = arith.constant 9 : i32
    %35 = arith.addi %1, %c9_i32 : i32
    %36 = arith.index_cast %35 : i32 to index
    %c0_16 = arith.constant 0 : index
    %37 = vector.load %arg1[%36, %c0_16] : memref<141x128xf32, #tpu.memory_space<vmem>>, vector<128x128xf32>
    %38 = arith.truncf %37 : vector<128x128xf32> to vector<128x128xbf16>
    %c4 = arith.constant 4 : index
    %c0_17 = arith.constant 0 : index
    %c0_18 = arith.constant 0 : index
    %39 = vector.load %arg2[%c4, %c0_17, %c0_18] : memref<8x16x128xbf16, #tpu.memory_space<vmem>>, vector<1x16x128xbf16>
    %40 = vector.shape_cast %39 : vector<1x16x128xbf16> to vector<16x128xbf16>
    %cst_19 = arith.constant dense<0.000000e+00> : vector<16x128xf32>
    %41 = tpu.matmul %40, %38, %cst_19 {dimension_numbers = #tpu.dot_dimension_numbers<[1], [1], [0], [0], [0, 0, 1, 0], [], []>} : vector<16x128xbf16>, vector<128x128xbf16>, vector<16x128xf32> -> vector<16x128xf32>
    %42 = arith.addf %34, %41 : vector<16x128xf32>
    %c10_i32 = arith.constant 10 : i32
    %43 = arith.addi %1, %c10_i32 : i32
    %44 = arith.index_cast %43 : i32 to index
    %c0_20 = arith.constant 0 : index
    %45 = vector.load %arg1[%44, %c0_20] : memref<141x128xf32, #tpu.memory_space<vmem>>, vector<128x128xf32>
    %46 = arith.truncf %45 : vector<128x128xf32> to vector<128x128xbf16>
    %c5 = arith.constant 5 : index
    %c0_21 = arith.constant 0 : index
    %c0_22 = arith.constant 0 : index
    %47 = vector.load %arg2[%c5, %c0_21, %c0_22] : memref<8x16x128xbf16, #tpu.memory_space<vmem>>, vector<1x16x128xbf16>
    %48 = vector.shape_cast %47 : vector<1x16x128xbf16> to vector<16x128xbf16>
    %cst_23 = arith.constant dense<0.000000e+00> : vector<16x128xf32>
    %49 = tpu.matmul %48, %46, %cst_23 {dimension_numbers = #tpu.dot_dimension_numbers<[1], [1], [0], [0], [0, 0, 1, 0], [], []>} : vector<16x128xbf16>, vector<128x128xbf16>, vector<16x128xf32> -> vector<16x128xf32>
    %50 = arith.addf %42, %49 : vector<16x128xf32>
    %c12_i32 = arith.constant 12 : i32
    %51 = arith.addi %1, %c12_i32 : i32
    %52 = arith.index_cast %51 : i32 to index
    %c0_24 = arith.constant 0 : index
    %53 = vector.load %arg1[%52, %c0_24] : memref<141x128xf32, #tpu.memory_space<vmem>>, vector<128x128xf32>
    %54 = arith.truncf %53 : vector<128x128xf32> to vector<128x128xbf16>
    %c6 = arith.constant 6 : index
    %c0_25 = arith.constant 0 : index
    %c0_26 = arith.constant 0 : index
    %55 = vector.load %arg2[%c6, %c0_25, %c0_26] : memref<8x16x128xbf16, #tpu.memory_space<vmem>>, vector<1x16x128xbf16>
    %56 = vector.shape_cast %55 : vector<1x16x128xbf16> to vector<16x128xbf16>
    %cst_27 = arith.constant dense<0.000000e+00> : vector<16x128xf32>
    %57 = tpu.matmul %56, %54, %cst_27 {dimension_numbers = #tpu.dot_dimension_numbers<[1], [1], [0], [0], [0, 0, 1, 0], [], []>} : vector<16x128xbf16>, vector<128x128xbf16>, vector<16x128xf32> -> vector<16x128xf32>
    %58 = arith.addf %50, %57 : vector<16x128xf32>
    %c13_i32 = arith.constant 13 : i32
    %59 = arith.addi %1, %c13_i32 : i32
    %60 = arith.index_cast %59 : i32 to index
    %c0_28 = arith.constant 0 : index
    %61 = vector.load %arg1[%60, %c0_28] : memref<141x128xf32, #tpu.memory_space<vmem>>, vector<128x128xf32>
    %62 = arith.truncf %61 : vector<128x128xf32> to vector<128x128xbf16>
    %c7 = arith.constant 7 : index
    %c0_29 = arith.constant 0 : index
    %c0_30 = arith.constant 0 : index
    %63 = vector.load %arg2[%c7, %c0_29, %c0_30] : memref<8x16x128xbf16, #tpu.memory_space<vmem>>, vector<1x16x128xbf16>
    %64 = vector.shape_cast %63 : vector<1x16x128xbf16> to vector<16x128xbf16>
    %cst_31 = arith.constant dense<0.000000e+00> : vector<16x128xf32>
    %65 = tpu.matmul %64, %62, %cst_31 {dimension_numbers = #tpu.dot_dimension_numbers<[1], [1], [0], [0], [0, 0, 1, 0], [], []>} : vector<16x128xbf16>, vector<128x128xbf16>, vector<16x128xf32> -> vector<16x128xf32>
    %66 = arith.addf %58, %65 : vector<16x128xf32>
    %c0_32 = arith.constant 0 : index
    %c0_33 = arith.constant 0 : index
    %67 = vector.load %arg3[%c0_32, %c0_33] : memref<16x1xf32, #tpu.memory_space<vmem>>, vector<16x1xf32>
    %68 = vector.broadcast %67 : vector<16x1xf32> to vector<16x128xf32>
    %69 = arith.addf %66, %68 : vector<16x128xf32>
    %cst_34 = arith.constant 0.000000e+00 : f32
    %70 = vector.broadcast %cst_34 : f32 to vector<16x128xf32>
    %71 = arith.cmpf oge, %69, %70 : vector<16x128xf32>
    %cst_35 = arith.constant 0.00999999977 : f32
    %72 = vector.broadcast %cst_35 : f32 to vector<16x128xf32>
    %73 = arith.mulf %72, %69 : vector<16x128xf32>
    %74 = arith.select %71, %69, %73 : vector<16x128xi1>, vector<16x128xf32>
    %c0_36 = arith.constant 0 : index
    %c0_37 = arith.constant 0 : index
    %75 = vector.load %arg4[%c0_36, %c0_37] : memref<16x128xf32, #tpu.memory_space<vmem>>, vector<16x128xf32>
    tpu.vector_store %arg4[%c0_36, %c0_37], %74 {strides = array<i32>} : memref<16x128xf32, #tpu.memory_space<vmem>>, vector<16x128xf32>,
    return
  }
  func.func @transform_0(%arg0: i32) -> (i32, i32) {
    %c0_i32 = arith.constant 0 : i32
    %c0_i32_0 = arith.constant 0 : i32
    %c0_i32_1 = arith.constant 0 : i32
    return %c0_i32, %c0_i32_0 : i32, i32
  }
  func.func @transform_1(%arg0: i32) -> (i32, i32, i32) {
    %c0_i32 = arith.constant 0 : i32
    %c0_i32_0 = arith.constant 0 : i32
    %c0_i32_1 = arith.constant 0 : i32
    %c0_i32_2 = arith.constant 0 : i32
    return %c0_i32, %c0_i32_0, %c0_i32_1 : i32, i32, i32
  }
  func.func @transform_2(%arg0: i32) -> (i32, i32) {
    %c0_i32 = arith.constant 0 : i32
    %c0_i32_0 = arith.constant 0 : i32
    %c0_i32_1 = arith.constant 0 : i32
    return %c0_i32, %c0_i32_0 : i32, i32
  }
  func.func @transform_3(%arg0: i32) -> (i32, i32) {
    %c0_i32 = arith.constant 0 : i32
    %c0_i32_0 = arith.constant 0 : i32
    return %c0_i32, %arg0 : i32, i32
  }
}

module attributes {stable_mosaic.version = 11 : i64} {
  func.func @_tail_kernel(%arg0: memref<2x32xf32, #tpu.memory_space<vmem>>, %arg1: memref<32x32xbf16, #tpu.memory_space<vmem>>, %arg2: memref<1x32xf32, #tpu.memory_space<vmem>>, %arg3: memref<32x8xbf16, #tpu.memory_space<vmem>>, %arg4: memref<1x8xf32, #tpu.memory_space<vmem>>, %arg5: memref<32x8xbf16, #tpu.memory_space<vmem>>, %arg6: memref<1x8xf32, #tpu.memory_space<vmem>>, %arg7: memref<2x8xf32, #tpu.memory_space<vmem>>, %arg8: memref<2x8xf32, #tpu.memory_space<vmem>>, %arg9: memref<2x8xf32, #tpu.memory_space<vmem>>, %arg10: memref<2x8xf32, #tpu.memory_space<vmem>>) attributes {dimension_semantics = [], scalar_prefetch = 0 : i64, scratch_operands = 0 : i64, tpu.core_type = #tpu.core_type<tc>} {
    %c0 = arith.constant 0 : index
    %c0_0 = arith.constant 0 : index
    %0 = vector.load %arg0[%c0, %c0_0] : memref<2x32xf32, #tpu.memory_space<vmem>>, vector<2x32xf32>
    %1 = arith.truncf %0 : vector<2x32xf32> to vector<2x32xbf16>
    %c0_1 = arith.constant 0 : index
    %c0_2 = arith.constant 0 : index
    %2 = vector.load %arg1[%c0_1, %c0_2] : memref<32x32xbf16, #tpu.memory_space<vmem>>, vector<32x32xbf16>
    %cst = arith.constant dense<0.000000e+00> : vector<2x32xf32>
    %3 = tpu.matmul %1, %2, %cst {dimension_numbers = #tpu.dot_dimension_numbers<[1], [0], [0], [1], [0, 0, 1, 1], [], []>} : vector<2x32xbf16>, vector<32x32xbf16>, vector<2x32xf32> -> vector<2x32xf32>
    %c0_3 = arith.constant 0 : index
    %c0_4 = arith.constant 0 : index
    %4 = vector.load %arg2[%c0_3, %c0_4] : memref<1x32xf32, #tpu.memory_space<vmem>>, vector<1x32xf32>
    %5 = vector.broadcast %4 : vector<1x32xf32> to vector<2x32xf32>
    %6 = arith.addf %3, %5 : vector<2x32xf32>
    %cst_5 = arith.constant 0.000000e+00 : f32
    %7 = vector.broadcast %cst_5 : f32 to vector<2x32xf32>
    %8 = arith.cmpf oge, %6, %7 : vector<2x32xf32>
    %cst_6 = arith.constant 0.00999999977 : f32
    %9 = vector.broadcast %cst_6 : f32 to vector<2x32xf32>
    %10 = arith.mulf %9, %6 : vector<2x32xf32>
    %11 = arith.select %8, %6, %10 : vector<2x32xi1>, vector<2x32xf32>
    %12 = arith.truncf %11 : vector<2x32xf32> to vector<2x32xbf16>
    %c0_7 = arith.constant 0 : index
    %c0_8 = arith.constant 0 : index
    %13 = vector.load %arg3[%c0_7, %c0_8] : memref<32x8xbf16, #tpu.memory_space<vmem>>, vector<32x8xbf16>
    %cst_9 = arith.constant dense<0.000000e+00> : vector<2x8xf32>
    %14 = tpu.matmul %12, %13, %cst_9 {dimension_numbers = #tpu.dot_dimension_numbers<[1], [0], [0], [1], [0, 0, 1, 1], [], []>} : vector<2x32xbf16>, vector<32x8xbf16>, vector<2x8xf32> -> vector<2x8xf32>
    %c0_10 = arith.constant 0 : index
    %c0_11 = arith.constant 0 : index
    %15 = vector.load %arg4[%c0_10, %c0_11] : memref<1x8xf32, #tpu.memory_space<vmem>>, vector<1x8xf32>
    %16 = vector.broadcast %15 : vector<1x8xf32> to vector<2x8xf32>
    %17 = arith.addf %14, %16 : vector<2x8xf32>
    %c0_12 = arith.constant 0 : index
    %c0_13 = arith.constant 0 : index
    %18 = vector.load %arg5[%c0_12, %c0_13] : memref<32x8xbf16, #tpu.memory_space<vmem>>, vector<32x8xbf16>
    %cst_14 = arith.constant dense<0.000000e+00> : vector<2x8xf32>
    %19 = tpu.matmul %12, %18, %cst_14 {dimension_numbers = #tpu.dot_dimension_numbers<[1], [0], [0], [1], [0, 0, 1, 1], [], []>} : vector<2x32xbf16>, vector<32x8xbf16>, vector<2x8xf32> -> vector<2x8xf32>
    %c0_15 = arith.constant 0 : index
    %c0_16 = arith.constant 0 : index
    %20 = vector.load %arg6[%c0_15, %c0_16] : memref<1x8xf32, #tpu.memory_space<vmem>>, vector<1x8xf32>
    %21 = vector.broadcast %20 : vector<1x8xf32> to vector<2x8xf32>
    %22 = arith.addf %19, %21 : vector<2x8xf32>
    %c0_17 = arith.constant 0 : index
    %c0_18 = arith.constant 0 : index
    %23 = vector.load %arg7[%c0_17, %c0_18] : memref<2x8xf32, #tpu.memory_space<vmem>>, vector<2x8xf32>
    %cst_19 = arith.constant 5.000000e-01 : f32
    %24 = vector.broadcast %cst_19 : f32 to vector<2x8xf32>
    %25 = arith.mulf %24, %22 : vector<2x8xf32>
    %26 = math.exp %25 : vector<2x8xf32>
    %27 = arith.mulf %23, %26 : vector<2x8xf32>
    %28 = arith.addf %17, %27 : vector<2x8xf32>
    %c0_20 = arith.constant 0 : index
    %c0_21 = arith.constant 0 : index
    %29 = vector.load %arg8[%c0_20, %c0_21] : memref<2x8xf32, #tpu.memory_space<vmem>>, vector<2x8xf32>
    tpu.vector_store %arg8[%c0_20, %c0_21], %28 {strides = array<i32>} : memref<2x8xf32, #tpu.memory_space<vmem>>, vector<2x8xf32>,
    %c0_22 = arith.constant 0 : index
    %c0_23 = arith.constant 0 : index
    %30 = vector.load %arg9[%c0_22, %c0_23] : memref<2x8xf32, #tpu.memory_space<vmem>>, vector<2x8xf32>
    tpu.vector_store %arg9[%c0_22, %c0_23], %17 {strides = array<i32>} : memref<2x8xf32, #tpu.memory_space<vmem>>, vector<2x8xf32>,
    %c0_24 = arith.constant 0 : index
    %c0_25 = arith.constant 0 : index
    %31 = vector.load %arg10[%c0_24, %c0_25] : memref<2x8xf32, #tpu.memory_space<vmem>>, vector<2x8xf32>
    tpu.vector_store %arg10[%c0_24, %c0_25], %22 {strides = array<i32>} : memref<2x8xf32, #tpu.memory_space<vmem>>, vector<2x8xf32>,
    return
  }
}

module attributes {stable_mosaic.version = 11 : i64} {
  func.func @_conv_taps_kernel(%arg0: i32, %arg1: memref<135x128xf32, #tpu.memory_space<vmem>>, %arg2: memref<8x32x128xbf16, #tpu.memory_space<vmem>>, %arg3: memref<32x1xf32, #tpu.memory_space<vmem>>, %arg4: memref<32x128xf32, #tpu.memory_space<vmem>>) attributes {dimension_semantics = [#tpu.dimension_semantics<parallel>], iteration_bounds = array<i64: 1>, scalar_prefetch = 0 : i64, scratch_operands = 0 : i64, tpu.core_type = #tpu.core_type<tc>, window_params = [{pipeline_mode = #tpu.pipeline_mode<synchronous>, transform_indices = @transform_0, window_bounds = array<i64: 135, 128>}, {pipeline_mode = #tpu.pipeline_mode<synchronous>, transform_indices = @transform_1, window_bounds = array<i64: 8, 32, 128>}, {pipeline_mode = #tpu.pipeline_mode<synchronous>, transform_indices = @transform_2, window_bounds = array<i64: 32, 1>}, {transform_indices = @transform_3, window_bounds = array<i64: 32, 128>}]} {
    %c128_i32 = arith.constant 128 : i32
    %0 = arith.muli %arg0, %c128_i32 : i32
    %1 = tpu.assume_multiple %0, 128 : i32
    %cst = arith.constant 0.000000e+00 : f32
    %2 = vector.broadcast %cst : f32 to vector<32x128xf32>
    %c0_i32 = arith.constant 0 : i32
    %3 = arith.addi %1, %c0_i32 : i32
    %4 = arith.index_cast %3 : i32 to index
    %c0 = arith.constant 0 : index
    %5 = vector.load %arg1[%4, %c0] : memref<135x128xf32, #tpu.memory_space<vmem>>, vector<128x128xf32>
    %6 = arith.truncf %5 : vector<128x128xf32> to vector<128x128xbf16>
    %c0_0 = arith.constant 0 : index
    %c0_1 = arith.constant 0 : index
    %c0_2 = arith.constant 0 : index
    %7 = vector.load %arg2[%c0_0, %c0_1, %c0_2] : memref<8x32x128xbf16, #tpu.memory_space<vmem>>, vector<1x32x128xbf16>
    %8 = vector.shape_cast %7 : vector<1x32x128xbf16> to vector<32x128xbf16>
    %cst_3 = arith.constant dense<0.000000e+00> : vector<32x128xf32>
    %9 = tpu.matmul %8, %6, %cst_3 {dimension_numbers = #tpu.dot_dimension_numbers<[1], [1], [0], [0], [0, 0, 1, 0], [], []>} : vector<32x128xbf16>, vector<128x128xbf16>, vector<32x128xf32> -> vector<32x128xf32>
    %10 = arith.addf %2, %9 : vector<32x128xf32>
    %c1_i32 = arith.constant 1 : i32
    %11 = arith.addi %1, %c1_i32 : i32
    %12 = arith.index_cast %11 : i32 to index
    %c0_4 = arith.constant 0 : index
    %13 = vector.load %arg1[%12, %c0_4] : memref<135x128xf32, #tpu.memory_space<vmem>>, vector<128x128xf32>
    %14 = arith.truncf %13 : vector<128x128xf32> to vector<128x128xbf16>
    %c1 = arith.constant 1 : index
    %c0_5 = arith.constant 0 : index
    %c0_6 = arith.constant 0 : index
    %15 = vector.load %arg2[%c1, %c0_5, %c0_6] : memref<8x32x128xbf16, #tpu.memory_space<vmem>>, vector<1x32x128xbf16>
    %16 = vector.shape_cast %15 : vector<1x32x128xbf16> to vector<32x128xbf16>
    %cst_7 = arith.constant dense<0.000000e+00> : vector<32x128xf32>
    %17 = tpu.matmul %16, %14, %cst_7 {dimension_numbers = #tpu.dot_dimension_numbers<[1], [1], [0], [0], [0, 0, 1, 0], [], []>} : vector<32x128xbf16>, vector<128x128xbf16>, vector<32x128xf32> -> vector<32x128xf32>
    %18 = arith.addf %10, %17 : vector<32x128xf32>
    %c2_i32 = arith.constant 2 : i32
    %19 = arith.addi %1, %c2_i32 : i32
    %20 = arith.index_cast %19 : i32 to index
    %c0_8 = arith.constant 0 : index
    %21 = vector.load %arg1[%20, %c0_8] : memref<135x128xf32, #tpu.memory_space<vmem>>, vector<128x128xf32>
    %22 = arith.truncf %21 : vector<128x128xf32> to vector<128x128xbf16>
    %c2 = arith.constant 2 : index
    %c0_9 = arith.constant 0 : index
    %c0_10 = arith.constant 0 : index
    %23 = vector.load %arg2[%c2, %c0_9, %c0_10] : memref<8x32x128xbf16, #tpu.memory_space<vmem>>, vector<1x32x128xbf16>
    %24 = vector.shape_cast %23 : vector<1x32x128xbf16> to vector<32x128xbf16>
    %cst_11 = arith.constant dense<0.000000e+00> : vector<32x128xf32>
    %25 = tpu.matmul %24, %22, %cst_11 {dimension_numbers = #tpu.dot_dimension_numbers<[1], [1], [0], [0], [0, 0, 1, 0], [], []>} : vector<32x128xbf16>, vector<128x128xbf16>, vector<32x128xf32> -> vector<32x128xf32>
    %26 = arith.addf %18, %25 : vector<32x128xf32>
    %c3_i32 = arith.constant 3 : i32
    %27 = arith.addi %1, %c3_i32 : i32
    %28 = arith.index_cast %27 : i32 to index
    %c0_12 = arith.constant 0 : index
    %29 = vector.load %arg1[%28, %c0_12] : memref<135x128xf32, #tpu.memory_space<vmem>>, vector<128x128xf32>
    %30 = arith.truncf %29 : vector<128x128xf32> to vector<128x128xbf16>
    %c3 = arith.constant 3 : index
    %c0_13 = arith.constant 0 : index
    %c0_14 = arith.constant 0 : index
    %31 = vector.load %arg2[%c3, %c0_13, %c0_14] : memref<8x32x128xbf16, #tpu.memory_space<vmem>>, vector<1x32x128xbf16>
    %32 = vector.shape_cast %31 : vector<1x32x128xbf16> to vector<32x128xbf16>
    %cst_15 = arith.constant dense<0.000000e+00> : vector<32x128xf32>
    %33 = tpu.matmul %32, %30, %cst_15 {dimension_numbers = #tpu.dot_dimension_numbers<[1], [1], [0], [0], [0, 0, 1, 0], [], []>} : vector<32x128xbf16>, vector<128x128xbf16>, vector<32x128xf32> -> vector<32x128xf32>
    %34 = arith.addf %26, %33 : vector<32x128xf32>
    %c4_i32 = arith.constant 4 : i32
    %35 = arith.addi %1, %c4_i32 : i32
    %36 = arith.index_cast %35 : i32 to index
    %c0_16 = arith.constant 0 : index
    %37 = vector.load %arg1[%36, %c0_16] : memref<135x128xf32, #tpu.memory_space<vmem>>, vector<128x128xf32>
    %38 = arith.truncf %37 : vector<128x128xf32> to vector<128x128xbf16>
    %c4 = arith.constant 4 : index
    %c0_17 = arith.constant 0 : index
    %c0_18 = arith.constant 0 : index
    %39 = vector.load %arg2[%c4, %c0_17, %c0_18] : memref<8x32x128xbf16, #tpu.memory_space<vmem>>, vector<1x32x128xbf16>
    %40 = vector.shape_cast %39 : vector<1x32x128xbf16> to vector<32x128xbf16>
    %cst_19 = arith.constant dense<0.000000e+00> : vector<32x128xf32>
    %41 = tpu.matmul %40, %38, %cst_19 {dimension_numbers = #tpu.dot_dimension_numbers<[1], [1], [0], [0], [0, 0, 1, 0], [], []>} : vector<32x128xbf16>, vector<128x128xbf16>, vector<32x128xf32> -> vector<32x128xf32>
    %42 = arith.addf %34, %41 : vector<32x128xf32>
    %c5_i32 = arith.constant 5 : i32
    %43 = arith.addi %1, %c5_i32 : i32
    %44 = arith.index_cast %43 : i32 to index
    %c0_20 = arith.constant 0 : index
    %45 = vector.load %arg1[%44, %c0_20] : memref<135x128xf32, #tpu.memory_space<vmem>>, vector<128x128xf32>
    %46 = arith.truncf %45 : vector<128x128xf32> to vector<128x128xbf16>
    %c5 = arith.constant 5 : index
    %c0_21 = arith.constant 0 : index
    %c0_22 = arith.constant 0 : index
    %47 = vector.load %arg2[%c5, %c0_21, %c0_22] : memref<8x32x128xbf16, #tpu.memory_space<vmem>>, vector<1x32x128xbf16>
    %48 = vector.shape_cast %47 : vector<1x32x128xbf16> to vector<32x128xbf16>
    %cst_23 = arith.constant dense<0.000000e+00> : vector<32x128xf32>
    %49 = tpu.matmul %48, %46, %cst_23 {dimension_numbers = #tpu.dot_dimension_numbers<[1], [1], [0], [0], [0, 0, 1, 0], [], []>} : vector<32x128xbf16>, vector<128x128xbf16>, vector<32x128xf32> -> vector<32x128xf32>
    %50 = arith.addf %42, %49 : vector<32x128xf32>
    %c6_i32 = arith.constant 6 : i32
    %51 = arith.addi %1, %c6_i32 : i32
    %52 = arith.index_cast %51 : i32 to index
    %c0_24 = arith.constant 0 : index
    %53 = vector.load %arg1[%52, %c0_24] : memref<135x128xf32, #tpu.memory_space<vmem>>, vector<128x128xf32>
    %54 = arith.truncf %53 : vector<128x128xf32> to vector<128x128xbf16>
    %c6 = arith.constant 6 : index
    %c0_25 = arith.constant 0 : index
    %c0_26 = arith.constant 0 : index
    %55 = vector.load %arg2[%c6, %c0_25, %c0_26] : memref<8x32x128xbf16, #tpu.memory_space<vmem>>, vector<1x32x128xbf16>
    %56 = vector.shape_cast %55 : vector<1x32x128xbf16> to vector<32x128xbf16>
    %cst_27 = arith.constant dense<0.000000e+00> : vector<32x128xf32>
    %57 = tpu.matmul %56, %54, %cst_27 {dimension_numbers = #tpu.dot_dimension_numbers<[1], [1], [0], [0], [0, 0, 1, 0], [], []>} : vector<32x128xbf16>, vector<128x128xbf16>, vector<32x128xf32> -> vector<32x128xf32>
    %58 = arith.addf %50, %57 : vector<32x128xf32>
    %c7_i32 = arith.constant 7 : i32
    %59 = arith.addi %1, %c7_i32 : i32
    %60 = arith.index_cast %59 : i32 to index
    %c0_28 = arith.constant 0 : index
    %61 = vector.load %arg1[%60, %c0_28] : memref<135x128xf32, #tpu.memory_space<vmem>>, vector<128x128xf32>
    %62 = arith.truncf %61 : vector<128x128xf32> to vector<128x128xbf16>
    %c7 = arith.constant 7 : index
    %c0_29 = arith.constant 0 : index
    %c0_30 = arith.constant 0 : index
    %63 = vector.load %arg2[%c7, %c0_29, %c0_30] : memref<8x32x128xbf16, #tpu.memory_space<vmem>>, vector<1x32x128xbf16>
    %64 = vector.shape_cast %63 : vector<1x32x128xbf16> to vector<32x128xbf16>
    %cst_31 = arith.constant dense<0.000000e+00> : vector<32x128xf32>
    %65 = tpu.matmul %64, %62, %cst_31 {dimension_numbers = #tpu.dot_dimension_numbers<[1], [1], [0], [0], [0, 0, 1, 0], [], []>} : vector<32x128xbf16>, vector<128x128xbf16>, vector<32x128xf32> -> vector<32x128xf32>
    %66 = arith.addf %58, %65 : vector<32x128xf32>
    %c0_32 = arith.constant 0 : index
    %c0_33 = arith.constant 0 : index
    %67 = vector.load %arg3[%c0_32, %c0_33] : memref<32x1xf32, #tpu.memory_space<vmem>>, vector<32x1xf32>
    %68 = vector.broadcast %67 : vector<32x1xf32> to vector<32x128xf32>
    %69 = arith.addf %66, %68 : vector<32x128xf32>
    %cst_34 = arith.constant 0.000000e+00 : f32
    %70 = vector.broadcast %cst_34 : f32 to vector<32x128xf32>
    %71 = arith.cmpf oge, %69, %70 : vector<32x128xf32>
    %cst_35 = arith.constant 0.00999999977 : f32
    %72 = vector.broadcast %cst_35 : f32 to vector<32x128xf32>
    %73 = arith.mulf %72, %69 : vector<32x128xf32>
    %74 = arith.select %71, %69, %73 : vector<32x128xi1>, vector<32x128xf32>
    %c0_36 = arith.constant 0 : index
    %c0_37 = arith.constant 0 : index
    %75 = vector.load %arg4[%c0_36, %c0_37] : memref<32x128xf32, #tpu.memory_space<vmem>>, vector<32x128xf32>
    tpu.vector_store %arg4[%c0_36, %c0_37], %74 {strides = array<i32>} : memref<32x128xf32, #tpu.memory_space<vmem>>, vector<32x128xf32>,
    return
  }
  func.func @transform_0(%arg0: i32) -> (i32, i32) {
    %c0_i32 = arith.constant 0 : i32
    %c0_i32_0 = arith.constant 0 : i32
    %c0_i32_1 = arith.constant 0 : i32
    return %c0_i32, %c0_i32_0 : i32, i32
  }
  func.func @transform_1(%arg0: i32) -> (i32, i32, i32) {
    %c0_i32 = arith.constant 0 : i32
    %c0_i32_0 = arith.constant 0 : i32
    %c0_i32_1 = arith.constant 0 : i32
    %c0_i32_2 = arith.constant 0 : i32
    return %c0_i32, %c0_i32_0, %c0_i32_1 : i32, i32, i32
  }
  func.func @transform_2(%arg0: i32) -> (i32, i32) {
    %c0_i32 = arith.constant 0 : i32
    %c0_i32_0 = arith.constant 0 : i32
    %c0_i32_1 = arith.constant 0 : i32
    return %c0_i32, %c0_i32_0 : i32, i32
  }
  func.func @transform_3(%arg0: i32) -> (i32, i32) {
    %c0_i32 = arith.constant 0 : i32
    %c0_i32_0 = arith.constant 0 : i32
    return %c0_i32, %arg0 : i32, i32
  }
}

</mosaic_0001>

<bundles_post_ra>
// kernel: video_encoder_forward.5
= control target key start
LH: loop header
LB: loop body
LE: loop exit
PB: predicated region body
PF: predicated region fallthrough
CT: control target
= control target key end

     0   :  { %s3460_s12 = smov 0   ;;  %s4919_s0 = inlined_call_operand.vmem [shape: f32[1627,24], index: 0, kind: input, shape index: {}]   ;;  %s4920_s1 = inlined_call_operand.vmem [shape: bf16[8,8,24], index: 1, kind: input, shape index: {}]   ;;  %s4921_s2 = inlined_call_operand.vmem [shape: f32[8,1], index: 2, kind: input, shape index: {}]   ;;  %s4922_s3 = inlined_call_operand.vmem [shape: f32[8,1536], index: 3, kind: output, shape index: {}]  }
   0x1 LB: > { %s2518_s13 = sadd.s32 4294967295, %s3437_s12   ;;  %p2521_p0 = scmp.ge.s32.totalorder %s3437_s12, 1  ;;  %s3437_s12 = sphi %s3460_s12, %s13_s12  }
   0x2   : > { %p127_p1 = scmp.lt.s32.totalorder %s3437_s12, 4 }
   0x4   : > { %p128_p2 = pnand %p2521_p0, %p127_p1 }
   0x6   : > { %131 = sbr.rel (%p128_p2) target bundleno = 754 (0x2f2), region = 32 }
   0xd   : > { %s2524_s14 = sshll.u32 %s2518_s13, 9  ;;  %vm352_vm0 = vcmask 195584   ;;  %v3473_v0 = vld [vmem:[%s4920_s1 + $0x4] sm:$0xf]  ;;  %s2522_s9 = sshll.u32 %s2518_s13, 2 }
   0xe   : > { %s3478_s19 = scalar_lea.vmem %s4919_s0, %s2524_s14  ;;  %3021 = vmatprep.mubr.msk.bf16.mxu0 %vm352_vm0, %v3473_v0  ;;  %3039 = vmatprep.mubr.msk.bf16.mxu1 %vm352_vm0, %v3473_v0  ;;  %p147_p3 = scmp.lt.s32.totalorder %s2522_s9, 11 }
   0xf   : > { %v3485_v1 = vld [vmem:[%s3478_s19 + $0x81] sm:$0xff]  ;;  %v3488_v2 = vld [vmem:[%s3478_s19 + $0x89] sm:$0xff]  ;;  %v3512_v12 = vld [vmem:[%s3478_s19 + $0x91] sm:$0xff] }
  0x10   : > { %4983 = vst [vmem:[#allocation2_spill] sm:$0xff] %v3485_v1  ;;  %v3491_v3 = vld [vmem:[%s3478_s19 + $0x181] sm:$0xff]  ;;  %v326_v4 = vpack.c.bf16 %v3488_v2, %v3485_v1  ;;  %v3496_v5 = vld [vmem:[%s3478_s19 + $0x189] sm:$0xff]  ;;  %v3518_v14 = vld [vmem:[%s3478_s19 + $0x99] sm:$0xff]  ;;  %s5135_s9 = smov (!%p147_p3, %s2522_s9), 11 }
  0x11   : > { %4984 = vst [vmem:[#allocation3_spill] sm:$0xff] %v3491_v3  ;;  %v2526_v6 = vld [vmem:[%s3478_s19 + $0x1] sm:$0xff]  ;;  %v3500_v7 = vld [vmem:[%s3478_s19 + $0x9] sm:$0xff]  ;;  %v342_v8 = vpack.c.bf16 %v3496_v5, %v3491_v3  ;;  %v3521_v15 = vld [vmem:[%s3478_s19 + $0x191] sm:$0xff]  ;;  %v327_v19 = vpack.c.bf16 %v3518_v14, %v3512_v12  ;;  %s2523_s10 = sshll.u32 %s5135_s9, 3 }
  0x12   : > { %v318_v9 = vpack.c.bf16 %v3500_v7, %v2526_v6  ;;  %v3506_v10 = vld [vmem:[%s3478_s19 + $0x101] sm:$0xff]  ;;  %v3509_v11 = vld [vmem:[%s3478_s19 + $0x109] sm:$0xff]  ;;  %3293 = vmatprep.subr.msk.bf16.mxu0 %vm352_vm0, %v326_v4  ;;  %v3524_v16 = vld [vmem:[%s3478_s19 + $0x199] sm:$0xff]  ;;  %s150_s14 = scalar_lea.vmem %s4922_s3, %s2523_s10 }
  0x13   : > { %4985 = vst [vmem:[#allocation4_spill] sm:$0xff] %v3506_v10  ;;  %v334_v13 = vpack.c.bf16 %v3509_v11, %v3506_v10  ;;  %3301 = vmatprep.subr.msk.bf16.mxu1 %vm352_vm0, %v342_v8  ;;  %v343_v20 = vpack.c.bf16 %v3524_v16, %v3521_v15  ;;  %v3535_v21 = vld [vmem:[%s3478_s19 + $0x11] sm:$0xff]  ;;  %v3538_v22 = vld [vmem:[%s3478_s19 + $0x19] sm:$0xff]  ;;  %v3550_v27 = vld [vmem:[%s3478_s19 + $0xa1] sm:$0xff] }
  0x14   : > { %v357_v18 = vsel %vm352_vm0, %v318_v9, 0  ;;  %v3541_v23 = vld [vmem:[%s3478_s19 + $0x111] sm:$0xff]  ;;  %v3547_v26 = vld [vmem:[%s3478_s19 + $0x119] sm:$0xff]  ;;  %v319_v30 = vpack.c.bf16 %v3538_v22, %v3535_v21  ;;  %v3565_v33 = vld [vmem:[%s3478_s19 + $0xa9] sm:$0xff] }
  0x15   : > { %3006 = vmatpush3.bf16.xpose.msra.mxu0 %v357_v18  ;;  %v405_v25 = vsel %vm352_vm0, %v334_v13, 0  ;;  %v335_v32 = vpack.c.bf16 %v3547_v26, %v3541_v23  ;;  %v3568_v34 = vld [vmem:[%s3478_s19 + $0x1a1] sm:$0xff]  ;;  %v3571_v35 = vld [vmem:[%s3478_s19 + $0x1a9] sm:$0xff]  ;;  %v328_v40 = vpack.c.bf16 %v3565_v33, %v3550_v27  ;;  %v3598_v47 = vld [vmem:[%s3478_s19 + $0xb1] sm:$0xff] }
  0x16   : > { %3024 = vmatpush3.bf16.xpose.msra.mxu1 %v405_v25  ;;  %3294 = vmatprep.subr.msk.bf16.mxu0 %vm352_vm0, %v327_v19  ;;  %v3574_v36 = vld [vmem:[%s3478_s19 + $0x21] sm:$0xff]  ;;  %v360_v39 = vsel %vm352_vm0, %v319_v30, 0  ;;  %v344_v43 = vpack.c.bf16 %v3571_v35, %v3568_v34  ;;  %v3590_v44 = vld [vmem:[%s3478_s19 + $0x29] sm:$0xff]  ;;  %v3604_v49 = vld [vmem:[%s3478_s19 + $0x1b1] sm:$0xff] }
  0x17   : > { %3302 = vmatprep.subr.msk.bf16.mxu1 %vm352_vm0, %v343_v20  ;;  %v3584_v41 = vld [vmem:[%s3478_s19 + $0x121] sm:$0xff]  ;;  %v408_v42 = vsel %vm352_vm0, %v335_v32, 0  ;;  %v3595_v46 = vld [vmem:[%s3478_s19 + $0x129] sm:$0xff]  ;;  %v320_v48 = vpack.c.bf16 %v3590_v44, %v3574_v36  ;;  %v3607_v50 = vld [vmem:[%s3478_s19 + $0x31] sm:$0xff] }
  0x18   : > { %v336_v52 = vpack.c.bf16 %v3595_v46, %v3584_v41  ;;  %v3615_v53 = vld [vmem:[%s3478_s19 + $0xb9] sm:$0xff]  ;;  %v3628_v59 = vld [vmem:[%s3478_s19 + $0x131] sm:$0xff]  ;;  %v3642_v6 = vld [vmem:[%s3478_s19 + $0xc1] sm:$0xff] }
  0x19   : > { %v3622_v56 = vld [vmem:[%s3478_s19 + $0x1b9] sm:$0xff]  ;;  %v363_v57 = vsel %vm352_vm0, %v320_v48, 0  ;;  %v329_v58 = vpack.c.bf16 %v3615_v53, %v3598_v47  ;;  %v3648_v9 = vld [vmem:[%s3478_s19 + $0x1c1] sm:$0xff]  ;;  %v3659_v20 = vld [vmem:[%s3478_s19 + $0xc9] sm:$0xff] }
  0x1a   : > { %v411_v60 = vsel %vm352_vm0, %v336_v52, 0  ;;  %v345_v61 = vpack.c.bf16 %v3622_v56, %v3604_v49  ;;  %v3634_v62 = vld [vmem:[%s3478_s19 + $0x39] sm:$0xff]  ;;  %v3651_v13 = vld [vmem:[%s3478_s19 + $0x41] sm:$0xff]  ;;  %v3666_v32 = vld [vmem:[%s3478_s19 + $0x1c9] sm:$0xff] }
  0x1b   : > { %v3639_v4 = vld [vmem:[%s3478_s19 + $0x139] sm:$0xff]  ;;  %v321_v8 = vpack.c.bf16 %v3634_v62, %v3607_v50  ;;  %v346_v48 = vpack.c.bf16 %v3666_v32, %v3648_v9  ;;  %v3678_v52 = vld [vmem:[%s3478_s19 + $0x49] sm:$0xff]  ;;  %v3718_v18 = vld [vmem:[%s3478_s19 + $0x151] sm:$0xff] }
  0x1c   : > { %v337_v19 = vpack.c.bf16 %v3639_v4, %v3628_v59  ;;  %v3710_v25 = vld [vmem:[%s3478_s19 + $0x1d9] sm:$0xff]  ;;  %v3734_v54 = vld [vmem:[%s3478_s19 + $0xe1] sm:$0xff]  ;;  %v3760_v31 = vld [vmem:[%s3478_s19 + $0x1e9] sm:$0xff] }
  0x1d   : > { %3008 = vmatpush3.bf16.xpose.msra.mxu0 %v360_v39  ;;  %v366_v39 = vsel %vm352_vm0, %v321_v8, 0  ;;  %v3692_v8 = vld [vmem:[%s3478_s19 + $0x1d1] sm:$0xff]  ;;  %4986 = vst [vmem:[#allocation5_spill] sm:$0xff] %v3710_v25  ;;  %v3726_v55 = vld [vmem:[%s3478_s19 + $0x59] sm:$0xff]  ;;  %v3741_v51 = vld [vmem:[%s3478_s19 + $0x1e1] sm:$0xff] }
  0x1e   : > { %3026 = vmatpush3.bf16.xpose.msra.mxu1 %v408_v42  ;;  %3295 = vmatprep.subr.msk.bf16.mxu0 %vm352_vm0, %v328_v40  ;;  %v330_v40 = vpack.c.bf16 %v3659_v20, %v3642_v6  ;;  %v3672_v42 = vld [vmem:[%s3478_s19 + $0x141] sm:$0xff]  ;;  %4989 = vst [vmem:[#allocation8_spill] sm:$0xff] %v3726_v55  ;;  %4993 = vst [vmem:[#allocation12_spill] sm:$0xff] %v3760_v31  ;;  %v3777_v38 = vpack.c.bf16 %v3760_v31, %v3741_v51  ;;  %v3780_v37 = vld [vmem:[%s3478_s19 + $0x69] sm:$0xff] }
  0x1f   : > { %3303 = vmatprep.subr.msk.bf16.mxu1 %vm352_vm0, %v344_v43  ;;  %v414_v43 = vsel %vm352_vm0, %v337_v19, 0  ;;  %v3695_v19 = vld [vmem:[%s3478_s19 + $0x51] sm:$0xff]  ;;  %v3744_v45 = vld [vmem:[%s3478_s19 + $0x61] sm:$0xff]  ;;  %4999 = vst [vmem:[#allocation18_spill] sm:$0xff] %v3780_v37  ;;  %v3785_v17 = vld [vmem:[%s3478_s19 + $0x169] sm:$0xff] }
  0x20   : > { %4991 = vst [vmem:[#allocation10_spill] sm:$0xff] %v3744_v45  ;;  %v3770_v28 = vld [vmem:[%s3478_s19 + $0x161] sm:$0xff]  ;;  %4998 = vst [vmem:[#allocation17_spill] sm:$0xff] %v3777_v38  ;;  %v3841_v31 = vld [vmem:[%s3478_s19 + $0x179] sm:$0xff] }
  0x21   : > { %4996 = vst [vmem:[#allocation15_spill] sm:$0xff] %v3770_v28  ;;  %5000 = vst [vmem:[#allocation19_spill] sm:$0xff] %v3785_v17  ;;  %v155_v10 = vld [vmem:[%s3478_s19] sm:$0xff]  ;;  %v157_v3 = vld [vmem:[%s3478_s19 + $0x10] sm:$0xff] }
  0x22   : > { %5012 = vst [vmem:[#allocation31_spill] sm:$0xff] %v3841_v31 }
  0x25   : > { %3010 = vmatpush3.bf16.xpose.msra.mxu0 %v363_v57 }
  0x26   : > { %3028 = vmatpush3.bf16.xpose.msra.mxu1 %v411_v60  ;;  %3296 = vmatprep.subr.msk.bf16.mxu0 %vm352_vm0, %v329_v58  ;;  %v3683_v58 = vld [vmem:[%s3478_s19 + $0x149] sm:$0xff]  ;;  %v3686_v60 = vld [vmem:[%s3478_s19 + $0xd1] sm:$0xff] }
  0x27   : > { %3304 = vmatprep.subr.msk.bf16.mxu1 %vm352_vm0, %v345_v61  ;;  %v322_v61 = vpack.c.bf16 %v3678_v52, %v3651_v13 }
  0x29   : > { %v369_v57 = vsel %vm352_vm0, %v322_v61, 0  ;;  %v3731_v61 = vld [vmem:[%s3478_s19 + $0x159] sm:$0xff] }
  0x2a   : > { %4990 = vst [vmem:[#allocation9_spill] sm:$0xff] %v3731_v61 }
  0x2d   : > { %3012 = vmatpush3.bf16.xpose.msra.mxu0 %v366_v39  ;;  %v338_v39 = vpack.c.bf16 %v3683_v58, %v3672_v42 }
  0x2e   : > { %3030 = vmatpush3.bf16.xpose.msra.mxu1 %v414_v43  ;;  %3297 = vmatprep.subr.msk.bf16.mxu0 %vm352_vm0, %v330_v40  ;;  %v3703_v43 = vld [vmem:[%s3478_s19 + $0xd9] sm:$0xff]  ;;  %v3723_v40 = vpack.c.bf16 %v3710_v25, %v3692_v8 }
  0x2f   : > { %3305 = vmatprep.subr.msk.bf16.mxu1 %vm352_vm0, %v346_v48  ;;  %v3715_v48 = vpack.c.bf16 %v3703_v43, %v3686_v60  ;;  %v417_v63 = vsel %vm352_vm0, %v338_v39, 0  ;;  %v323_v39 = vpack.c.bf16 %v3726_v55, %v3695_v19  ;;  %v3811_v55 = vld [vmem:[%s3478_s19 + $0xf9] sm:$0xff] }
  0x30   : > { %4988 = vst [vmem:[#allocation7_spill] sm:$0xff] %v3723_v40  ;;  %5004 = vst [vmem:[#allocation23_spill] sm:$0xff] %v3811_v55 }
  0x31   : > { %4987 = vst [vmem:[#allocation6_spill] sm:$0xff] %v3715_v48  ;;  %v3763_v30 = vsel %vm352_vm0, %v323_v39, 0  ;;  %v3800_v39 = vld [vmem:[%s3478_s19 + $0x71] sm:$0xff] }
  0x32   : > { %4994 = vst [vmem:[#allocation13_spill] sm:$0xff] %v3763_v30  ;;  %5003 = vst [vmem:[#allocation22_spill] sm:$0xff] %v3800_v39 }
  0x35   : > { %3014 = vmatpush3.bf16.xpose.msra.mxu0 %v369_v57  ;;  %v3753_v57 = vld [vmem:[%s3478_s19 + $0xe9] sm:$0xff] }
  0x36   : > { %3032 = vmatpush3.bf16.xpose.msra.mxu1 %v417_v63  ;;  %3298 = vmatprep.subr.msk.bf16.mxu0 %vm352_vm0, %v3715_v48  ;;  %v339_v63 = vpack.c.bf16 %v3731_v61, %v3718_v18  ;;  %4992 = vst [vmem:[#allocation11_spill] sm:$0xff] %v3753_v57  ;;  %v3767_v29 = vpack.c.bf16 %v3753_v57, %v3734_v54 }
  0x37   : > { %3306 = vmatprep.subr.msk.bf16.mxu1 %vm352_vm0, %v3723_v40  ;;  %v3789_v40 = vld [vmem:[%s3478_s19 + $0xf1] sm:$0xff]  ;;  %v324_v48 = vpack.c.bf16 %v3780_v37, %v3744_v45  ;;  %v3816_v45 = vld [vmem:[%s3478_s19 + $0x1f9] sm:$0xff] }
  0x38   : > { %4995 = vst [vmem:[#allocation14_spill] sm:$0xff] %v3767_v29  ;;  %v3773_v24 = vsel %vm352_vm0, %v339_v63, 0  ;;  %5001 = vst [vmem:[#allocation20_spill] sm:$0xff] %v3789_v40  ;;  %v3792_v63 = vld [vmem:[%s3478_s19 + $0x1f1] sm:$0xff]  ;;  %v3823_v61 = vpack.c.bf16 %v3811_v55, %v3789_v40  ;;  %v3836_v37 = vld [vmem:[%s3478_s19 + $0x79] sm:$0xff] }
  0x39   : > { %4997 = vst [vmem:[#allocation16_spill] sm:$0xff] %v3773_v24  ;;  %5002 = vst [vmem:[#allocation21_spill] sm:$0xff] %v3792_v63  ;;  %v3819_v25 = vsel %vm352_vm0, %v324_v48, 0  ;;  %v170_v40 = vld [vmem:[%s3478_s19 + $0x78] sm:$0xff] }
  0x3a   : > { %5005 = vst [vmem:[#allocation24_spill] sm:$0xff] %v3816_v45  ;;  %5006 = vst [vmem:[#allocation25_spill] sm:$0xff] %v3819_v25 }
  0x3b   : > { %5007 = vst [vmem:[#allocation26_spill] sm:$0xff] %v3823_v61  ;;  %5011 = vst [vmem:[#allocation30_spill] sm:$0xff] %v3836_v37 }
  0x3d   : > { %3016 = vmatpush3.bf16.xpose.msra.mxu0 %v3763_v30  ;;  %v3826_v30 = vld [vmem:[%s3478_s19 + $0x171] sm:$0xff] }
  0x3e   : > { %3034 = vmatpush3.bf16.xpose.msra.mxu1 %v3773_v24  ;;  %3299 = vmatprep.subr.msk.bf16.mxu0 %vm352_vm0, %v3767_v29  ;;  %v340_v24 = vpack.c.bf16 %v3785_v17, %v3770_v28  ;;  %5008 = vst [vmem:[#allocation27_spill] sm:$0xff] %v3826_v30  ;;  %v3833_v29 = vpack.c.bf16 %v3816_v45, %v3792_v63  ;;  %v204_v63 = vld [vmem:[%s3478_s19 + $0x188] sm:$0xff]  ;;  %v187_v17 = vld [vmem:[%s3478_s19 + $0x100] sm:$0xff]  ;;  %v202_v28 = vld [vmem:[%s3478_s19 + $0x178] sm:$0xff] }
  0x3f   : > { %3307 = vmatprep.subr.msk.bf16.mxu1 %vm352_vm0, %v3777_v38  ;;  %v341_v48 = vpack.c.bf16 %v3841_v31, %v3826_v30  ;;  %v156_v30 = vld [vmem:[%s3478_s19 + $0x8] sm:$0xff] }
  0x40   : > { %v3829_v38 = vsel %vm352_vm0, %v340_v24, 0  ;;  %5010 = vst [vmem:[#allocation29_spill] sm:$0xff] %v3833_v29  ;;  %v325_v24 = vpack.c.bf16 %v3836_v37, %v3800_v39  ;;  %v188_v37 = vld [vmem:[%s3478_s19 + $0x108] sm:$0xff] }
  0x41   : > { %5009 = vst [vmem:[#allocation28_spill] sm:$0xff] %v3829_v38  ;;  %v3865_v55 = vsel %vm352_vm0, %v341_v48, 0  ;;  %v205_v48 = vld [vmem:[%s3478_s19 + $0x190] sm:$0xff] }
  0x42   : > { %v3862_v39 = vsel %vm352_vm0, %v325_v24, 0  ;;  %5014 = vst [vmem:[#allocation33_spill] sm:$0xff] %v3865_v55  ;;  %v206_v24 = vld [vmem:[%s3478_s19 + $0x198] sm:$0xff] }
  0x43   : > { %5013 = vst [vmem:[#allocation32_spill] sm:$0xff] %v3862_v39 }
  0x45   : > { %3018 = vmatpush3.bf16.xpose.msra.mxu0 %v3819_v25  ;;  %v171_v25 = vld [vmem:[%s3478_s19 + $0x80] sm:$0xff] }
  0x46   : > { %3036 = vmatpush3.bf16.xpose.msra.mxu1 %v3829_v38  ;;  %3300 = vmatprep.subr.msk.bf16.mxu0 %vm352_vm0, %v3823_v61  ;;  %v172_v38 = vld [vmem:[%s3478_s19 + $0x88] sm:$0xff]  ;;  %v203_v61 = vld [vmem:[%s3478_s19 + $0x180] sm:$0xff] }
  0x47   : > { %3308 = vmatprep.subr.msk.bf16.mxu1 %vm352_vm0, %v3833_v29  ;;  %v227_v45 = vpack.c.bf16 %v172_v38, %v171_v25  ;;  %v243_v29 = vpack.c.bf16 %v204_v63, %v203_v61  ;;  %v219_v38 = vpack.c.bf16 %v156_v30, %v155_v10  ;;  %v235_v25 = vpack.c.bf16 %v188_v37, %v187_v17  ;;  %v173_v61 = vld [vmem:[%s3478_s19 + $0x90] sm:$0xff]  ;;  %v174_v63 = vld [vmem:[%s3478_s19 + $0x98] sm:$0xff] }
  0x48   : > { %v228_v31 = vpack.c.bf16 %v174_v63, %v173_v61  ;;  %v189_v10 = vld [vmem:[%s3478_s19 + $0x110] sm:$0xff]  ;;  %v190_v17 = vld [vmem:[%s3478_s19 + $0x118] sm:$0xff]  ;;  %v207_v61 = vld [vmem:[%s3478_s19 + $0x1a0] sm:$0xff] }
  0x49   : > { %v538_v57 = vsel %vm352_vm0, %v219_v38, 0  ;;  %v236_v30 = vpack.c.bf16 %v190_v17, %v189_v10  ;;  %v175_v38 = vld [vmem:[%s3478_s19 + $0xa0] sm:$0xff]  ;;  %v208_v63 = vld [vmem:[%s3478_s19 + $0x1a8] sm:$0xff]  ;;  %v177_v17 = vld [vmem:[%s3478_s19 + $0xb0] sm:$0xff] }
  0x4d   : > { %3020 = vmatpush3.bf16.xpose.msra.mxu0 %v3862_v39  ;;  %v586_v39 = vsel %vm352_vm0, %v235_v25, 0  ;;  %v176_v25 = vld [vmem:[%s3478_s19 + $0xa8] sm:$0xff] }
  0x4e   : > { %3038 = vmatpush3.bf16.xpose.msra.mxu1 %v3865_v55  ;;  %3309 = vmatprep.subr.msk.bf16.mxu0 %vm352_vm0, %v227_v45  ;;  %v244_v55 = vpack.c.bf16 %v206_v24, %v205_v48  ;;  %v158_v45 = vld [vmem:[%s3478_s19 + $0x18] sm:$0xff]  ;;  %v191_v48 = vld [vmem:[%s3478_s19 + $0x120] sm:$0xff]  ;;  %v192_v24 = vld [vmem:[%s3478_s19 + $0x128] sm:$0xff] }
  0x4f   : > { %3317 = vmatprep.subr.msk.bf16.mxu1 %vm352_vm0, %v243_v29  ;;  %v3892_v29 = vld [vmem:[%s4920_s1] sm:$0xf]  ;;  %v220_v37 = vpack.c.bf16 %v158_v45, %v157_v3  ;;  %v229_v3 = vpack.c.bf16 %v176_v25, %v175_v38  ;;  %v237_v10 = vpack.c.bf16 %v192_v24, %v191_v48  ;;  %v210_v38 = vld [vmem:[%s3478_s19 + $0x1b8] sm:$0xff] }
  0x50   : > { %v179_v24 = vld [vmem:[%s3478_s19 + $0xc0] sm:$0xff] }
  0x54   : > { %3022 = vmatmul.mubr.msk.bf16.vlgmr.msra.gmra.mrb[0].mxu0 %vm352_vm0, %v3473_v0 }
  0x55   : > { %3040 = vmatmul.mubr.msk.bf16.vlgmr.msra.gmra.mrb[0].mxu1 %vm352_vm0, %v3473_v0  ;;  %3042 = vmatpush3.bf16.xpose.msra.mxu0 %v538_v57  ;;  %v541_v0 = vsel %vm352_vm0, %v220_v37, 0  ;;  %v159_v57 = vld [vmem:[%s3478_s19 + $0x20] sm:$0xff]  ;;  %v178_v37 = vld [vmem:[%s3478_s19 + $0xb8] sm:$0xff] }
  0x56   : > { %3060 = vmatpush3.bf16.xpose.msra.mxu1 %v586_v39  ;;  %3310 = vmatprep.subr.msk.bf16.mxu0 %vm352_vm0, %v228_v31  ;;  %v589_v31 = vsel %vm352_vm0, %v236_v30, 0  ;;  %v160_v39 = vld [vmem:[%s3478_s19 + $0x28] sm:$0xff]  ;;  %v209_v30 = vld [vmem:[%s3478_s19 + $0x1b0] sm:$0xff] }
  0x57   : > { %3318 = vmatprep.subr.msk.bf16.mxu1 %vm352_vm0, %v244_v55  ;;  %3057 = vmatprep.mubr.msk.bf16.mxu0 %vm352_vm0, %v3892_v29  ;;  %v245_v55 = vpack.c.bf16 %v208_v63, %v207_v61  ;;  %v221_v45 = vpack.c.bf16 %v160_v39, %v159_v57  ;;  %v230_v61 = vpack.c.bf16 %v178_v37, %v177_v17  ;;  %v592_v63 = vsel %vm352_vm0, %v237_v10, 0  ;;  %v193_v57 = vld [vmem:[%s3478_s19 + $0x130] sm:$0xff]  ;;  %v211_v10 = vld [vmem:[%s3478_s19 + $0x1c0] sm:$0xff]  ;;  %v212_v17 = vld [vmem:[%s3478_s19 + $0x1c8] sm:$0xff] }
  0x58   : > { %3075 = vmatprep.mubr.msk.bf16.mxu1 %vm352_vm0, %v3892_v29 }
  0x59   : > { %v544_v25 = vsel %vm352_vm0, %v221_v45, 0  ;;  %v180_v45 = vld [vmem:[%s3478_s19 + $0xc8] sm:$0xff] }
  0x5d   : > { %3044 = vmatpush3.bf16.xpose.msra.mxu0 %v541_v0  ;;  %v246_v0 = vpack.c.bf16 %v210_v38, %v209_v30  ;;  %v231_v30 = vpack.c.bf16 %v180_v45, %v179_v24  ;;  %v214_v24 = vld [vmem:[%s3478_s19 + $0x1d8] sm:$0xff] }
  0x5e   : > { %3062 = vmatpush3.bf16.xpose.msra.mxu1 %v589_v31  ;;  %3311 = vmatprep.subr.msk.bf16.mxu0 %vm352_vm0, %v229_v3  ;;  %v161_v31 = vld [vmem:[%s3478_s19 + $0x30] sm:$0xff]  ;;  %v162_v3 = vld [vmem:[%s3478_s19 + $0x38] sm:$0xff] }
  0x5f   : > { %3319 = vmatprep.subr.msk.bf16.mxu1 %vm352_vm0, %v245_v55  ;;  %v194_v55 = vld [vmem:[%s3478_s19 + $0x138] sm:$0xff]  ;;  %v222_v39 = vpack.c.bf16 %v162_v3, %v161_v31  ;;  %v195_v31 = vld [vmem:[%s3478_s19 + $0x140] sm:$0xff] }
  0x60   : > { %v238_v48 = vpack.c.bf16 %v194_v55, %v193_v57  ;;  %v181_v55 = vld [vmem:[%s3478_s19 + $0xd0] sm:$0xff] }
  0x61   : > { %v547_v37 = vsel %vm352_vm0, %v222_v39, 0  ;;  %v182_v39 = vld [vmem:[%s3478_s19 + $0xd8] sm:$0xff] }
  0x62   : > { %v595_v38 = vsel %vm352_vm0, %v238_v48, 0  ;;  %v213_v48 = vld [vmem:[%s3478_s19 + $0x1d0] sm:$0xff] }
  0x65   : > { %3046 = vmatpush3.bf16.xpose.msra.mxu0 %v544_v25  ;;  %v247_v25 = vpack.c.bf16 %v212_v17, %v211_v10  ;;  %v232_v10 = vpack.c.bf16 %v182_v39, %v181_v55  ;;  %v216_v55 = vld [vmem:[%s3478_s19 + $0x1e8] sm:$0xff] }
  0x66   : > { %3064 = vmatpush3.bf16.xpose.msra.mxu1 %v592_v63  ;;  %3312 = vmatprep.subr.msk.bf16.mxu0 %vm352_vm0, %v230_v61  ;;  %v163_v63 = vld [vmem:[%s3478_s19 + $0x40] sm:$0xff]  ;;  %v164_v61 = vld [vmem:[%s3478_s19 + $0x48] sm:$0xff] }
  0x67   : > { %3320 = vmatprep.subr.msk.bf16.mxu1 %vm352_vm0, %v246_v0  ;;  %v196_v0 = vld [vmem:[%s3478_s19 + $0x148] sm:$0xff]  ;;  %v223_v3 = vpack.c.bf16 %v164_v61, %v163_v63  ;;  %v197_v63 = vld [vmem:[%s3478_s19 + $0x150] sm:$0xff] }
  0x68   : > { %v239_v57 = vpack.c.bf16 %v196_v0, %v195_v31  ;;  %v183_v0 = vld [vmem:[%s3478_s19 + $0xe0] sm:$0xff] }
  0x69   : > { %v550_v45 = vsel %vm352_vm0, %v223_v3, 0  ;;  %v184_v3 = vld [vmem:[%s3478_s19 + $0xe8] sm:$0xff] }
  0x6a   : > { %v598_v17 = vsel %vm352_vm0, %v239_v57, 0  ;;  %v215_v57 = vld [vmem:[%s3478_s19 + $0x1e0] sm:$0xff] }
  0x6d   : > { %3048 = vmatpush3.bf16.xpose.msra.mxu0 %v547_v37  ;;  %v248_v37 = vpack.c.bf16 %v214_v24, %v213_v48  ;;  %v233_v48 = vpack.c.bf16 %v184_v3, %v183_v0  ;;  %v218_v0 = vld [vmem:[%s3478_s19 + $0x1f8] sm:$0xff] }
  0x6e   : > { %3066 = vmatpush3.bf16.xpose.msra.mxu1 %v595_v38  ;;  %3313 = vmatprep.subr.msk.bf16.mxu0 %vm352_vm0, %v231_v30  ;;  %v165_v38 = vld [vmem:[%s3478_s19 + $0x50] sm:$0xff]  ;;  %v166_v30 = vld [vmem:[%s3478_s19 + $0x58] sm:$0xff] }
  0x6f   : > { %3321 = vmatprep.subr.msk.bf16.mxu1 %vm352_vm0, %v247_v25  ;;  %v198_v25 = vld [vmem:[%s3478_s19 + $0x158] sm:$0xff]  ;;  %v224_v61 = vpack.c.bf16 %v166_v30, %v165_v38  ;;  %v199_v38 = vld [vmem:[%s3478_s19 + $0x160] sm:$0xff] }
  0x70   : > { %v240_v31 = vpack.c.bf16 %v198_v25, %v197_v63  ;;  %v185_v25 = vld [vmem:[%s3478_s19 + $0xf0] sm:$0xff] }
  0x71   : > { %v553_v39 = vsel %vm352_vm0, %v224_v61, 0  ;;  %v186_v61 = vld [vmem:[%s3478_s19 + $0xf8] sm:$0xff] }
  0x72   : > { %v601_v24 = vsel %vm352_vm0, %v240_v31, 0  ;;  %v217_v31 = vld [vmem:[%s3478_s19 + $0x1f0] sm:$0xff] }
  0x73   : > { %v250_v1 = vpack.c.bf16 %v218_v0, %v217_v31  ;;  %v5053_v31 = vld [vmem:[#allocation27_spill] sm:$0xff] }
  0x74   : > { %v5054_v0 = vld [vmem:[#allocation19_spill] sm:$0xff] }
  0x75   : > { %3050 = vmatpush3.bf16.xpose.msra.mxu0 %v550_v45  ;;  %v249_v45 = vpack.c.bf16 %v216_v55, %v215_v57  ;;  %v234_v57 = vpack.c.bf16 %v186_v61, %v185_v25 }
  0x76   : > { %3068 = vmatpush3.bf16.xpose.msra.mxu1 %v598_v17  ;;  %3314 = vmatprep.subr.msk.bf16.mxu0 %vm352_vm0, %v232_v10  ;;  %v167_v17 = vld [vmem:[%s3478_s19 + $0x60] sm:$0xff]  ;;  %v168_v10 = vld [vmem:[%s3478_s19 + $0x68] sm:$0xff] }
  0x77   : > { %3322 = vmatprep.subr.msk.bf16.mxu1 %vm352_vm0, %v248_v37  ;;  %v200_v37 = vld [vmem:[%s3478_s19 + $0x168] sm:$0xff]  ;;  %v225_v30 = vpack.c.bf16 %v168_v10, %v167_v17 }
  0x78   : > { %v241_v63 = vpack.c.bf16 %v200_v37, %v199_v38  ;;  %v5015_v38 = vpack.c.bf16 %v3512_v12, %v3488_v2  ;;  %v5016_v37 = vpack.c.bf16 %v3521_v15, %v3496_v5  ;;  %v3997_v2 = vld [vmem:[%s4920_s1 + $0x8] sm:$0xf]  ;;  %v5019_v5 = vpack.c.bf16 %v3550_v27, %v3518_v14 }
  0x79   : > { %v556_v3 = vsel %vm352_vm0, %v225_v30, 0  ;;  %v5022_v14 = vpack.c.bf16 %v3584_v41, %v3547_v26  ;;  %v5026_v26 = vpack.c.bf16 %v3628_v59, %v3595_v46  ;;  %v5030_v41 = vpack.c.bf16 %v3672_v42, %v3639_v4 }
  0x7a   : > { %v604_v55 = vsel %vm352_vm0, %v241_v63, 0  ;;  %v5031_v46 = vpack.c.bf16 %v3686_v60, %v3659_v20  ;;  %v5035_v59 = vpack.c.bf16 %v3734_v54, %v3703_v43  ;;  %v5041_v20 = vld [vmem:[#allocation15_spill] sm:$0xff]  ;;  %v5047_v60 = vld [vmem:[#allocation21_spill] sm:$0xff]  ;;  %v5051_v63 = vld [vmem:[#allocation18_spill] sm:$0xff] }
  0x7b   : > { %v870_v15 = vsel %vm352_vm0, %v5022_v14, 0  ;;  %v873_v27 = vsel %vm352_vm0, %v5026_v26, 0  ;;  %v4094_v43 = vld [vmem:[%s3478_s19 + $0x201] sm:$0xff] }
  0x7d   : > { %3052 = vmatpush3.bf16.xpose.msra.mxu0 %v553_v39  ;;  %v169_v39 = vld [vmem:[%s3478_s19 + $0x70] sm:$0xff] }
  0x7e   : > { %3070 = vmatpush3.bf16.xpose.msra.mxu1 %v601_v24  ;;  %3315 = vmatprep.subr.msk.bf16.mxu0 %vm352_vm0, %v233_v48  ;;  %v201_v24 = vld [vmem:[%s3478_s19 + $0x170] sm:$0xff]  ;;  %v226_v48 = vpack.c.bf16 %v170_v40, %v169_v39  ;;  %v5018_v40 = vpack.c.bf16 %v3541_v23, %v3509_v11  ;;  %v5021_v11 = vpack.c.bf16 %v3574_v36, %v3538_v22 }
  0x7f   : > { %3323 = vmatprep.subr.msk.bf16.mxu1 %vm352_vm0, %v249_v45  ;;  %v242_v45 = vpack.c.bf16 %v202_v28, %v201_v24  ;;  %v5025_v22 = vpack.c.bf16 %v3607_v50, %v3590_v44  ;;  %v876_v44 = vsel %vm352_vm0, %v5030_v41, 0  ;;  %v5057_v24 = vld [vmem:[#allocation4_spill] sm:$0xff] }
  0x80   : > { %v559_v17 = vsel %vm352_vm0, %v226_v48, 0  ;;  %v867_v30 = vsel %vm352_vm0, %v5018_v40, 0  ;;  %v822_v12 = vsel %vm352_vm0, %v5021_v11, 0  ;;  %v5058_v48 = vld [vmem:[#allocation23_spill] sm:$0xff] }
  0x81   : > { %v607_v10 = vsel %vm352_vm0, %v242_v45, 0  ;;  %v825_v23 = vsel %vm352_vm0, %v5025_v22, 0  ;;  %v5059_v45 = vpack.c.bf16 %v5057_v24, %v5058_v48  ;;  %v5064_v11 = vld [vmem:[#allocation31_spill] sm:$0xff] }
  0x82   : > { %v4138_v22 = vld [vmem:[%s3478_s19 + $0x10a] sm:$0xff]  ;;  %v4244_v24 = vld [vmem:[%s3478_s19 + $0x142] sm:$0xff] }
  0x83   : > { %5078 = vst [vmem:[#allocation19_spill] sm:$0xff] %v4244_v24 }
  0x85   : > { %3054 = vmatpush3.bf16.xpose.msra.mxu0 %v556_v3  ;;  %v5055_v3 = vpack.c.bf16 %v5053_v31, %v5054_v0 }
  0x86   : > { %3072 = vmatpush3.bf16.xpose.msra.mxu1 %v604_v55  ;;  %3316 = vmatprep.subr.msk.bf16.mxu0 %vm352_vm0, %v234_v57  ;;  %v5056_v55 = vld [vmem:[#allocation24_spill] sm:$0xff] }
  0x87   : > { %3324 = vmatprep.subr.msk.bf16.mxu1 %vm352_vm0, %v250_v1  ;;  %v5017_v1 = vpack.c.bf16 %v3535_v21, %v3500_v7  ;;  %v5020_v7 = vpack.c.bf16 %v3568_v34, %v3524_v16  ;;  %v5023_v16 = vpack.c.bf16 %v3598_v47, %v3565_v33  ;;  %v5024_v21 = vpack.c.bf16 %v3604_v49, %v3571_v35 }
  0x88   : > { %v5027_v33 = vpack.c.bf16 %v3642_v6, %v3615_v53  ;;  %v5028_v34 = vpack.c.bf16 %v3648_v9, %v3622_v56  ;;  %v5029_v35 = vpack.c.bf16 %v3651_v13, %v3634_v62  ;;  %v5032_v47 = vpack.c.bf16 %v3692_v8, %v3666_v32  ;;  %v5036_v62 = vld [vmem:[#allocation5_spill] sm:$0xff]  ;;  %v5038_v6 = vld [vmem:[#allocation10_spill] sm:$0xff]  ;;  %v5039_v9 = vld [vmem:[#allocation8_spill] sm:$0xff] }
  0x89   : > { %v819_v28 = vsel %vm352_vm0, %v5017_v1, 0  ;;  %v5033_v49 = vpack.c.bf16 %v3695_v19, %v3678_v52  ;;  %v5034_v53 = vpack.c.bf16 %v3718_v18, %v3683_v58  ;;  %v5037_v4 = vpack.c.bf16 %v3741_v51, %v5036_v62  ;;  %v5042_v32 = vld [vmem:[#allocation9_spill] sm:$0xff]  ;;  %v5044_v52 = vld [vmem:[#allocation20_spill] sm:$0xff]  ;;  %v5045_v51 = vld [vmem:[#allocation11_spill] sm:$0xff] }
  0x8a   : > { %v828_v36 = vsel %vm352_vm0, %v5029_v35, 0  ;;  %v5040_v13 = vpack.c.bf16 %v5038_v6, %v5039_v9  ;;  %v5043_v42 = vpack.c.bf16 %v5041_v20, %v5042_v32  ;;  %v5046_v58 = vpack.c.bf16 %v5044_v52, %v5045_v51  ;;  %v5048_v8 = vld [vmem:[#allocation12_spill] sm:$0xff]  ;;  %v5060_v1 = vld [vmem:[#allocation2_spill] sm:$0xff] }
  0x8b   : > { %v831_v50 = vsel %vm352_vm0, %v5033_v49, 0  ;;  %v879_v56 = vsel %vm352_vm0, %v5034_v53, 0  ;;  %v5049_v19 = vpack.c.bf16 %v5047_v60, %v5048_v8  ;;  %v885_v57 = vsel %vm352_vm0, %v5055_v3, 0  ;;  %v4154_v35 = vld [vmem:[%s3478_s19 + $0x19a] sm:$0xff]  ;;  %v4187_v6 = vld [vmem:[%s3478_s19 + $0xaa] sm:$0xff]  ;;  %v4190_v9 = vld [vmem:[%s3478_s19 + $0xb2] sm:$0xff] }
  0x8c   : > { %v834_v18 = vsel %vm352_vm0, %v5040_v13, 0  ;;  %v882_v54 = vsel %vm352_vm0, %v5043_v42, 0  ;;  %v812_v39 = vpack.c.bf16 %v4094_v43, %v5056_v55  ;;  %v2666_v49 = vld [vmem:[%s3478_s19 + $0x1a] sm:$0xff]  ;;  %5068 = vst [vmem:[#allocation8_spill] sm:$0xff] %v4187_v6  ;;  %5069 = vst [vmem:[#allocation15_spill] sm:$0xff] %v4190_v9  ;;  %v4198_v13 = vld [vmem:[%s3478_s19 + $0x1b2] sm:$0xff]  ;;  %v1076_v20 = vpack.c.bf16 %v4190_v9, %v4187_v6 }
  0x8d   : > { %3056 = vmatpush3.bf16.xpose.msra.mxu0 %v559_v17  ;;  %v4112_v17 = vld [vmem:[%s3478_s19 + $0x8a] sm:$0xff]  ;;  %v4170_v53 = vld [vmem:[%s3478_s19 + $0x11a] sm:$0xff]  ;;  %5071 = vst [vmem:[#allocation20_spill] sm:$0xff] %v4198_v13  ;;  %v2669_v52 = vld [vmem:[%s3478_s19 + $0x32] sm:$0xff] }
  0x8e   : > { %3074 = vmatpush3.bf16.xpose.msra.mxu1 %v607_v10  ;;  %3325 = vmatprep.subr.msk.bf16.mxu0 %vm352_vm0, %v5015_v38  ;;  %v4115_v10 = vld [vmem:[%s3478_s19 + $0x92] sm:$0xff]  ;;  %v4118_v38 = vld [vmem:[%s3478_s19 + $0x18a] sm:$0xff]  ;;  %v2671_v55 = vld [vmem:[%s3478_s19 + $0x42] sm:$0xff] }
  0x8f   : > { %3333 = vmatprep.subr.msk.bf16.mxu1 %vm352_vm0, %v5016_v37  ;;  %v4121_v37 = vld [vmem:[%s3478_s19 + $0x192] sm:$0xff]  ;;  %v4211_v51 = vld [vmem:[%s3478_s19 + $0x12a] sm:$0xff] }
  0x90   : > { %v2747_v6 = vld [vmem:[%s3478_s19 + $0xc9] sm:$0xff] }
  0x94   : > { %3058 = vmatmul.mubr.msk.bf16.vlgmr.msra.gmra.mrb[4].mxu0 %vm352_vm0, %v3892_v29 }
  0x95   : > { %3076 = vmatmul.mubr.msk.bf16.vlgmr.msra.gmra.mrb[4].mxu1 %vm352_vm0, %v3892_v29  ;;  %3078 = vmatpush3.bf16.xpose.msra.mxu0 %v819_v28  ;;  %v5050_v29 = vld [vmem:[#allocation22_spill] sm:$0xff] }
  0x96   : > { %3096 = vmatpush3.bf16.xpose.msra.mxu1 %v867_v30  ;;  %3326 = vmatprep.subr.msk.bf16.mxu0 %vm352_vm0, %v5019_v5  ;;  %v5052_v25 = vpack.c.bf16 %v5050_v29, %v5051_v63  ;;  %v5061_v28 = vld [vmem:[#allocation30_spill] sm:$0xff]  ;;  %v1074_v5 = vpack.c.bf16 %v4115_v10, %v4112_v17 }
  0x97   : > { %3334 = vmatprep.subr.msk.bf16.mxu1 %vm352_vm0, %v5020_v7  ;;  %3093 = vmatprep.mubr.msk.bf16.mxu0 %vm352_vm0, %v3997_v2  ;;  %v5062_v40 = vpack.c.bf16 %v5060_v1, %v5061_v28  ;;  %v5063_v7 = vld [vmem:[#allocation3_spill] sm:$0xff]  ;;  %v4227_v63 = vld [vmem:[%s3478_s19 + $0x1ba] sm:$0xff]  ;;  %v4254_v28 = vld [vmem:[%s3478_s19 + $0xd2] sm:$0xff] }
  0x98   : > { %3111 = vmatprep.mubr.msk.bf16.mxu1 %vm352_vm0, %v3997_v2  ;;  %v837_v61 = vsel %vm352_vm0, %v5052_v25, 0  ;;  %v4224_v29 = vld [vmem:[%s3478_s19 + $0xc2] sm:$0xff]  ;;  %5075 = vst [vmem:[#allocation22_spill] sm:$0xff] %v4227_v63  ;;  %v4251_v1 = vld [vmem:[%s3478_s19 + $0xca] sm:$0xff] }
  0x99   : > { %v840_v30 = vsel %vm352_vm0, %v5062_v40, 0  ;;  %5074 = vst [vmem:[#allocation12_spill] sm:$0xff] %v4224_v29  ;;  %v4230_v25 = vld [vmem:[%s3478_s19 + $0x1c2] sm:$0xff]  ;;  %5079 = vst [vmem:[#allocation24_spill] sm:$0xff] %v4251_v1  ;;  %v4257_v40 = vld [vmem:[%s3478_s19 + $0x1ca] sm:$0xff] }
  0x9a   : > { %5076 = vst [vmem:[#allocation18_spill] sm:$0xff] %v4230_v25  ;;  %v1093_v3 = vpack.c.bf16 %v4230_v25, %v4227_v63  ;;  %5080 = vst [vmem:[#allocation4_spill] sm:$0xff] %v4257_v40 }
  0x9d   : > { %3080 = vmatpush3.bf16.xpose.msra.mxu0 %v822_v12  ;;  %v5065_v12 = vpack.c.bf16 %v5063_v7, %v5064_v11  ;;  %v1078_v7 = vpack.c.bf16 %v4254_v28, %v4251_v1  ;;  %v2738_v1 = vld [vmem:[%s3478_s19 + $0x81] sm:$0xff] }
  0x9e   : > { %3098 = vmatpush3.bf16.xpose.msra.mxu1 %v870_v15  ;;  %3327 = vmatprep.subr.msk.bf16.mxu0 %vm352_vm0, %v5023_v16  ;;  %v1090_v15 = vpack.c.bf16 %v4121_v37, %v4118_v38  ;;  %v2664_v16 = vld [vmem:[%s3478_s19 + $0xa] sm:$0xff] }
  0x9f   : > { %3335 = vmatprep.subr.msk.bf16.mxu1 %vm352_vm0, %v5024_v21  ;;  %v888_v14 = vsel %vm352_vm0, %v5065_v12, 0  ;;  %v2665_v21 = vld [vmem:[%s3478_s19 + $0x12] sm:$0xff] }
  0xa0   : > { %v1066_v26 = vpack.c.bf16 %v2665_v21, %v2664_v16  ;;  %v4273_v16 = vld [vmem:[%s3478_s19 + $0x14a] sm:$0xff]  ;;  %v4276_v21 = vld [vmem:[%s3478_s19 + $0x152] sm:$0xff] }
  0xa1   : > { %5081 = vst [vmem:[#allocation23_spill] sm:$0xff] %v4273_v16 }
  0xa2   : > { %v1104_v41 = vsel %vm352_vm0, %v1066_v26, 0 }
  0xa5   : > { %3082 = vmatpush3.bf16.xpose.msra.mxu0 %v825_v23  ;;  %v4141_v23 = vld [vmem:[%s3478_s19 + $0x112] sm:$0xff] }
  0xa6   : > { %3100 = vmatpush3.bf16.xpose.msra.mxu1 %v873_v27  ;;  %3328 = vmatprep.subr.msk.bf16.mxu0 %vm352_vm0, %v5027_v33  ;;  %v1082_v27 = vpack.c.bf16 %v4141_v23, %v4138_v22  ;;  %v4148_v33 = vld [vmem:[%s3478_s19 + $0x9a] sm:$0xff] }
  0xa7   : > { %3336 = vmatprep.subr.msk.bf16.mxu1 %vm352_vm0, %v5028_v34  ;;  %v4151_v34 = vld [vmem:[%s3478_s19 + $0xa2] sm:$0xff] }
  0xa8   : > { %5066 = vst [vmem:[#allocation5_spill] sm:$0xff] %v4151_v34 }
  0xad   : > { %3084 = vmatpush3.bf16.xpose.msra.mxu0 %v828_v36  ;;  %v4157_v36 = vld [vmem:[%s3478_s19 + $0x1a2] sm:$0xff] }
  0xae   : > { %3102 = vmatpush3.bf16.xpose.msra.mxu1 %v876_v44  ;;  %3329 = vmatprep.subr.msk.bf16.mxu0 %vm352_vm0, %v5031_v46  ;;  %5067 = vst [vmem:[#allocation10_spill] sm:$0xff] %v4157_v36  ;;  %v1075_v44 = vpack.c.bf16 %v4151_v34, %v4148_v33  ;;  %v1152_v46 = vsel %vm352_vm0, %v1082_v27, 0  ;;  %v1086_v27 = vpack.c.bf16 %v4276_v21, %v4273_v16  ;;  %v5104_v16 = vld [vmem:[#allocation32_spill] sm:$0xff] }
  0xaf   : > { %3337 = vmatprep.subr.msk.bf16.mxu1 %vm352_vm0, %v5032_v47  ;;  %v1091_v47 = vpack.c.bf16 %v4157_v36, %v4154_v35  ;;  %v2773_v36 = vld [vmem:[%s3478_s19 + $0x199] sm:$0xff]  ;;  %v2779_v34 = vld [vmem:[%s3478_s19 + $0x1c9] sm:$0xff] }
  0xb5   : > { %3086 = vmatpush3.bf16.xpose.msra.mxu0 %v831_v50  ;;  %v2667_v50 = vld [vmem:[%s3478_s19 + $0x22] sm:$0xff] }
  0xb6   : > { %3104 = vmatpush3.bf16.xpose.msra.mxu1 %v879_v56  ;;  %3330 = vmatprep.subr.msk.bf16.mxu0 %vm352_vm0, %v5035_v59  ;;  %v4173_v56 = vld [vmem:[%s3478_s19 + $0x122] sm:$0xff]  ;;  %v4178_v59 = vld [vmem:[%s4920_s1 + $0xc] sm:$0xf]  ;;  %v1067_v62 = vpack.c.bf16 %v2667_v50, %v2666_v49 }
  0xb7   : > { %3338 = vmatprep.subr.msk.bf16.mxu1 %vm352_vm0, %v5037_v4  ;;  %v1083_v4 = vpack.c.bf16 %v4173_v56, %v4170_v53 }
  0xb9   : > { %v1155_v32 = vsel %vm352_vm0, %v1083_v4, 0 }
  0xbd   : > { %3088 = vmatpush3.bf16.xpose.msra.mxu0 %v834_v18  ;;  %v1107_v18 = vsel %vm352_vm0, %v1067_v62, 0  ;;  %v1164_v62 = vsel %vm352_vm0, %v1086_v27, 0  ;;  %v4380_v27 = vld [vmem:[%s3478_s19 + $0x1fa] sm:$0xff] }
  0xbe   : > { %3106 = vmatpush3.bf16.xpose.msra.mxu1 %v882_v54  ;;  %3331 = vmatprep.subr.msk.bf16.mxu0 %vm352_vm0, %v5046_v58  ;;  %v2668_v54 = vld [vmem:[%s3478_s19 + $0x2a] sm:$0xff]  ;;  %v4214_v58 = vld [vmem:[%s3478_s19 + $0x132] sm:$0xff] }
  0xbf   : > { %3339 = vmatprep.subr.msk.bf16.mxu1 %vm352_vm0, %v5049_v19  ;;  %5072 = vst [vmem:[#allocation11_spill] sm:$0xff] %v4214_v58  ;;  %v1068_v60 = vpack.c.bf16 %v2669_v52, %v2668_v54  ;;  %v1084_v8 = vpack.c.bf16 %v4214_v58, %v4211_v51  ;;  %v4221_v19 = vld [vmem:[%s3478_s19 + $0xba] sm:$0xff] }
  0xc0   : > { %5073 = vst [vmem:[#allocation21_spill] sm:$0xff] %v4221_v19  ;;  %v1077_v31 = vpack.c.bf16 %v4224_v29, %v4221_v19  ;;  %v2770_v29 = vld [vmem:[%s3478_s19 + $0x181] sm:$0xff]  ;;  %v2741_v58 = vld [vmem:[%s3478_s19 + $0x99] sm:$0xff] }
  0xc1   : > { %v1158_v0 = vsel %vm352_vm0, %v1084_v8, 0  ;;  %v4329_v8 = vld [vmem:[%s3478_s19 + $0xf2] sm:$0xff] }
  0xc5   : > { %3090 = vmatpush3.bf16.xpose.msra.mxu0 %v837_v61  ;;  %v1110_v61 = vsel %vm352_vm0, %v1068_v60, 0  ;;  %v4326_v60 = vld [vmem:[%s3478_s19 + $0xea] sm:$0xff] }
  0xc6   : > { %3108 = vmatpush3.bf16.xpose.msra.mxu1 %v885_v57  ;;  %3332 = vmatprep.subr.msk.bf16.mxu0 %vm352_vm0, %v5059_v45  ;;  %v2670_v57 = vld [vmem:[%s3478_s19 + $0x3a] sm:$0xff] }
  0xc7   : > { %3340 = vmatprep.subr.msk.bf16.mxu1 %vm352_vm0, %v812_v39  ;;  %v4241_v39 = vld [vmem:[%s3478_s19 + $0x13a] sm:$0xff]  ;;  %v1069_v48 = vpack.c.bf16 %v2671_v55, %v2670_v57 }
  0xc8   : > { %5077 = vst [vmem:[#allocation27_spill] sm:$0xff] %v4241_v39  ;;  %v1085_v45 = vpack.c.bf16 %v4244_v24, %v4241_v39  ;;  %v2740_v39 = vld [vmem:[%s3478_s19 + $0x91] sm:$0xff] }
  0xca   : > { %v1161_v11 = vsel %vm352_vm0, %v1085_v45, 0  ;;  %v4355_v45 = vld [vmem:[%s3478_s19 + $0x72] sm:$0xff] }
  0xcd   : > { %3092 = vmatpush3.bf16.xpose.msra.mxu0 %v840_v30  ;;  %v4260_v30 = vld [vmem:[%s3478_s19 + $0x1d2] sm:$0xff] }
  0xce   : > { %3110 = vmatpush3.bf16.xpose.msra.mxu1 %v888_v14  ;;  %3341 = vmatprep.subr.msk.bf16.mxu0 %vm352_vm0, %v1074_v5  ;;  %v1113_v5 = vsel %vm352_vm0, %v1069_v48, 0  ;;  %v1094_v12 = vpack.c.bf16 %v4260_v30, %v4257_v40  ;;  %v2672_v14 = vld [vmem:[%s3478_s19 + $0x4a] sm:$0xff] }
  0xcf   : > { %3349 = vmatprep.subr.msk.bf16.mxu1 %vm352_vm0, %v1090_v15  ;;  %v4270_v15 = vld [vmem:[%s3478_s19 + $0x52] sm:$0xff]  ;;  %v4352_v48 = vld [vmem:[%s3478_s19 + $0x6a] sm:$0xff] }
  0xd0   : > { %v1070_v26 = vpack.c.bf16 %v4270_v15, %v2672_v14  ;;  %v4374_v14 = vld [vmem:[%s3478_s19 + $0xfa] sm:$0xff] }
  0xd2   : > { %v1116_v49 = vsel %vm352_vm0, %v1070_v26, 0  ;;  %v4377_v26 = vld [vmem:[%s3478_s19 + $0x102] sm:$0xff] }
  0xd4   : > { %3094 = vmatmul.mubr.msk.bf16.vlgmr.msra.gmra.mrb[8].mxu0 %vm352_vm0, %v3997_v2 }
  0xd5   : > { %3112 = vmatmul.mubr.msk.bf16.vlgmr.msra.gmra.mrb[8].mxu1 %vm352_vm0, %v3997_v2  ;;  %3114 = vmatpush3.bf16.xpose.msra.mxu0 %v1104_v41  ;;  %v4195_v2 = vld [vmem:[%s3478_s19 + $0x1aa] sm:$0xff]  ;;  %v4284_v41 = vld [vmem:[%s3478_s19 + $0xda] sm:$0xff] }
  0xd6   : > { %3132 = vmatpush3.bf16.xpose.msra.mxu1 %v1152_v46  ;;  %3342 = vmatprep.subr.msk.bf16.mxu0 %vm352_vm0, %v1075_v44  ;;  %5070 = vst [vmem:[#allocation9_spill] sm:$0xff] %v4195_v2  ;;  %v1092_v42 = vpack.c.bf16 %v4198_v13, %v4195_v2  ;;  %v4287_v44 = vld [vmem:[%s3478_s19 + $0xe2] sm:$0xff]  ;;  %v4290_v46 = vld [vmem:[%s3478_s19 + $0x1da] sm:$0xff]  ;;  %v2772_v2 = vld [vmem:[%s3478_s19 + $0x191] sm:$0xff] }
  0xd7   : > { %3350 = vmatprep.subr.msk.bf16.mxu1 %vm352_vm0, %v1091_v47  ;;  %3129 = vmatprep.mubr.msk.bf16.mxu0 %vm352_vm0, %v4178_v59  ;;  %v4293_v47 = vld [vmem:[%s3478_s19 + $0x1e2] sm:$0xff]  ;;  %v4298_v50 = vpack.c.bf16 %v4287_v44, %v4284_v41 }
  0xd8   : > { %3147 = vmatprep.mubr.msk.bf16.mxu1 %vm352_vm0, %v4178_v59  ;;  %v4303_v4 = vpack.c.bf16 %v4293_v47, %v4290_v46 }
  0xd9   : > { %5082 = vst [vmem:[#allocation2_spill] sm:$0xff] %v4298_v50 }
  0xda   : > { %5083 = vst [vmem:[#allocation30_spill] sm:$0xff] %v4303_v4 }
  0xdd   : > { %3116 = vmatpush3.bf16.xpose.msra.mxu0 %v1107_v18  ;;  %v4306_v18 = vld [vmem:[%s3478_s19 + $0x5a] sm:$0xff] }
  0xde   : > { %3134 = vmatpush3.bf16.xpose.msra.mxu1 %v1155_v32  ;;  %3343 = vmatprep.subr.msk.bf16.mxu0 %vm352_vm0, %v1076_v20  ;;  %v4309_v20 = vld [vmem:[%s3478_s19 + $0x62] sm:$0xff]  ;;  %v4312_v32 = vld [vmem:[%s3478_s19 + $0x15a] sm:$0xff] }
  0xdf   : > { %3351 = vmatprep.subr.msk.bf16.mxu1 %vm352_vm0, %v1092_v42  ;;  %v4315_v42 = vld [vmem:[%s3478_s19 + $0x162] sm:$0xff]  ;;  %v1071_v54 = vpack.c.bf16 %v4309_v20, %v4306_v18 }
  0xe0   : > { %v1087_v52 = vpack.c.bf16 %v4315_v42, %v4312_v32 }
  0xe2   : > { %v4345_v57 = vsel %vm352_vm0, %v1087_v52, 0 }
  0xe3   : > { %5086 = vst [vmem:[#allocation34_spill] sm:$0xff] %v4345_v57 }
  0xe5   : > { %3118 = vmatpush3.bf16.xpose.msra.mxu0 %v1110_v61  ;;  %v4332_v61 = vld [vmem:[%s3478_s19 + $0x1ea] sm:$0xff] }
  0xe6   : > { %3136 = vmatpush3.bf16.xpose.msra.mxu1 %v1158_v0  ;;  %3344 = vmatprep.subr.msk.bf16.mxu0 %vm352_vm0, %v1077_v31  ;;  %v4335_v31 = vld [vmem:[%s3478_s19 + $0x1f2] sm:$0xff]  ;;  %v4338_v0 = vsel %vm352_vm0, %v1071_v54, 0  ;;  %v4390_v54 = vpack.c.bf16 %v4377_v26, %v4374_v14 }
  0xe7   : > { %3352 = vmatprep.subr.msk.bf16.mxu1 %vm352_vm0, %v1093_v3  ;;  %5084 = vst [vmem:[#allocation3_spill] sm:$0xff] %v4338_v0  ;;  %v4342_v3 = vpack.c.bf16 %v4329_v8, %v4326_v60  ;;  %v4349_v55 = vpack.c.bf16 %v4335_v31, %v4332_v61 }
  0xe8   : > { %5089 = vst [vmem:[#allocation37_spill] sm:$0xff] %v4390_v54 }
  0xe9   : > { %5085 = vst [vmem:[#allocation31_spill] sm:$0xff] %v4342_v3  ;;  %5087 = vst [vmem:[#allocation35_spill] sm:$0xff] %v4349_v55 }
  0xed   : > { %3120 = vmatpush3.bf16.xpose.msra.mxu0 %v1113_v5  ;;  %v4358_v5 = vld [vmem:[%s3478_s19 + $0x16a] sm:$0xff] }
  0xee   : > { %3138 = vmatpush3.bf16.xpose.msra.mxu1 %v1161_v11  ;;  %3345 = vmatprep.subr.msk.bf16.mxu0 %vm352_vm0, %v1078_v7  ;;  %v4361_v7 = vld [vmem:[%s3478_s19 + $0x172] sm:$0xff]  ;;  %v1072_v11 = vpack.c.bf16 %v4355_v45, %v4352_v48 }
  0xef   : > { %3353 = vmatprep.subr.msk.bf16.mxu1 %vm352_vm0, %v1094_v12  ;;  %v1088_v12 = vpack.c.bf16 %v4361_v7, %v4358_v5 }
  0xf1   : > { %v4393_v52 = vsel %vm352_vm0, %v1088_v12, 0 }
  0xf2   : > { %5090 = vst [vmem:[#allocation38_spill] sm:$0xff] %v4393_v52 }
  0xf5   : > { %3122 = vmatpush3.bf16.xpose.msra.mxu0 %v1116_v49  ;;  %v4383_v49 = vld [vmem:[%s3478_s19 + $0x202] sm:$0xff] }
  0xf6   : > { %3140 = vmatpush3.bf16.xpose.msra.mxu1 %v1164_v62  ;;  %3346 = vmatprep.subr.msk.bf16.mxu0 %vm352_vm0, %v4298_v50  ;;  %v4386_v62 = vsel %vm352_vm0, %v1072_v11, 0 }
  0xf7   : > { %3354 = vmatprep.subr.msk.bf16.mxu1 %vm352_vm0, %v4303_v4  ;;  %5088 = vst [vmem:[#allocation36_spill] sm:$0xff] %v4386_v62  ;;  %v4409_v4 = vld [vmem:[%s3478_s19 + $0x182] sm:$0xff] }
  0xfd   : > { %3124 = vmatpush3.bf16.xpose.msra.mxu0 %v4338_v0  ;;  %v4406_v0 = vld [vmem:[%s3478_s19 + $0x17a] sm:$0xff] }
  0xfe   : > { %3142 = vmatpush3.bf16.xpose.msra.mxu1 %v4345_v57  ;;  %3347 = vmatprep.subr.msk.bf16.mxu0 %vm352_vm0, %v4342_v3  ;;  %v4400_v3 = vld [vmem:[%s3478_s19 + $0x7a] sm:$0xff]  ;;  %v4403_v57 = vld [vmem:[%s3478_s19 + $0x82] sm:$0xff]  ;;  %v1089_v12 = vpack.c.bf16 %v4409_v4, %v4406_v0 }
  0xff   : > { %3355 = vmatprep.subr.msk.bf16.mxu1 %vm352_vm0, %v4349_v55  ;;  %v4397_v55 = vpack.c.bf16 %v4383_v49, %v4380_v27  ;;  %v1073_v11 = vpack.c.bf16 %v4403_v57, %v4400_v3 }
 0x100   : > { %v4425_v40 = vsel %vm352_vm0, %v1089_v12, 0  ;;  %v5096_v12 = vld [vmem:[#allocation13_spill] sm:$0xff] }
 0x101   : > { %5091 = vst [vmem:[#allocation39_spill] sm:$0xff] %v4397_v55  ;;  %v4422_v50 = vsel %vm352_vm0, %v1073_v11, 0  ;;  %5093 = vst [vmem:[#allocation41_spill] sm:$0xff] %v4425_v40  ;;  %v4438_v11 = vld [vmem:[%s4920_s1 + $0x10] sm:$0xf] }
 0x102   : > { %5092 = vst [vmem:[#allocation40_spill] sm:$0xff] %v4422_v50 }
 0x105   : > { %3126 = vmatpush3.bf16.xpose.msra.mxu0 %v4386_v62 }
 0x106   : > { %3144 = vmatpush3.bf16.xpose.msra.mxu1 %v4393_v52  ;;  %3348 = vmatprep.subr.msk.bf16.mxu0 %vm352_vm0, %v4390_v54  ;;  %v5094_v54 = vld [vmem:[#allocation6_spill] sm:$0xff]  ;;  %v5095_v52 = vld [vmem:[#allocation7_spill] sm:$0xff] }
 0x107   : > { %3356 = vmatprep.subr.msk.bf16.mxu1 %vm352_vm0, %v4397_v55  ;;  %v2755_v55 = vld [vmem:[%s3478_s19 + $0x109] sm:$0xff] }
 0x10d   : > { %3128 = vmatpush3.bf16.xpose.msra.mxu0 %v4422_v50  ;;  %v5102_v50 = vld [vmem:[#allocation26_spill] sm:$0xff] }
 0x10e   : > { %3146 = vmatpush3.bf16.xpose.msra.mxu1 %v4425_v40  ;;  %3357 = vmatprep.subr.msk.bf16.mxu0 %vm352_vm0, %v5094_v54  ;;  %v5097_v54 = vld [vmem:[#allocation16_spill] sm:$0xff]  ;;  %v5098_v40 = vld [vmem:[#allocation14_spill] sm:$0xff] }
 0x10f   : > { %3365 = vmatprep.subr.msk.bf16.mxu1 %vm352_vm0, %v5095_v52  ;;  %v5099_v52 = vld [vmem:[#allocation17_spill] sm:$0xff] }
 0x114   : > { %3130 = vmatmul.mubr.msk.bf16.vlgmr.msra.gmra.mrb[12].mxu0 %vm352_vm0, %v4178_v59 }
 0x115   : > { %3148 = vmatmul.mubr.msk.bf16.vlgmr.msra.gmra.mrb[12].mxu1 %vm352_vm0, %v4178_v59  ;;  %3150 = vmatpush3.bf16.xpose.msra.mxu0 %v5096_v12  ;;  %v5100_v59 = vld [vmem:[#allocation25_spill] sm:$0xff]  ;;  %v5101_v12 = vld [vmem:[#allocation28_spill] sm:$0xff] }
 0x116   : > { %3168 = vmatpush3.bf16.xpose.msra.mxu1 %v5097_v54  ;;  %3358 = vmatprep.subr.msk.bf16.mxu0 %vm352_vm0, %v5098_v40  ;;  %v5103_v54 = vld [vmem:[#allocation29_spill] sm:$0xff]  ;;  %v2754_v40 = vld [vmem:[%s3478_s19 + $0x101] sm:$0xff] }
 0x117   : > { %3366 = vmatprep.subr.msk.bf16.mxu1 %vm352_vm0, %v5099_v52  ;;  %3165 = vmatprep.mubr.msk.bf16.mxu0 %vm352_vm0, %v4438_v11  ;;  %v2787_v52 = vld [vmem:[%s3478_s19 + $0x209] sm:$0xff]  ;;  %v1362_v62 = vpack.c.bf16 %v2755_v55, %v2754_v40  ;;  %v2757_v40 = vld [vmem:[%s3478_s19 + $0x119] sm:$0xff] }
 0x118   : > { %3183 = vmatprep.mubr.msk.bf16.mxu1 %vm352_vm0, %v4438_v11  ;;  %v1378_v25 = vpack.c.bf16 %v2787_v52, %v4094_v43  ;;  %v2756_v43 = vld [vmem:[%s3478_s19 + $0x111] sm:$0xff] }
 0x11d   : > { %3152 = vmatpush3.bf16.xpose.msra.mxu0 %v5100_v59  ;;  %v2739_v59 = vld [vmem:[%s3478_s19 + $0x89] sm:$0xff] }
 0x11e   : > { %3170 = vmatpush3.bf16.xpose.msra.mxu1 %v5101_v12  ;;  %3359 = vmatprep.subr.msk.bf16.mxu0 %vm352_vm0, %v5102_v50  ;;  %v2771_v12 = vld [vmem:[%s3478_s19 + $0x189] sm:$0xff]  ;;  %v5105_v50 = vld [vmem:[#allocation33_spill] sm:$0xff] }
 0x11f   : > { %3367 = vmatprep.subr.msk.bf16.mxu1 %vm352_vm0, %v5103_v54  ;;  %v1354_v54 = vpack.c.bf16 %v2739_v59, %v2738_v1  ;;  %v1370_v55 = vpack.c.bf16 %v2771_v12, %v2770_v29 }
 0x121   : > { %v1398_v29 = vsel %vm352_vm0, %v1354_v54, 0  ;;  %v1446_v19 = vsel %vm352_vm0, %v1370_v55, 0  ;;  %v1355_v54 = vpack.c.bf16 %v2741_v58, %v2740_v39  ;;  %v2790_v55 = vld [vmem:[%s3478_s19 + $0x221] sm:$0xff]  ;;  %v2760_v39 = vld [vmem:[%s3478_s19 + $0x131] sm:$0xff] }
 0x122   : > { %v2774_v58 = vld [vmem:[%s3478_s19 + $0x1a1] sm:$0xff] }
 0x125   : > { %3154 = vmatpush3.bf16.xpose.msra.mxu0 %v5104_v16  ;;  %v2788_v16 = vld [vmem:[%s3478_s19 + $0x211] sm:$0xff] }
 0x126   : > { %3172 = vmatpush3.bf16.xpose.msra.mxu1 %v5105_v50  ;;  %3360 = vmatprep.subr.msk.bf16.mxu0 %vm352_vm0, %v1362_v62  ;;  %v2789_v50 = vld [vmem:[%s3478_s19 + $0x219] sm:$0xff] }
 0x127   : > { %v4469_v24 = vpop.f32.mrb[0].mxu0  ;;  %3368 = vmatprep.subr.msk.bf16.mxu1 %vm352_vm0, %v1378_v25  ;;  %v1363_v25 = vpack.c.bf16 %v2757_v40, %v2756_v43  ;;  %v1379_v9 = vpack.c.bf16 %v2789_v50, %v2788_v16  ;;  %v1371_v43 = vpack.c.bf16 %v2773_v36, %v2772_v2  ;;  %v2758_v40 = vld [vmem:[%s3478_s19 + $0x121] sm:$0xff]  ;;  %v2791_v16 = vld [vmem:[%s3478_s19 + $0x229] sm:$0xff]  ;;  %v1401_v50 = vsel %vm352_vm0, %v1355_v54, 0  ;;  %v2792_v54 = vld [vmem:[%s3478_s19 + $0x231] sm:$0xff] }
 0x128   : > { %v4474_v52 = vpop.f32.mrb[0].mxu1  ;;  %v4476_v63 = vpop.f32.mrb[1].mxu0 }
 0x129   : > { %v4480_v13 = vpop.f32.mrb[1].mxu1  ;;  %v490_v1 = vpop.f32.mrb[2].mxu0 }
 0x12a   : > { %v531_v62 = vpop.f32.mrb[2].mxu1  ;;  %v491_v59 = vpop.f32.mrb[3].mxu0  ;;  %v2759_v1 = vld [vmem:[%s3478_s19 + $0x129] sm:$0xff] }
 0x12b   : > { %v532_v12 = vpop.f32.mrb[3].mxu1  ;;  %v1364_v62 = vpack.c.bf16 %v2759_v1, %v2758_v40  ;;  %v1380_v59 = vpack.c.bf16 %v2791_v16, %v2790_v55 }
 0x12c   : > { %v2761_v12 = vld [vmem:[%s3478_s19 + $0x139] sm:$0xff] }
 0x12d   : > { %3156 = vmatpush3.bf16.xpose.msra.mxu0 %v1398_v29  ;;  %v2742_v29 = vld [vmem:[%s3478_s19 + $0xa1] sm:$0xff]  ;;  %v1365_v1 = vpack.c.bf16 %v2761_v12, %v2760_v39 }
 0x12e   : > { %3174 = vmatpush3.bf16.xpose.msra.mxu1 %v1446_v19  ;;  %3361 = vmatprep.subr.msk.bf16.mxu0 %vm352_vm0, %v1363_v25  ;;  %v1449_v19 = vsel %vm352_vm0, %v1371_v43, 0  ;;  %v2743_v25 = vld [vmem:[%s3478_s19 + $0xa9] sm:$0xff]  ;;  %v2793_v43 = vld [vmem:[%s3478_s19 + $0x239] sm:$0xff] }
 0x12f   : > { %3369 = vmatprep.subr.msk.bf16.mxu1 %vm352_vm0, %v1379_v9  ;;  %v2775_v9 = vld [vmem:[%s3478_s19 + $0x1a9] sm:$0xff]  ;;  %v1356_v36 = vpack.c.bf16 %v2743_v25, %v2742_v29  ;;  %v1381_v16 = vpack.c.bf16 %v2793_v43, %v2792_v54 }
 0x130   : > { %v1372_v2 = vpack.c.bf16 %v2775_v9, %v2774_v58  ;;  %v2762_v58 = vld [vmem:[%s3478_s19 + $0x141] sm:$0xff]  ;;  %v2763_v9 = vld [vmem:[%s3478_s19 + $0x149] sm:$0xff] }
 0x131   : > { %v1404_v40 = vsel %vm352_vm0, %v1356_v36, 0  ;;  %v2794_v36 = vld [vmem:[%s3478_s19 + $0x241] sm:$0xff]  ;;  %v1366_v12 = vpack.c.bf16 %v2763_v9, %v2762_v58  ;;  %v4624_v9 = vld [vmem:[%s3478_s19 + $0x22a] sm:$0xff] }
 0x132   : > { %v1452_v55 = vsel %vm352_vm0, %v1372_v2, 0  ;;  %v2795_v2 = vld [vmem:[%s3478_s19 + $0x249] sm:$0xff] }
 0x133   : > { %v1382_v43 = vpack.c.bf16 %v2795_v2, %v2794_v36  ;;  %v1649_v2 = vpack.c.bf16 %v4211_v51, %v4173_v56  ;;  %v4639_v56 = vld [vmem:[%s3478_s19 + $0x232] sm:$0xff]  ;;  %v4642_v51 = vld [vmem:[%s3478_s19 + $0x23a] sm:$0xff] }
 0x135   : > { %3158 = vmatpush3.bf16.xpose.msra.mxu0 %v1401_v50  ;;  %v2744_v50 = vld [vmem:[%s3478_s19 + $0xb1] sm:$0xff] }
 0x136   : > { %3176 = vmatpush3.bf16.xpose.msra.mxu1 %v1449_v19  ;;  %3362 = vmatprep.subr.msk.bf16.mxu0 %vm352_vm0, %v1364_v62  ;;  %v2745_v62 = vld [vmem:[%s3478_s19 + $0xb9] sm:$0xff]  ;;  %v2776_v19 = vld [vmem:[%s3478_s19 + $0x1b1] sm:$0xff] }
 0x137   : > { %3370 = vmatprep.subr.msk.bf16.mxu1 %vm352_vm0, %v1380_v59  ;;  %v2777_v59 = vld [vmem:[%s3478_s19 + $0x1b9] sm:$0xff]  ;;  %v1357_v29 = vpack.c.bf16 %v2745_v62, %v2744_v50  ;;  %v1644_v62 = vpack.c.bf16 %v4284_v41, %v4254_v28  ;;  %v1645_v28 = vpack.c.bf16 %v4326_v60, %v4287_v44  ;;  %v1653_v44 = vpack.c.bf16 %v4358_v5, %v4315_v42  ;;  %v4576_v60 = vld [vmem:[%s3478_s19 + $0x20a] sm:$0xff] }
 0x138   : > { %v1373_v25 = vpack.c.bf16 %v2777_v59, %v2776_v19  ;;  %v1660_v59 = vpack.c.bf16 %v4290_v46, %v4260_v30  ;;  %v1661_v30 = vpack.c.bf16 %v4332_v61, %v4293_v47  ;;  %v1646_v47 = vpack.c.bf16 %v4374_v14, %v4329_v8  ;;  %v4594_v14 = vld [vmem:[%s3478_s19 + $0x212] sm:$0xff] }
 0x139   : > { %v1407_v39 = vsel %vm352_vm0, %v1357_v29, 0  ;;  %v1654_v42 = vpack.c.bf16 %v4406_v0, %v4361_v7  ;;  %v1647_v61 = vpack.c.bf16 %v4138_v22, %v4377_v26  ;;  %v1639_v0 = vpack.c.bf16 %v4112_v17, %v4403_v57  ;;  %v4597_v26 = vld [vmem:[%s3478_s19 + $0x21a] sm:$0xff] }
 0x13a   : > { %v1455_v54 = vsel %vm352_vm0, %v1373_v25, 0  ;;  %v1648_v25 = vpack.c.bf16 %v4170_v53, %v4141_v23  ;;  %v1656_v23 = vpack.c.bf16 %v4154_v35, %v4121_v37  ;;  %v4621_v53 = vld [vmem:[%s3478_s19 + $0x222] sm:$0xff]  ;;  %v5107_v37 = vld [vmem:[#allocation8_spill] sm:$0xff] }
 0x13d   : > { %3160 = vmatpush3.bf16.xpose.msra.mxu0 %v1404_v40  ;;  %v2746_v40 = vld [vmem:[%s3478_s19 + $0xc1] sm:$0xff] }
 0x13e   : > { %3178 = vmatpush3.bf16.xpose.msra.mxu1 %v1452_v55  ;;  %3363 = vmatprep.subr.msk.bf16.mxu0 %vm352_vm0, %v1365_v1  ;;  %v2778_v55 = vld [vmem:[%s3478_s19 + $0x1c1] sm:$0xff]  ;;  %v1358_v1 = vpack.c.bf16 %v2747_v6, %v2746_v40  ;;  %v1636_v6 = vpack.c.bf16 %v4306_v18, %v4270_v15  ;;  %v4549_v15 = vld [vmem:[%s4920_s1 + $0x14] sm:$0xf]  ;;  %v1725_v18 = vsel %vm352_vm0, %v1653_v44, 0 }
 0x13f   : > { %3371 = vmatprep.subr.msk.bf16.mxu1 %vm352_vm0, %v1381_v16  ;;  %v1374_v16 = vpack.c.bf16 %v2779_v34, %v2778_v55  ;;  %v1652_v34 = vpack.c.bf16 %v4312_v32, %v4276_v21  ;;  %v1637_v21 = vpack.c.bf16 %v4352_v48, %v4309_v20  ;;  %v1662_v20 = vpack.c.bf16 %v4380_v27, %v4335_v31  ;;  %v5110_v55 = vld [vmem:[#allocation11_spill] sm:$0xff] }
 0x140   : > { %v1410_v50 = vsel %vm352_vm0, %v1358_v1, 0  ;;  %v1674_v29 = vsel %vm352_vm0, %v1636_v6, 0  ;;  %v1638_v32 = vpack.c.bf16 %v4400_v3, %v4355_v45  ;;  %v1728_v31 = vsel %vm352_vm0, %v1654_v42, 0  ;;  %v5111_v1 = vld [vmem:[#allocation27_spill] sm:$0xff]  ;;  %v5119_v42 = vld [vmem:[#allocation24_spill] sm:$0xff] }
 0x141   : > { %v1458_v19 = vsel %vm352_vm0, %v1374_v16, 0  ;;  %v1722_v41 = vsel %vm352_vm0, %v1652_v34, 0  ;;  %v1677_v46 = vsel %vm352_vm0, %v1637_v21, 0  ;;  %v1663_v48 = vpack.c.bf16 %v4576_v60, %v4383_v49  ;;  %v5114_v34 = vld [vmem:[#allocation20_spill] sm:$0xff]  ;;  %v5116_v44 = vld [vmem:[#allocation19_spill] sm:$0xff] }
 0x142   : > { %v1680_v8 = vsel %vm352_vm0, %v1638_v32, 0  ;;  %v1655_v45 = vpack.c.bf16 %v4118_v38, %v4409_v4  ;;  %v1650_v16 = vpack.c.bf16 %v5111_v1, %v5110_v55  ;;  %v5118_v32 = vld [vmem:[#allocation12_spill] sm:$0xff] }
 0x145   : > { %3162 = vmatpush3.bf16.xpose.msra.mxu0 %v1407_v39  ;;  %v1734_v39 = vsel %vm352_vm0, %v1656_v23, 0  ;;  %v1948_v23 = vpack.c.bf16 %v4594_v14, %v4576_v60 }
 0x146   : > { %3180 = vmatpush3.bf16.xpose.msra.mxu1 %v1455_v54  ;;  %3364 = vmatprep.subr.msk.bf16.mxu0 %vm352_vm0, %v1366_v12  ;;  %v5108_v12 = vld [vmem:[#allocation10_spill] sm:$0xff]  ;;  %v5109_v54 = vld [vmem:[#allocation9_spill] sm:$0xff] }
 0x147   : > { %3372 = vmatprep.subr.msk.bf16.mxu1 %vm352_vm0, %v1382_v43  ;;  %v1657_v43 = vpack.c.bf16 %v5109_v54, %v5108_v12 }
 0x14d   : > { %3164 = vmatpush3.bf16.xpose.msra.mxu0 %v1410_v50  ;;  %v1737_v50 = vsel %vm352_vm0, %v1657_v43, 0  ;;  %v2892_v43 = vld [vmem:[%s3478_s19 + $0x11a] sm:$0xff] }
 0x14e   : > { %3182 = vmatpush3.bf16.xpose.msra.mxu1 %v1458_v19  ;;  %3373 = vmatprep.subr.msk.bf16.mxu0 %vm352_vm0, %v1644_v62  ;;  %v1666_v62 = vpack.c.bf16 %v4642_v51, %v4639_v56  ;;  %v5112_v19 = vld [vmem:[#allocation15_spill] sm:$0xff] }
 0x14f   : > { %3381 = vmatprep.subr.msk.bf16.mxu1 %vm352_vm0, %v1660_v59  ;;  %v5113_v59 = vld [vmem:[#allocation21_spill] sm:$0xff] }
 0x150   : > { %v1642_v6 = vpack.c.bf16 %v5113_v59, %v5112_v19 }
 0x152   : > { %v1692_v21 = vsel %vm352_vm0, %v1642_v6, 0 }
 0x154   : > { %3166 = vmatmul.mubr.msk.bf16.vlgmr.msra.gmra.mrb[16].mxu0 %vm352_vm0, %v4438_v11 }
 0x155   : > { %3184 = vmatmul.mubr.msk.bf16.vlgmr.msra.gmra.mrb[16].mxu1 %vm352_vm0, %v4438_v11  ;;  %3186 = vmatpush3.bf16.xpose.msra.mxu0 %v1674_v29  ;;  %v1683_v11 = vsel %vm352_vm0, %v1639_v0, 0  ;;  %v5115_v29 = vld [vmem:[#allocation22_spill] sm:$0xff] }
 0x156   : > { %3204 = vmatpush3.bf16.xpose.msra.mxu1 %v1722_v41  ;;  %3374 = vmatprep.subr.msk.bf16.mxu0 %vm352_vm0, %v1645_v28  ;;  %v1658_v28 = vpack.c.bf16 %v5115_v29, %v5114_v34  ;;  %v4657_v41 = vld [vmem:[%s3478_s19 + $0x242] sm:$0xff] }
 0x157   : > { %3382 = vmatprep.subr.msk.bf16.mxu1 %vm352_vm0, %v1661_v30  ;;  %3201 = vmatprep.mubr.msk.bf16.mxu0 %vm352_vm0, %v4549_v15  ;;  %v4660_v30 = vld [vmem:[%s3478_s19 + $0x24a] sm:$0xff] }
 0x158   : > { %3219 = vmatprep.mubr.msk.bf16.mxu1 %vm352_vm0, %v4549_v15 }
 0x15d   : > { %3188 = vmatpush3.bf16.xpose.msra.mxu0 %v1677_v46  ;;  %v5117_v46 = vld [vmem:[#allocation23_spill] sm:$0xff] }
 0x15e   : > { %3206 = vmatpush3.bf16.xpose.msra.mxu1 %v1725_v18  ;;  %3375 = vmatprep.subr.msk.bf16.mxu0 %vm352_vm0, %v1646_v47  ;;  %v1651_v47 = vpack.c.bf16 %v5117_v46, %v5116_v44  ;;  %v1740_v18 = vsel %vm352_vm0, %v1658_v28, 0  ;;  %v2908_v44 = vld [vmem:[%s3478_s19 + $0x19a] sm:$0xff] }
 0x15f   : > { %3383 = vmatprep.subr.msk.bf16.mxu1 %vm352_vm0, %v1662_v20  ;;  %v1667_v20 = vpack.c.bf16 %v4660_v30, %v4657_v41 }
 0x165   : > { %3190 = vmatpush3.bf16.xpose.msra.mxu0 %v1680_v8  ;;  %v1643_v8 = vpack.c.bf16 %v5119_v42, %v5118_v32  ;;  %v1950_v42 = vpack.c.bf16 %v4639_v56, %v4624_v9 }
 0x166   : > { %3208 = vmatpush3.bf16.xpose.msra.mxu1 %v1728_v31  ;;  %3376 = vmatprep.subr.msk.bf16.mxu0 %vm352_vm0, %v1647_v61  ;;  %v5120_v61 = vld [vmem:[#allocation18_spill] sm:$0xff]  ;;  %v5121_v31 = vld [vmem:[#allocation4_spill] sm:$0xff] }
 0x167   : > { %v667_v3 = vpop.f32.mrb[4].mxu0  ;;  %3384 = vmatprep.subr.msk.bf16.mxu1 %vm352_vm0, %v1663_v48  ;;  %v1659_v48 = vpack.c.bf16 %v5121_v31, %v5120_v61  ;;  %v1695_v0 = vsel %vm352_vm0, %v1643_v8, 0  ;;  %v2878_v8 = vld [vmem:[%s3478_s19 + $0xaa] sm:$0xff]  ;;  %v2879_v61 = vld [vmem:[%s3478_s19 + $0xb2] sm:$0xff] }
 0x168   : > { %v4591_v22 = vadd.f32 %v667_v3, %v4469_v24  ;;  %v708_v5 = vpop.f32.mrb[4].mxu1  ;;  %v669_v7 = vpop.f32.mrb[5].mxu0  ;;  %v2910_v31 = vld [vmem:[%s3478_s19 + $0x1aa] sm:$0xff] }
 0x169   : > { %v4600_v27 = vadd.f32 %v708_v5, %v4474_v52  ;;  %v4603_v17 = vadd.f32 %v669_v7, %v4476_v63  ;;  %v710_v57 = vpop.f32.mrb[5].mxu1  ;;  %v671_v49 = vpop.f32.mrb[6].mxu0  ;;  %v1731_v52 = vsel %vm352_vm0, %v1655_v45, 0  ;;  %v1664_v63 = vpack.c.bf16 %v4597_v26, %v4594_v14  ;;  %v5122_v45 = vld [vmem:[#allocation2_spill] sm:$0xff]  ;;  %v4685_v7 = vld [vmem:[%s4920_s1 + $0x18] sm:$0xf] }
 0x16a   : > { %v4606_v38 = vadd.f32 %v710_v57, %v4480_v13  ;;  %v712_v24 = vpop.f32.mrb[6].mxu1  ;;  %v672_v4 = vpop.f32.mrb[7].mxu0  ;;  %v1640_v13 = vpack.c.bf16 %v4148_v33, %v4115_v10  ;;  %v1665_v10 = vpack.c.bf16 %v4624_v9, %v4621_v53  ;;  %v5106_v33 = vld [vmem:[#allocation5_spill] sm:$0xff]  ;;  %v1743_v3 = vsel %vm352_vm0, %v1659_v48, 0  ;;  %v5123_v5 = vld [vmem:[#allocation30_spill] sm:$0xff]  ;;  %v5124_v57 = vld [vmem:[#allocation3_spill] sm:$0xff] }
 0x16b   : > { %v713_v58 = vpop.f32.mrb[7].mxu1  ;;  %v1641_v35 = vpack.c.bf16 %v5107_v37, %v5106_v33  ;;  %v5125_v49 = vld [vmem:[#allocation34_spill] sm:$0xff]  ;;  %v5126_v24 = vld [vmem:[#allocation31_spill] sm:$0xff]  ;;  %v5132_v33 = vld [vmem:[#allocation40_spill] sm:$0xff] }
 0x16c   : > { %v1686_v36 = vsel %vm352_vm0, %v1640_v13, 0  ;;  %v5127_v4 = vld [vmem:[#allocation35_spill] sm:$0xff]  ;;  %v5133_v37 = vld [vmem:[#allocation41_spill] sm:$0xff] }
 0x16d   : > { %3192 = vmatpush3.bf16.xpose.msra.mxu0 %v1683_v11  ;;  %v1689_v40 = vsel %vm352_vm0, %v1641_v35, 0  ;;  %v5129_v11 = vld [vmem:[#allocation38_spill] sm:$0xff]  ;;  %v5131_v58 = vld [vmem:[#allocation39_spill] sm:$0xff]  ;;  %v2911_v48 = vld [vmem:[%s3478_s19 + $0x1b2] sm:$0xff] }
 0x16e   : > { %3210 = vmatpush3.bf16.xpose.msra.mxu1 %v1731_v52  ;;  %3377 = vmatprep.subr.msk.bf16.mxu0 %vm352_vm0, %v1648_v25  ;;  %v5130_v25 = vld [vmem:[#allocation37_spill] sm:$0xff]  ;;  %v2890_v52 = vld [vmem:[%s3478_s19 + $0x10a] sm:$0xff] }
 0x16f   : > { %3385 = vmatprep.subr.msk.bf16.mxu1 %vm352_vm0, %v1664_v63  ;;  %v2891_v63 = vld [vmem:[%s3478_s19 + $0x112] sm:$0xff] }
 0x170   : > { %v1932_v13 = vpack.c.bf16 %v2891_v63, %v2890_v52  ;;  %v2898_v52 = vld [vmem:[%s3478_s19 + $0x14a] sm:$0xff]  ;;  %v2899_v63 = vld [vmem:[%s3478_s19 + $0x152] sm:$0xff] }
 0x175   : > { %3194 = vmatpush3.bf16.xpose.msra.mxu0 %v1686_v36  ;;  %v2874_v36 = vld [vmem:[%s3478_s19 + $0x8a] sm:$0xff] }
 0x176   : > { %3212 = vmatpush3.bf16.xpose.msra.mxu1 %v1734_v39  ;;  %3378 = vmatprep.subr.msk.bf16.mxu0 %vm352_vm0, %v1649_v2  ;;  %v2875_v2 = vld [vmem:[%s3478_s19 + $0x92] sm:$0xff]  ;;  %v2906_v39 = vld [vmem:[%s3478_s19 + $0x18a] sm:$0xff] }
 0x177   : > { %3386 = vmatprep.subr.msk.bf16.mxu1 %vm352_vm0, %v1665_v10  ;;  %v2907_v10 = vld [vmem:[%s3478_s19 + $0x192] sm:$0xff]  ;;  %v1924_v35 = vpack.c.bf16 %v2875_v2, %v2874_v36  ;;  %v2882_v2 = vld [vmem:[%s3478_s19 + $0xca] sm:$0xff] }
 0x178   : > { %v1940_v54 = vpack.c.bf16 %v2907_v10, %v2906_v39  ;;  %v2883_v39 = vld [vmem:[%s3478_s19 + $0xd2] sm:$0xff]  ;;  %v2914_v10 = vld [vmem:[%s3478_s19 + $0x1ca] sm:$0xff] }
 0x17a   : > { %v2016_v28 = vsel %vm352_vm0, %v1940_v54, 0  ;;  %v2953_v54 = vld [vmem:[%s3478_s19 + $0xe3] sm:$0xff] }
 0x17d   : > { %3196 = vmatpush3.bf16.xpose.msra.mxu0 %v1689_v40  ;;  %v2893_v40 = vld [vmem:[%s3478_s19 + $0x122] sm:$0xff] }
 0x17e   : > { %3214 = vmatpush3.bf16.xpose.msra.mxu1 %v1737_v50  ;;  %3379 = vmatprep.subr.msk.bf16.mxu0 %vm352_vm0, %v1650_v16  ;;  %v1933_v34 = vpack.c.bf16 %v2893_v40, %v2892_v43  ;;  %v2984_v43 = vld [vmem:[%s3478_s19 + $0x1db] sm:$0xff] }
 0x17f   : > { %3387 = vmatprep.subr.msk.bf16.mxu1 %vm352_vm0, %v1666_v62 }
 0x185   : > { %3198 = vmatpush3.bf16.xpose.msra.mxu0 %v1692_v21  ;;  %v2877_v21 = vld [vmem:[%s3478_s19 + $0xa2] sm:$0xff] }
 0x186   : > { %3216 = vmatpush3.bf16.xpose.msra.mxu1 %v1740_v18  ;;  %3380 = vmatprep.subr.msk.bf16.mxu0 %vm352_vm0, %v1651_v47  ;;  %v2894_v18 = vld [vmem:[%s3478_s19 + $0x12a] sm:$0xff] }
 0x187   : > { %3388 = vmatprep.subr.msk.bf16.mxu1 %vm352_vm0, %v1667_v20  ;;  %v2895_v20 = vld [vmem:[%s3478_s19 + $0x132] sm:$0xff] }
 0x18d   : > { %3200 = vmatpush3.bf16.xpose.msra.mxu0 %v1695_v0  ;;  %v1926_v0 = vpack.c.bf16 %v2879_v61, %v2878_v8  ;;  %v2956_v61 = vld [vmem:[%s3478_s19 + $0xfb] sm:$0xff] }
 0x18e   : > { %3218 = vmatpush3.bf16.xpose.msra.mxu1 %v1743_v3  ;;  %3389 = vmatprep.subr.msk.bf16.mxu0 %vm352_vm0, %v5122_v45  ;;  %v1942_v3 = vpack.c.bf16 %v2911_v48, %v2910_v31  ;;  %v2896_v45 = vld [vmem:[%s3478_s19 + $0x13a] sm:$0xff]  ;;  %v2957_v31 = vld [vmem:[%s3478_s19 + $0x103] sm:$0xff] }
 0x18f   : > { %3397 = vmatprep.subr.msk.bf16.mxu1 %vm352_vm0, %v5123_v5  ;;  %v2897_v5 = vld [vmem:[%s3478_s19 + $0x142] sm:$0xff]  ;;  %v1974_v9 = vsel %vm352_vm0, %v1926_v0, 0 }
 0x190   : > { %v1935_v56 = vpack.c.bf16 %v2897_v5, %v2896_v45  ;;  %v2988_v48 = vld [vmem:[%s3478_s19 + $0x1fb] sm:$0xff]  ;;  %v2989_v0 = vld [vmem:[%s3478_s19 + $0x203] sm:$0xff] }
 0x191   : > { %v2232_v5 = vpack.c.bf16 %v2989_v0, %v2988_v48  ;;  %v2947_v48 = vld [vmem:[%s3478_s19 + $0xb3] sm:$0xff]  ;;  %v2978_v0 = vld [vmem:[%s3478_s19 + $0x1ab] sm:$0xff] }
 0x194   : > { %3202 = vmatmul.mubr.msk.bf16.vlgmr.msra.gmra.mrb[20].mxu0 %vm352_vm0, %v4549_v15 }
 0x195   : > { %3220 = vmatmul.mubr.msk.bf16.vlgmr.msra.gmra.mrb[20].mxu1 %vm352_vm0, %v4549_v15  ;;  %3222 = vmatpush3.bf16.xpose.msra.mxu0 %v5124_v57  ;;  %v5128_v15 = vld [vmem:[#allocation36_spill] sm:$0xff]  ;;  %v2022_v57 = vsel %vm352_vm0, %v1942_v3, 0  ;;  %v2216_v3 = vpack.c.bf16 %v2957_v31, %v2956_v61 }
 0x196   : > { %3240 = vmatpush3.bf16.xpose.msra.mxu1 %v5125_v49  ;;  %3390 = vmatprep.subr.msk.bf16.mxu0 %vm352_vm0, %v5126_v24  ;;  %v1951_v49 = vpack.c.bf16 %v4657_v41, %v4642_v51  ;;  %v2880_v24 = vld [vmem:[%s3478_s19 + $0xba] sm:$0xff]  ;;  %v2931_v51 = vld [vmem:[%s3478_s19 + $0x252] sm:$0xff] }
 0x197   : > { %3398 = vmatprep.subr.msk.bf16.mxu1 %vm352_vm0, %v5127_v4  ;;  %3237 = vmatprep.mubr.msk.bf16.mxu0 %vm352_vm0, %v4685_v7  ;;  %v2881_v4 = vld [vmem:[%s3478_s19 + $0xc2] sm:$0xff]  ;;  %v1952_v36 = vpack.c.bf16 %v2931_v51, %v4660_v30  ;;  %v2946_v31 = vld [vmem:[%s3478_s19 + $0xab] sm:$0xff] }
 0x198   : > { %3255 = vmatprep.mubr.msk.bf16.mxu1 %vm352_vm0, %v4685_v7  ;;  %v2985_v30 = vld [vmem:[%s3478_s19 + $0x1e3] sm:$0xff] }
 0x19d   : > { %3224 = vmatpush3.bf16.xpose.msra.mxu0 %v5128_v15  ;;  %v2912_v15 = vld [vmem:[%s3478_s19 + $0x1ba] sm:$0xff] }
 0x19e   : > { %3242 = vmatpush3.bf16.xpose.msra.mxu1 %v5129_v11  ;;  %3391 = vmatprep.subr.msk.bf16.mxu0 %vm352_vm0, %v5130_v25  ;;  %v2913_v11 = vld [vmem:[%s3478_s19 + $0x1c2] sm:$0xff]  ;;  %v1927_v25 = vpack.c.bf16 %v2881_v4, %v2880_v24 }
 0x19f   : > { %3399 = vmatprep.subr.msk.bf16.mxu1 %vm352_vm0, %v5131_v58  ;;  %v1943_v58 = vpack.c.bf16 %v2913_v11, %v2912_v15  ;;  %v2958_v15 = vld [vmem:[%s3478_s19 + $0x10b] sm:$0xff]  ;;  %v2959_v11 = vld [vmem:[%s3478_s19 + $0x113] sm:$0xff] }
 0x1a0   : > { %v1977_v41 = vsel %vm352_vm0, %v1927_v25, 0  ;;  %v2990_v25 = vld [vmem:[%s3478_s19 + $0x20b] sm:$0xff] }
 0x1a5   : > { %3226 = vmatpush3.bf16.xpose.msra.mxu0 %v5132_v33  ;;  %v2915_v33 = vld [vmem:[%s3478_s19 + $0x1d2] sm:$0xff] }
 0x1a6   : > { %3244 = vmatpush3.bf16.xpose.msra.mxu1 %v5133_v37  ;;  %3392 = vmatprep.subr.msk.bf16.mxu0 %vm352_vm0, %v1932_v13  ;;  %v1936_v13 = vpack.c.bf16 %v2899_v63, %v2898_v52  ;;  %v1928_v37 = vpack.c.bf16 %v2883_v39, %v2882_v2  ;;  %v2217_v63 = vpack.c.bf16 %v2959_v11, %v2958_v15  ;;  %v2975_v2 = vld [vmem:[%s3478_s19 + $0x193] sm:$0xff]  ;;  %v2948_v11 = vld [vmem:[%s3478_s19 + $0xbb] sm:$0xff] }
 0x1a7   : > { %v948_v12 = vpop.f32.mrb[8].mxu0  ;;  %3400 = vmatprep.subr.msk.bf16.mxu1 %vm352_vm0, %v1948_v23  ;;  %v2025_v23 = vsel %vm352_vm0, %v1943_v58, 0  ;;  %v2991_v58 = vld [vmem:[%s3478_s19 + $0x213] sm:$0xff] }
 0x1a8   : > { %v4720_v60 = vadd.f32 %v948_v12, %v4591_v22  ;;  %v989_v14 = vpop.f32.mrb[8].mxu1  ;;  %v950_v55 = vpop.f32.mrb[9].mxu0  ;;  %v1968_v22 = vsel %vm352_vm0, %v1924_v35, 0  ;;  %v1944_v35 = vpack.c.bf16 %v2915_v33, %v2914_v10  ;;  %v2952_v12 = vld [vmem:[%s3478_s19 + $0xdb] sm:$0xff]  ;;  %v1980_v40 = vsel %vm352_vm0, %v1928_v37, 0 }
 0x1a9   : > { %v4723_v1 = vadd.f32 %v989_v14, %v4600_v27  ;;  %v4726_v16 = vadd.f32 %v950_v55, %v4603_v17  ;;  %v991_v50 = vpop.f32.mrb[9].mxu1  ;;  %v952_v62 = vpop.f32.mrb[10].mxu0  ;;  %v1949_v27 = vpack.c.bf16 %v4621_v53, %v4597_v26  ;;  %v2876_v17 = vld [vmem:[%s3478_s19 + $0x9a] sm:$0xff]  ;;  %v1934_v53 = vpack.c.bf16 %v2895_v20, %v2894_v18  ;;  %v2938_v18 = vld [vmem:[%s3478_s19 + $0x6b] sm:$0xff] }
 0x1aa   : > { %v4729_v19 = vadd.f32 %v991_v50, %v4606_v38  ;;  %v993_v59 = vpop.f32.mrb[10].mxu1  ;;  %v953_v6 = vpop.f32.mrb[11].mxu0  ;;  %v2909_v38 = vld [vmem:[%s3478_s19 + $0x1a2] sm:$0xff]  ;;  %v1925_v46 = vpack.c.bf16 %v2877_v21, %v2876_v17  ;;  %v2214_v14 = vpack.c.bf16 %v2953_v54, %v2952_v12  ;;  %v2028_v55 = vsel %vm352_vm0, %v1944_v35, 0  ;;  %v2986_v17 = vld [vmem:[%s3478_s19 + $0x1eb] sm:$0xff]  ;;  %v2987_v21 = vld [vmem:[%s3478_s19 + $0x1f3] sm:$0xff] }
 0x1ab   : > { %v994_v29 = vpop.f32.mrb[11].mxu1  ;;  %v1941_v47 = vpack.c.bf16 %v2909_v38, %v2908_v44  ;;  %v2230_v50 = vpack.c.bf16 %v2985_v30, %v2984_v43  ;;  %v2936_v62 = vld [vmem:[%s3478_s19 + $0x5b] sm:$0xff]  ;;  %v2937_v59 = vld [vmem:[%s3478_s19 + $0x63] sm:$0xff]  ;;  %v2939_v20 = vld [vmem:[%s3478_s19 + $0x73] sm:$0xff] }
 0x1ac   : > { %v1971_v26 = vsel %vm352_vm0, %v1925_v46, 0  ;;  %v2968_v6 = vld [vmem:[%s3478_s19 + $0x15b] sm:$0xff]  ;;  %v2961_v35 = vld [vmem:[%s3478_s19 + $0x123] sm:$0xff] }
 0x1ad   : > { %3228 = vmatpush3.bf16.xpose.msra.mxu0 %v1968_v22  ;;  %v2019_v32 = vsel %vm352_vm0, %v1941_v47, 0  ;;  %v2969_v22 = vld [vmem:[%s3478_s19 + $0x163] sm:$0xff]  ;;  %v2231_v47 = vpack.c.bf16 %v2987_v21, %v2986_v17  ;;  %v2960_v37 = vld [vmem:[%s3478_s19 + $0x11b] sm:$0xff] }
 0x1ae   : > { %3246 = vmatpush3.bf16.xpose.msra.mxu1 %v2016_v28  ;;  %3393 = vmatprep.subr.msk.bf16.mxu0 %vm352_vm0, %v1933_v34  ;;  %v2206_v34 = vpack.c.bf16 %v2937_v59, %v2936_v62  ;;  %v2222_v29 = vpack.c.bf16 %v2969_v22, %v2968_v6  ;;  %v2954_v28 = vld [vmem:[%s3478_s19 + $0xeb] sm:$0xff]  ;;  %v2992_v30 = vld [vmem:[%s3478_s19 + $0x21b] sm:$0xff]  ;;  %v2945_v17 = vld [vmem:[%s3478_s19 + $0xa3] sm:$0xff] }
 0x1af   : > { %3401 = vmatprep.subr.msk.bf16.mxu1 %vm352_vm0, %v1949_v27  ;;  %v2955_v27 = vld [vmem:[%s3478_s19 + $0xf3] sm:$0xff]  ;;  %v2976_v21 = vld [vmem:[%s3478_s19 + $0x19b] sm:$0xff] }
 0x1b0   : > { %v2244_v44 = vsel %vm352_vm0, %v2206_v34, 0  ;;  %v2215_v38 = vpack.c.bf16 %v2955_v27, %v2954_v28  ;;  %v2292_v46 = vsel %vm352_vm0, %v2222_v29, 0  ;;  %v2218_v34 = vpack.c.bf16 %v2961_v35, %v2960_v37  ;;  %v2944_v27 = vld [vmem:[%s3478_s19 + $0x9b] sm:$0xff]  ;;  %v2950_v37 = vld [vmem:[%s3478_s19 + $0xcb] sm:$0xff]  ;;  %v2951_v35 = vld [vmem:[%s3478_s19 + $0xd3] sm:$0xff] }
 0x1b1   : > { %v3439_v29 = vmov 0  }
 0x1b2   : > { %3430 = vset.pattern.permute.xlu0 %v3439_v29 }
 0x1b5   : > { %3230 = vmatpush3.bf16.xpose.msra.mxu0 %v1971_v26  ;;  %v2970_v26 = vld [vmem:[%s3478_s19 + $0x16b] sm:$0xff] }
 0x1b6   : > { %3248 = vmatpush3.bf16.xpose.msra.mxu1 %v2019_v32  ;;  %3394 = vmatprep.subr.msk.bf16.mxu0 %vm352_vm0, %v1934_v53  ;;  %v2971_v53 = vld [vmem:[%s3478_s19 + $0x173] sm:$0xff]  ;;  %v4804_v32 = vld [vmem:[%s4920_s1 + $0x1c] sm:$0xf] }
 0x1b7   : > { %3402 = vmatprep.subr.msk.bf16.mxu1 %vm352_vm0, %v1950_v42  ;;  %v2207_v42 = vpack.c.bf16 %v2939_v20, %v2938_v18  ;;  %v2223_v8 = vpack.c.bf16 %v2971_v53, %v2970_v26  ;;  %v2963_v18 = vld [vmem:[%s3478_s19 + $0x133] sm:$0xff]  ;;  %v2994_v20 = vld [vmem:[%s3478_s19 + $0x22b] sm:$0xff] }
 0x1b8   : > { %v2995_v26 = vld [vmem:[%s3478_s19 + $0x233] sm:$0xff] }
 0x1b9   : > { %v2295_v45 = vsel %vm352_vm0, %v2223_v8, 0  ;;  %v2235_v61 = vpack.c.bf16 %v2995_v26, %v2994_v20 }
 0x1bd   : > { %3232 = vmatpush3.bf16.xpose.msra.mxu0 %v1974_v9  ;;  %v2940_v9 = vld [vmem:[%s3478_s19 + $0x7b] sm:$0xff] }
 0x1be   : > { %3250 = vmatpush3.bf16.xpose.msra.mxu1 %v2022_v57  ;;  %3395 = vmatprep.subr.msk.bf16.mxu0 %vm352_vm0, %v1935_v56  ;;  %v2941_v56 = vld [vmem:[%s3478_s19 + $0x83] sm:$0xff]  ;;  %v2972_v57 = vld [vmem:[%s3478_s19 + $0x17b] sm:$0xff] }
 0x1bf   : > { %3403 = vmatprep.subr.msk.bf16.mxu1 %vm352_vm0, %v1951_v49  ;;  %v2973_v49 = vld [vmem:[%s3478_s19 + $0x183] sm:$0xff]  ;;  %v2208_v24 = vpack.c.bf16 %v2941_v56, %v2940_v9  ;;  %v2996_v56 = vld [vmem:[%s3478_s19 + $0x23b] sm:$0xff] }
 0x1c0   : > { %v2224_v4 = vpack.c.bf16 %v2973_v49, %v2972_v57  ;;  %v2965_v9 = vld [vmem:[%s3478_s19 + $0x143] sm:$0xff] }
 0x1c1   : > { %v2250_v52 = vsel %vm352_vm0, %v2208_v24, 0  ;;  %v2997_v57 = vld [vmem:[%s3478_s19 + $0x243] sm:$0xff] }
 0x1c2   : > { %v2298_v51 = vsel %vm352_vm0, %v2224_v4, 0  ;;  %v2236_v15 = vpack.c.bf16 %v2997_v57, %v2996_v56 }
 0x1c5   : > { %3234 = vmatpush3.bf16.xpose.msra.mxu0 %v1977_v41  ;;  %v2233_v41 = vpack.c.bf16 %v2991_v58, %v2990_v25  ;;  %v2949_v25 = vld [vmem:[%s3478_s19 + $0xc3] sm:$0xff]  ;;  %v2980_v58 = vld [vmem:[%s3478_s19 + $0x1bb] sm:$0xff] }
 0x1c6   : > { %3252 = vmatpush3.bf16.xpose.msra.mxu1 %v2025_v23  ;;  %3396 = vmatprep.subr.msk.bf16.mxu0 %vm352_vm0, %v1936_v13  ;;  %v2942_v13 = vld [vmem:[%s3478_s19 + $0x8b] sm:$0xff]  ;;  %v2943_v23 = vld [vmem:[%s3478_s19 + $0x93] sm:$0xff] }
 0x1c7   : > { %3404 = vmatprep.subr.msk.bf16.mxu1 %vm352_vm0, %v1952_v36  ;;  %v2974_v36 = vld [vmem:[%s3478_s19 + $0x18b] sm:$0xff]  ;;  %v2209_v39 = vpack.c.bf16 %v2943_v23, %v2942_v13  ;;  %v2967_v13 = vld [vmem:[%s3478_s19 + $0x153] sm:$0xff] }
 0x1c8   : > { %v2225_v33 = vpack.c.bf16 %v2975_v2, %v2974_v36  ;;  %v2998_v23 = vld [vmem:[%s3478_s19 + $0x24b] sm:$0xff]  ;;  %v2999_v36 = vld [vmem:[%s3478_s19 + $0x253] sm:$0xff] }
 0x1c9   : > { %v2253_v22 = vsel %vm352_vm0, %v2209_v39, 0 }
 0x1ca   : > { %v2301_v28 = vsel %vm352_vm0, %v2225_v33, 0  ;;  %v2237_v33 = vpack.c.bf16 %v2999_v36, %v2998_v23 }
 0x1cd   : > { %3236 = vmatpush3.bf16.xpose.msra.mxu0 %v1980_v40  ;;  %v2993_v40 = vld [vmem:[%s3478_s19 + $0x223] sm:$0xff] }
 0x1ce   : > { %3254 = vmatpush3.bf16.xpose.msra.mxu1 %v2028_v55  ;;  %3405 = vmatprep.subr.msk.bf16.mxu0 %vm352_vm0, %v2214_v14 }
 0x1cf   : > { %3413 = vmatprep.subr.msk.bf16.mxu1 %vm352_vm0, %v2230_v50 }
 0x1d4   : > { %3238 = vmatmul.mubr.msk.bf16.vlgmr.msra.gmra.mrb[24].mxu0 %vm352_vm0, %v4685_v7 }
 0x1d5   : > { %3256 = vmatmul.mubr.msk.bf16.vlgmr.msra.gmra.mrb[24].mxu1 %vm352_vm0, %v4685_v7  ;;  %3258 = vmatpush3.bf16.xpose.msra.mxu0 %v2244_v44  ;;  %v2247_v7 = vsel %vm352_vm0, %v2207_v42, 0  ;;  %v2977_v44 = vld [vmem:[%s3478_s19 + $0x1a3] sm:$0xff] }
 0x1d6   : > { %3276 = vmatpush3.bf16.xpose.msra.mxu1 %v2292_v46  ;;  %3406 = vmatprep.subr.msk.bf16.mxu0 %vm352_vm0, %v2215_v38  ;;  %v2210_v38 = vpack.c.bf16 %v2945_v17, %v2944_v27  ;;  %v2226_v46 = vpack.c.bf16 %v2977_v44, %v2976_v21 }
 0x1d7   : > { %3414 = vmatprep.subr.msk.bf16.mxu1 %vm352_vm0, %v2231_v47  ;;  %3273 = vmatprep.mubr.msk.bf16.mxu0 %vm352_vm0, %v4804_v32  ;;  %v2962_v47 = vld [vmem:[%s3478_s19 + $0x12b] sm:$0xff] }
 0x1d8   : > { %3291 = vmatprep.mubr.msk.bf16.mxu1 %vm352_vm0, %v4804_v32  ;;  %v2256_v53 = vsel %vm352_vm0, %v2210_v38, 0  ;;  %v2219_v42 = vpack.c.bf16 %v2963_v18, %v2962_v47  ;;  %v2304_v8 = vsel %vm352_vm0, %v2226_v46, 0 }
 0x1dd   : > { %3260 = vmatpush3.bf16.xpose.msra.mxu0 %v2247_v7  ;;  %v2979_v7 = vld [vmem:[%s3478_s19 + $0x1b3] sm:$0xff] }
 0x1de   : > { %3278 = vmatpush3.bf16.xpose.msra.mxu1 %v2295_v45  ;;  %3407 = vmatprep.subr.msk.bf16.mxu0 %vm352_vm0, %v2216_v3  ;;  %v2211_v3 = vpack.c.bf16 %v2947_v48, %v2946_v31  ;;  %v2227_v45 = vpack.c.bf16 %v2979_v7, %v2978_v0 }
 0x1df   : > { %3415 = vmatprep.subr.msk.bf16.mxu1 %vm352_vm0, %v2232_v5  ;;  %v2964_v5 = vld [vmem:[%s3478_s19 + $0x13b] sm:$0xff] }
 0x1e0   : > { %v2259_v49 = vsel %vm352_vm0, %v2211_v3, 0  ;;  %v2220_v24 = vpack.c.bf16 %v2965_v9, %v2964_v5  ;;  %v2307_v4 = vsel %vm352_vm0, %v2227_v45, 0 }
 0x1e5   : > { %3262 = vmatpush3.bf16.xpose.msra.mxu0 %v2250_v52  ;;  %v2981_v52 = vld [vmem:[%s3478_s19 + $0x1c3] sm:$0xff] }
 0x1e6   : > { %3280 = vmatpush3.bf16.xpose.msra.mxu1 %v2298_v51  ;;  %3408 = vmatprep.subr.msk.bf16.mxu0 %vm352_vm0, %v2217_v63  ;;  %v2212_v63 = vpack.c.bf16 %v2949_v25, %v2948_v11  ;;  %v2228_v51 = vpack.c.bf16 %v2981_v52, %v2980_v58 }
 0x1e7   : > { %v1233_v10 = vpop.f32.mrb[12].mxu0  ;;  %3416 = vmatprep.subr.msk.bf16.mxu1 %vm352_vm0, %v2233_v41  ;;  %v2966_v41 = vld [vmem:[%s3478_s19 + $0x14b] sm:$0xff] }
 0x1e8   : > { %v4841_v12 = vadd.f32 %v1233_v10, %v4720_v60  ;;  %v1274_v54 = vpop.f32.mrb[12].mxu1  ;;  %v1235_v43 = vpop.f32.mrb[13].mxu0  ;;  %v2262_v2 = vsel %vm352_vm0, %v2212_v63, 0  ;;  %v2221_v39 = vpack.c.bf16 %v2967_v13, %v2966_v41  ;;  %v2310_v10 = vsel %vm352_vm0, %v2228_v51, 0 }
 0x1e9   : > { %v4846_v14 = vadd.f32 %v1274_v54, %v4723_v1  ;;  %v4849_v55 = vadd.f32 %v1235_v43, %v4726_v16  ;;  %v1276_v50 = vpop.f32.mrb[13].mxu1  ;;  %v1237_v62 = vpop.f32.mrb[14].mxu0  ;;  %v2425_v1 = vld [vmem:[%s4921_s2] sm:$0xff]  ;;  %v2982_v54 = vld [vmem:[%s3478_s19 + $0x1cb] sm:$0xff]  ;;  %v2983_v43 = vld [vmem:[%s3478_s19 + $0x1d3] sm:$0xff] }
 0x1ea   : > { %v4852_v59 = vadd.f32 %v1276_v50, %v4729_v19  ;;  %v1278_v60 = vpop.f32.mrb[14].mxu1  ;;  %v1238_v6 = vpop.f32.mrb[15].mxu0  ;;  %v2234_v19 = vpack.c.bf16 %v2993_v40, %v2992_v30  ;;  %2428 = vperm.xlu0 %3430, %v2425_v1   ;;  %v2213_v30 = vpack.c.bf16 %v2951_v35, %v2950_v37  ;;  %v2229_v40 = vpack.c.bf16 %v2983_v43, %v2982_v54 }
 0x1eb   : > { %v1279_v16 = vpop.f32.mrb[15].mxu1 }
 0x1ec   : > { %v2265_v50 = vsel %vm352_vm0, %v2213_v30, 0  ;;  %v2313_v62 = vsel %vm352_vm0, %v2229_v40, 0 }
 0x1ed   : > { %3264 = vmatpush3.bf16.xpose.msra.mxu0 %v2253_v22 }
 0x1ee   : > { %3282 = vmatpush3.bf16.xpose.msra.mxu1 %v2301_v28  ;;  %3409 = vmatprep.subr.msk.bf16.mxu0 %vm352_vm0, %v2218_v34 }
 0x1ef   : > { %3417 = vmatprep.subr.msk.bf16.mxu1 %vm352_vm0, %v2234_v19 }
 0x1f5   : > { %3266 = vmatpush3.bf16.xpose.msra.mxu0 %v2256_v53 }
 0x1f6   : > { %3284 = vmatpush3.bf16.xpose.msra.mxu1 %v2304_v8  ;;  %3410 = vmatprep.subr.msk.bf16.mxu0 %vm352_vm0, %v2219_v42 }
 0x1f7   : > { %3418 = vmatprep.subr.msk.bf16.mxu1 %vm352_vm0, %v2235_v61 }
 0x1fd   : > { %3268 = vmatpush3.bf16.xpose.msra.mxu0 %v2259_v49 }
 0x1fe   : > { %3286 = vmatpush3.bf16.xpose.msra.mxu1 %v2307_v4  ;;  %3411 = vmatprep.subr.msk.bf16.mxu0 %vm352_vm0, %v2220_v24 }
 0x1ff   : > { %3419 = vmatprep.subr.msk.bf16.mxu1 %vm352_vm0, %v2236_v15 }
 0x205   : > { %3270 = vmatpush3.bf16.xpose.msra.mxu0 %v2262_v2 }
 0x206   : > { %3288 = vmatpush3.bf16.xpose.msra.mxu1 %v2310_v10  ;;  %3412 = vmatprep.subr.msk.bf16.mxu0 %vm352_vm0, %v2221_v39 }
 0x207   : > { %3420 = vmatprep.subr.msk.bf16.mxu1 %vm352_vm0, %v2237_v33 }
 0x20d   : > { %3272 = vmatpush3.bf16.xpose.msra.mxu0 %v2265_v50 }
 0x20e   : > { %3290 = vmatpush3.bf16.xpose.msra.mxu1 %v2313_v62 }
 0x214   : > { %3274 = vmatmul.mubr.msk.bf16.vlgmr.msra.gmra.mrb[28].mxu0 %vm352_vm0, %v4804_v32 }
 0x215   : > { %3292 = vmatmul.mubr.msk.bf16.vlgmr.msra.gmra.mrb[28].mxu1 %vm352_vm0, %v4804_v32 }
 0x227   : > { %v1518_v60 = vpop.f32.mrb[16].mxu0 }
 0x228   : > { %v1566_v6 = vadd.f32 %v1518_v60, %v4841_v12  ;;  %v1559_v22 = vpop.f32.mrb[16].mxu1  ;;  %v1520_v34 = vpop.f32.mrb[17].mxu0 }
 0x229   : > { %v1568_v29 = vadd.f32 %v1559_v22, %v4846_v14  ;;  %v1567_v1 = vadd.f32 %v1520_v34, %v4849_v55  ;;  %v1561_v16 = vpop.f32.mrb[17].mxu1  ;;  %v1522_v28 = vpop.f32.mrb[18].mxu0 }
 0x22a   : > { %v1569_v19 = vadd.f32 %v1561_v16, %v4852_v59  ;;  %v1563_v27 = vpop.f32.mrb[18].mxu1  ;;  %v1523_v17 = vpop.f32.mrb[19].mxu0 }
 0x22b   : > { %v1564_v21 = vpop.f32.mrb[19].mxu1 }
 0x267   : > { %v1803_v44 = vpop.f32.mrb[20].mxu0 }
 0x268   : > { %v1851_v38 = vadd.f32 %v1803_v44, %v1566_v6  ;;  %v1844_v46 = vpop.f32.mrb[20].mxu1  ;;  %v1805_v32 = vpop.f32.mrb[21].mxu0 }
 0x269   : > { %v1853_v47 = vadd.f32 %v1844_v46, %v1568_v29  ;;  %v1852_v18 = vadd.f32 %v1805_v32, %v1567_v1  ;;  %v1846_v12 = vpop.f32.mrb[21].mxu1  ;;  %v1807_v20 = vpop.f32.mrb[22].mxu0 }
 0x26a   : > { %v1854_v26 = vadd.f32 %v1846_v12, %v1569_v19  ;;  %v1848_v14 = vpop.f32.mrb[22].mxu1  ;;  %v1808_v53 = vpop.f32.mrb[23].mxu0 }
 0x26b   : > { %v1849_v55 = vpop.f32.mrb[23].mxu1  ;;  %v2429_v57 = vpop.permute.xlu0 %2428 }
 0x2a7   : > { %v2088_v42 = vpop.f32.mrb[24].mxu0 }
 0x2a8   : > { %v2136_v8 = vadd.f32 %v2088_v42, %v1851_v38  ;;  %v2129_v61 = vpop.f32.mrb[24].mxu1  ;;  %v2090_v59 = vpop.f32.mrb[25].mxu0 }
 0x2a9   : > { %v2138_v31 = vadd.f32 %v2129_v61, %v1853_v47  ;;  %v2137_v48 = vadd.f32 %v2090_v59, %v1852_v18  ;;  %v2131_v0 = vpop.f32.mrb[25].mxu1  ;;  %v2092_v7 = vpop.f32.mrb[26].mxu0 }
 0x2aa   : > { %v2139_v3 = vadd.f32 %v2131_v0, %v1854_v26  ;;  %v2133_v45 = vpop.f32.mrb[26].mxu1  ;;  %v2093_v5 = vpop.f32.mrb[27].mxu0 }
 0x2ab   : > { %v2134_v9 = vpop.f32.mrb[27].mxu1 }
 0x2e7   : > { %v2373_v56 = vpop.f32.mrb[28].mxu0 }
 0x2e8   : > { %v2421_v49 = vadd.f32 %v2373_v56, %v2136_v8  ;;  %v2414_v24 = vpop.f32.mrb[28].mxu1  ;;  %v2375_v4 = vpop.f32.mrb[29].mxu0 }
 0x2e9   : > { %v2423_v15 = vadd.f32 %v2414_v24, %v2138_v31  ;;  %v2422_v11 = vadd.f32 %v2375_v4, %v2137_v48  ;;  %v2416_v25 = vpop.f32.mrb[29].mxu1  ;;  %v2377_v58 = vpop.f32.mrb[30].mxu0 }
 0x2ea   : > { %v2424_v52 = vadd.f32 %v2416_v25, %v2139_v3  ;;  %v2431_v63 = vadd.f32 %v2429_v57, %v2421_v49  ;;  %v2418_v51 = vpop.f32.mrb[30].mxu1  ;;  %v2378_v41 = vpop.f32.mrb[31].mxu0 }
 0x2eb   : > { %v2432_v13 = vadd.f32 %v2429_v57, %v2422_v11  ;;  %v2433_v23 = vadd.f32 %v2429_v57, %v2423_v15  ;;  %v2419_v36 = vpop.f32.mrb[31].mxu1 }
 0x2ec   : > { %v2434_v2 = vadd.f32 %v2429_v57, %v2424_v52  ;;  %vm2435_vm1 = vcmp.ge.f32.partialorder %v2431_v63, 0.0  ;;  %v2439_v39 = vmul.f32 0.01, %v2431_v63 }
 0x2ed   : > { %vm2436_vm2 = vcmp.ge.f32.partialorder %v2432_v13, 0.0  ;;  %vm2437_vm3 = vcmp.ge.f32.partialorder %v2433_v23, 0.0  ;;  %v2440_v10 = vmul.f32 0.01, %v2432_v13  ;;  %v2441_v33 = vmul.f32 0.01, %v2433_v23 }
 0x2ee   : > { %vm2438_vm4 = vcmp.ge.f32.partialorder %v2434_v2, 0.0  ;;  %v2442_v37 = vmul.f32 0.01, %v2434_v2  ;;  %v2443_v35 = vsel %vm2435_vm1, %v2431_v63, %v2439_v39 }
 0x2ef   : > { %v2444_v54 = vsel %vm2436_vm2, %v2432_v13, %v2440_v10  ;;  %v2445_v43 = vsel %vm2437_vm3, %v2433_v23, %v2441_v33  ;;  %2447 = vst [vmem:[%s150_s14] sm:$0xff] %v2443_v35 }
 0x2f0   : > { %v2446_v30 = vsel %vm2438_vm4, %v2434_v2, %v2442_v37  ;;  %2448 = vst [vmem:[%s150_s14 + $0x8] sm:$0xff] %v2444_v54  ;;  %2449 = vst [vmem:[%s150_s14 + $0x10] sm:$0xff] %v2445_v43 }
 0x2f1   : > { %2450 = vst [vmem:[%s150_s14 + $0x18] sm:$0xff] %v2446_v30 }
 0x2f2 PF: > { %s13_s12 = sadd.s32 1, %s3437_s12  }
 0x2f3   : > { %p10_p4 = scmp.ge.s32.totalorder %s13_s12, 5  }
 0x2f5   :  { %12 = sbr.rel (!%p10_p4) target bundleno = 1 (0x1), region = 74 }

// kernel: video_encoder_forward.6
= control target key start
LH: loop header
LB: loop body
LE: loop exit
PB: predicated region body
PF: predicated region fallthrough
CT: control target
= control target key end

     0   :  { %vm125_vm0 = vcmask 523264   ;;  %s2777_s0 = inlined_call_operand.vmem [shape: f32[287,64], index: 0, kind: input, shape index: {}]   ;;  %s2778_s1 = inlined_call_operand.vmem [shape: bf16[8,16,64], index: 1, kind: input, shape index: {}]   ;;  %s2779_s2 = inlined_call_operand.vmem [shape: f32[16,1], index: 2, kind: input, shape index: {}]   ;;  %s2780_s3 = inlined_call_operand.vmem [shape: f32[16,256], index: 3, kind: output, shape index: {}]  }
   0x1   :  { %v1822_v0 = vld [vmem:[%s2777_s0 + $0x81] sm:$0xff]  ;;  %v1827_v1 = vld [vmem:[%s2777_s0 + $0x89] sm:$0xff]  ;;  %v1424_v2 = vld [vmem:[%s2777_s0 + $0x99] sm:$0xff] }
   0x2   :  { %v109_v3 = vpack.c.bf16 %v1827_v1, %v1822_v0  ;;  %v1425_v4 = vld [vmem:[%s2777_s0 + $0xa1] sm:$0xff]  ;;  %v1299_v6 = vld [vmem:[%s2777_s0 + $0x9] sm:$0xff]  ;;  %v1408_v9 = vld [vmem:[%s2777_s0 + $0x19] sm:$0xff] }
   0x3   :  { %v1298_v5 = vld [vmem:[%s2777_s0 + $0x1] sm:$0xff]  ;;  %v673_v7 = vpack.c.bf16 %v1425_v4, %v1424_v2  ;;  %v1852_v11 = vld [vmem:[%s2777_s0 + $0x91] sm:$0xff]  ;;  %v1426_v14 = vld [vmem:[%s2777_s0 + $0xa9] sm:$0xff] }
   0x4   :  { %v101_v8 = vpack.c.bf16 %v1299_v6, %v1298_v5  ;;  %v1409_v10 = vld [vmem:[%s2777_s0 + $0x21] sm:$0xff]  ;;  %1724 = vmatprep.subr.msk.bf16.mxu1 %vm125_vm0, %v109_v3  ;;  %v110_v13 = vpack.c.bf16 %v1424_v2, %v1852_v11  ;;  %v1427_v15 = vld [vmem:[%s2777_s0 + $0xb1] sm:$0xff]  ;;  %v1410_v19 = vld [vmem:[%s2777_s0 + $0x29] sm:$0xff]  ;;  %v111_v27 = vpack.c.bf16 %v1426_v14, %v1425_v4 }
   0x5   :  { %v665_v12 = vpack.c.bf16 %v1409_v10, %v1408_v9  ;;  %v1300_v16 = vld [vmem:[%s2777_s0 + $0x11] sm:$0xff]  ;;  %1756 = vmatprep.subr.msk.bf16.mxu0 %vm125_vm0, %v673_v7  ;;  %v674_v18 = vpack.c.bf16 %v1427_v15, %v1426_v14  ;;  %v1428_v24 = vld [vmem:[%s2777_s0 + $0xb9] sm:$0xff]  ;;  %v1429_v25 = vld [vmem:[%s2777_s0 + $0xc1] sm:$0xff]  ;;  %v103_v33 = vpack.c.bf16 %v1410_v19, %v1409_v10 }
   0x6   :  { %v130_v17 = vsel %vm125_vm0, %v101_v8, 0  ;;  %v1411_v20 = vld [vmem:[%s2777_s0 + $0x31] sm:$0xff]  ;;  %v102_v22 = vpack.c.bf16 %v1408_v9, %v1300_v16  ;;  %v675_v29 = vpack.c.bf16 %v1429_v25, %v1428_v24  ;;  %v1412_v30 = vld [vmem:[%s2777_s0 + $0x39] sm:$0xff]  ;;  %v1890_v31 = vld [vmem:[%s2778_s1 + $0x8] sm:$0xff]   ;;  %v112_v39 = vpack.c.bf16 %v1428_v24, %v1427_v15 }
   0x7   :  { %1553 = vmatpush3.bf16.xpose.msra.mxu1 %v130_v17  ;;  %v693_v21 = vsel %vm125_vm0, %v665_v12, 0  ;;  %v666_v23 = vpack.c.bf16 %v1411_v20, %v1410_v19  ;;  %v1413_v32 = vld [vmem:[%s2777_s0 + $0x41] sm:$0xff]  ;;  %1568 = vmatprep.mubr.msk.bf16.mxu1 %vm125_vm0, %v1890_v31  ;;  %v1430_v36 = vld [vmem:[%s2777_s0 + $0xc9] sm:$0xff]  ;;  %v1431_v37 = vld [vmem:[%s2777_s0 + $0xd1] sm:$0xff]  ;;  %v136_v38 = vsel %vm125_vm0, %v103_v33, 0  ;;  %v104_v44 = vpack.c.bf16 %v1412_v30, %v1411_v20 }
   0x8   :  { %1625 = vmatpush3.bf16.xpose.msra.mxu0 %v693_v21  ;;  %1725 = vmatprep.subr.msk.bf16.mxu1 %vm125_vm0, %v110_v13  ;;  %v133_v26 = vsel %vm125_vm0, %v102_v22, 0  ;;  %v1901_v34 = vld [vmem:[%s2778_s1 + $0x20] sm:$0xff]   ;;  %v667_v35 = vpack.c.bf16 %v1413_v32, %v1412_v30  ;;  %v676_v41 = vpack.c.bf16 %v1431_v37, %v1430_v36  ;;  %v1414_v42 = vld [vmem:[%s2777_s0 + $0x49] sm:$0xff]  ;;  %v1415_v43 = vld [vmem:[%s2777_s0 + $0x51] sm:$0xff]  ;;  %v113_v49 = vpack.c.bf16 %v1430_v36, %v1429_v25 }
   0x9   :  { %1757 = vmatprep.subr.msk.bf16.mxu0 %vm125_vm0, %v674_v18  ;;  %v696_v28 = vsel %vm125_vm0, %v666_v23, 0  ;;  %1640 = vmatprep.mubr.msk.bf16.mxu0 %vm125_vm0, %v1901_v34  ;;  %v668_v45 = vpack.c.bf16 %v1415_v43, %v1414_v42  ;;  %v1432_v46 = vld [vmem:[%s2777_s0 + $0xd9] sm:$0xff]  ;;  %v1433_v47 = vld [vmem:[%s2777_s0 + $0xe1] sm:$0xff]  ;;  %v139_v48 = vsel %vm125_vm0, %v104_v44, 0  ;;  %v105_v54 = vpack.c.bf16 %v1414_v42, %v1413_v32  ;;  %v1434_v56 = vld [vmem:[%s2777_s0 + $0xe9] sm:$0xff] }
   0xa   :  { %v699_v40 = vsel %vm125_vm0, %v667_v35, 0  ;;  %v677_v51 = vpack.c.bf16 %v1433_v47, %v1432_v46  ;;  %v1416_v52 = vld [vmem:[%s2777_s0 + $0x59] sm:$0xff]  ;;  %v1417_v53 = vld [vmem:[%s2777_s0 + $0x61] sm:$0xff]  ;;  %v1435_v57 = vld [vmem:[%s2777_s0 + $0xf1] sm:$0xff]  ;;  %v114_v59 = vpack.c.bf16 %v1432_v46, %v1431_v37  ;;  %v115_v7 = vpack.c.bf16 %v1434_v56, %v1433_v47 }
   0xb   :  { %v702_v50 = vsel %vm125_vm0, %v668_v45, 0  ;;  %v669_v55 = vpack.c.bf16 %v1417_v53, %v1416_v52  ;;  %v142_v58 = vsel %vm125_vm0, %v105_v54, 0  ;;  %v678_v61 = vpack.c.bf16 %v1435_v57, %v1434_v56  ;;  %v1418_v62 = vld [vmem:[%s2777_s0 + $0x69] sm:$0xff]  ;;  %v1419_v63 = vld [vmem:[%s2777_s0 + $0x71] sm:$0xff]  ;;  %v1436_v4 = vld [vmem:[%s2777_s0 + $0xf9] sm:$0xff] }
   0xc   :  { %v106_v2 = vpack.c.bf16 %v1416_v52, %v1415_v43  ;;  %v670_v3 = vpack.c.bf16 %v1419_v63, %v1418_v62  ;;  %v1437_v5 = vld [vmem:[%s2777_s0 + $0x101] sm:$0xff]  ;;  %v1420_v10 = vld [vmem:[%s2777_s0 + $0x79] sm:$0xff]  ;;  %v107_v12 = vpack.c.bf16 %v1418_v62, %v1417_v53  ;;  %v1438_v14 = vld [vmem:[%s2777_s0 + $0x109] sm:$0xff]  ;;  %v116_v17 = vpack.c.bf16 %v1436_v4, %v1435_v57 }
   0xd   :  { %v705_v60 = vsel %vm125_vm0, %v669_v55, 0  ;;  %v679_v9 = vpack.c.bf16 %v1437_v5, %v1436_v4  ;;  %v671_v13 = vpack.c.bf16 %v1822_v0, %v1420_v10  ;;  %v1439_v15 = vld [vmem:[%s2777_s0 + $0x111] sm:$0xff]  ;;  %v108_v20 = vpack.c.bf16 %v1420_v10, %v1419_v63  ;;  %v33_v21 = vld [vmem:[%s2777_s0 + $0x80] sm:$0xff]  ;;  %v34_v22 = vld [vmem:[%s2777_s0 + $0x88] sm:$0xff] }
   0xe   :  { %v145_v6 = vsel %vm125_vm0, %v106_v2, 0  ;;  %v708_v8 = vsel %vm125_vm0, %v670_v3, 0  ;;  %v148_v16 = vsel %vm125_vm0, %v107_v12, 0  ;;  %v680_v19 = vpack.c.bf16 %v1439_v15, %v1438_v14  ;;  %v1460_v23 = vld [vmem:[%s2777_s0 + $0x9a] sm:$0xff]  ;;  %v1461_v24 = vld [vmem:[%s2777_s0 + $0xa2] sm:$0xff]  ;;  %v35_v35 = vld [vmem:[%s2777_s0 + $0x90] sm:$0xff] }
   0xf   :  { %1555 = vmatpush3.bf16.xpose.msra.mxu1 %v133_v26  ;;  %v711_v18 = vsel %vm125_vm0, %v671_v13, 0  ;;  %v672_v0 = vpack.c.bf16 %v1852_v11, %v1827_v1  ;;  %v17_v1 = vld [vmem:[%s2777_s0] sm:$0xff]  ;;  %v151_v11 = vsel %vm125_vm0, %v108_v20, 0  ;;  %v57_v26 = vpack.c.bf16 %v34_v22, %v33_v21  ;;  %v36_v36 = vld [vmem:[%s2777_s0 + $0x98] sm:$0xff]  ;;  %v1462_v37 = vld [vmem:[%s2777_s0 + $0xaa] sm:$0xff] }
  0x10   :  { %1627 = vmatpush3.bf16.xpose.msra.mxu0 %v696_v28  ;;  %1726 = vmatprep.subr.msk.bf16.mxu1 %vm125_vm0, %v111_v27  ;;  %v18_v27 = vld [vmem:[%s2777_s0 + $0x8] sm:$0xff]  ;;  %v1444_v28 = vld [vmem:[%s2777_s0 + $0x1a] sm:$0xff]  ;;  %v19_v43 = vld [vmem:[%s2777_s0 + $0x10] sm:$0xff] }
  0x11   :  { %1758 = vmatprep.subr.msk.bf16.mxu0 %vm125_vm0, %v675_v29  ;;  %v714_v25 = vsel %vm125_vm0, %v672_v0, 0  ;;  %v829_v29 = vpack.c.bf16 %v1461_v24, %v1460_v23  ;;  %v1445_v30 = vld [vmem:[%s2777_s0 + $0x22] sm:$0xff]  ;;  %v49_v32 = vpack.c.bf16 %v18_v27, %v17_v1  ;;  %v20_v44 = vld [vmem:[%s2777_s0 + $0x18] sm:$0xff]  ;;  %v1446_v46 = vld [vmem:[%s2777_s0 + $0x2a] sm:$0xff] }
  0x12   :  { %v821_v33 = vpack.c.bf16 %v1445_v30, %v1444_v28  ;;  %v2031_v45 = vld [vmem:[%s2778_s1] sm:$0xff]   ;;  %v1447_v47 = vld [vmem:[%s2777_s0 + $0x32] sm:$0xff] }
  0x13   :  { %v1465_v52 = vld [vmem:[%s2777_s0 + $0xc2] sm:$0xff]  ;;  %v2088_v62 = vld [vmem:[%s2777_s0 + $0xae] sm:$0xff]  ;;  %v2135_v20 = vld [vmem:[%s2777_s0 + $0xb6] sm:$0xff] }
  0x14   :  { %v21_v57 = vld [vmem:[%s2777_s0 + $0x20] sm:$0xff]  ;;  %v2099_v3 = vld [vmem:[%s2777_s0 + $0x2e] sm:$0xff]  ;;  %v2146_v22 = vld [vmem:[%s2777_s0 + $0x36] sm:$0xff] }
  0x15   :  { %v2094_v2 = vld [vmem:[%s2777_s0 + $0x26] sm:$0xff]  ;;  %v1467_v10 = vld [vmem:[%s2777_s0 + $0xd2] sm:$0xff]  ;;  %v2140_v0 = vld [vmem:[%s2777_s0 + $0xbe] sm:$0xff] }
  0x16   :  { %v2151_v23 = vld [vmem:[%s2777_s0 + $0x3e] sm:$0xff]  ;;  %v520_v24 = vpack.c.bf16 %v2140_v0, %v2135_v20 }
  0x17   :  { %1557 = vmatpush3.bf16.xpose.msra.mxu1 %v136_v38  ;;  %v1463_v38 = vld [vmem:[%s2777_s0 + $0xb2] sm:$0xff]  ;;  %v1468_v27 = vld [vmem:[%s2777_s0 + $0xda] sm:$0xff]  ;;  %v1469_v28 = vld [vmem:[%s2777_s0 + $0xe2] sm:$0xff] }
  0x18   :  { %1629 = vmatpush3.bf16.xpose.msra.mxu0 %v699_v40  ;;  %1727 = vmatprep.subr.msk.bf16.mxu1 %vm125_vm0, %v112_v39  ;;  %v229_v39 = vsel %vm125_vm0, %v49_v32, 0  ;;  %v58_v40 = vpack.c.bf16 %v36_v36, %v35_v35  ;;  %v830_v42 = vpack.c.bf16 %v1463_v38, %v1462_v37  ;;  %v25_v35 = vld [vmem:[%s2777_s0 + $0x40] sm:$0xff]  ;;  %v26_v36 = vld [vmem:[%s2777_s0 + $0x48] sm:$0xff] }
  0x19   :  { %1759 = vmatprep.subr.msk.bf16.mxu0 %vm125_vm0, %v676_v41  ;;  %v849_v41 = vsel %vm125_vm0, %v821_v33, 0  ;;  %v833_v33 = vpack.c.bf16 %v1469_v28, %v1468_v27  ;;  %v1452_v37 = vld [vmem:[%s2777_s0 + $0x5a] sm:$0xff]  ;;  %v1453_v38 = vld [vmem:[%s2777_s0 + $0x62] sm:$0xff]  ;;  %v2296_v28 = vld [vmem:[%s2777_s0 + $0xee] sm:$0xff] }
  0x1a   :  { %v2291_v27 = vld [vmem:[%s2777_s0 + $0xe6] sm:$0xff] }
  0x1f   :  { %1559 = vmatpush3.bf16.xpose.msra.mxu1 %v139_v48  ;;  %v2044_v48 = vld [vmem:[%s2778_s1 + $0x28] sm:$0xff]  }
  0x20   :  { %1631 = vmatpush3.bf16.xpose.msra.mxu0 %v702_v50  ;;  %1728 = vmatprep.subr.msk.bf16.mxu1 %vm125_vm0, %v113_v49  ;;  %v822_v49 = vpack.c.bf16 %v1447_v47, %v1446_v46  ;;  %v37_v50 = vld [vmem:[%s2777_s0 + $0xa0] sm:$0xff]  ;;  %v825_v46 = vpack.c.bf16 %v1453_v38, %v1452_v37  ;;  %v43_v47 = vld [vmem:[%s2777_s0 + $0xd0] sm:$0xff]  ;;  %v48_v37 = vld [vmem:[%s2777_s0 + $0xf8] sm:$0xff] }
  0x21   :  { %1760 = vmatprep.subr.msk.bf16.mxu0 %vm125_vm0, %v677_v51  ;;  %v38_v51 = vld [vmem:[%s2777_s0 + $0xa8] sm:$0xff] }
  0x22   :  { %v59_v54 = vpack.c.bf16 %v38_v51, %v37_v50  ;;  %v852_v55 = vsel %vm125_vm0, %v822_v49, 0  ;;  %v1470_v50 = vld [vmem:[%s2777_s0 + $0xea] sm:$0xff]  ;;  %v1471_v51 = vld [vmem:[%s2777_s0 + $0xf2] sm:$0xff] }
  0x27   :  { %1561 = vmatpush3.bf16.xpose.msra.mxu1 %v142_v58  ;;  %v22_v58 = vld [vmem:[%s2777_s0 + $0x28] sm:$0xff] }
  0x28   :  { %1633 = vmatpush3.bf16.xpose.msra.mxu0 %v705_v60  ;;  %1729 = vmatprep.subr.msk.bf16.mxu1 %vm125_vm0, %v114_v59  ;;  %v1448_v59 = vld [vmem:[%s2777_s0 + $0x3a] sm:$0xff]  ;;  %v1449_v60 = vld [vmem:[%s2777_s0 + $0x42] sm:$0xff]  ;;  %v51_v63 = vpack.c.bf16 %v22_v58, %v21_v57  ;;  %v1454_v57 = vld [vmem:[%s2777_s0 + $0x6a] sm:$0xff] }
  0x29   :  { %1761 = vmatprep.subr.msk.bf16.mxu0 %vm125_vm0, %v678_v61  ;;  %v2083_v61 = vld [vmem:[%s2777_s0 + $0xa6] sm:$0xff]  ;;  %v823_v5 = vpack.c.bf16 %v1449_v60, %v1448_v59  ;;  %v1455_v58 = vld [vmem:[%s2777_s0 + $0x72] sm:$0xff]  ;;  %v2244_v60 = vld [vmem:[%s2777_s0 + $0xde] sm:$0xff] }
  0x2a   :  { %v519_v4 = vpack.c.bf16 %v2088_v62, %v2083_v61  ;;  %v235_v12 = vsel %vm125_vm0, %v51_v63, 0  ;;  %v2239_v59 = vld [vmem:[%s2777_s0 + $0xd6] sm:$0xff] }
  0x2b   :  { %v855_v14 = vsel %vm125_vm0, %v823_v5, 0  ;;  %v2250_v5 = vld [vmem:[%s2777_s0 + $0x56] sm:$0xff] }
  0x2f   :  { %1563 = vmatpush3.bf16.xpose.msra.mxu1 %v145_v6  ;;  %v39_v6 = vld [vmem:[%s2777_s0 + $0xb0] sm:$0xff] }
  0x30   :  { %1635 = vmatpush3.bf16.xpose.msra.mxu0 %v708_v8  ;;  %1730 = vmatprep.subr.msk.bf16.mxu1 %vm125_vm0, %v115_v7  ;;  %v40_v7 = vld [vmem:[%s2777_s0 + $0xb8] sm:$0xff]  ;;  %v511_v8 = vpack.c.bf16 %v2099_v3, %v2094_v2 }
  0x31   :  { %1762 = vmatprep.subr.msk.bf16.mxu0 %vm125_vm0, %v679_v9  ;;  %v1466_v9 = vld [vmem:[%s2777_s0 + $0xca] sm:$0xff]  ;;  %v60_v13 = vpack.c.bf16 %v40_v7, %v39_v6  ;;  %v2255_v6 = vld [vmem:[%s2777_s0 + $0x5e] sm:$0xff]  ;;  %v522_v7 = vpack.c.bf16 %v2244_v60, %v2239_v59 }
  0x32   :  { %v832_v15 = vpack.c.bf16 %v1467_v10, %v1466_v9  ;;  %v826_v9 = vpack.c.bf16 %v1455_v58, %v1454_v57  ;;  %v45_v10 = vld [vmem:[%s2777_s0 + $0xe0] sm:$0xff]  ;;  %v1353_v58 = vld [vmem:[%s2777_s0 + $0x8d] sm:$0xff] }
  0x33   :  { %v1352_v57 = vld [vmem:[%s2777_s0 + $0x85] sm:$0xff] }
  0x37   :  { %1565 = vmatpush3.bf16.xpose.msra.mxu1 %v148_v16  ;;  %v23_v16 = vld [vmem:[%s2777_s0 + $0x30] sm:$0xff] }
  0x38   :  { %1637 = vmatpush3.bf16.xpose.msra.mxu0 %v711_v18  ;;  %1731 = vmatprep.subr.msk.bf16.mxu1 %vm125_vm0, %v116_v17  ;;  %v24_v17 = vld [vmem:[%s2777_s0 + $0x38] sm:$0xff]  ;;  %v1450_v18 = vld [vmem:[%s2777_s0 + $0x4a] sm:$0xff] }
  0x39   :  { %1763 = vmatprep.subr.msk.bf16.mxu0 %vm125_vm0, %v680_v19  ;;  %v1451_v19 = vld [vmem:[%s2777_s0 + $0x52] sm:$0xff]  ;;  %v52_v21 = vpack.c.bf16 %v24_v17, %v23_v16 }
  0x3a   :  { %v824_v1 = vpack.c.bf16 %v1451_v19, %v1450_v18  ;;  %v864_v18 = vsel %vm125_vm0, %v826_v9, 0 }
  0x3c   :  { %v858_v32 = vsel %vm125_vm0, %v824_v1, 0  ;;  %v30_v1 = vld [vmem:[%s2777_s0 + $0x68] sm:$0xff] }
  0x3f   :  { %1567 = vmatpush3.bf16.xpose.msra.mxu1 %v151_v11  ;;  %v41_v11 = vld [vmem:[%s2777_s0 + $0xc0] sm:$0xff] }
  0x40   :  { %1639 = vmatpush3.bf16.xpose.msra.mxu0 %v714_v25  ;;  %1732 = vmatprep.subr.msk.bf16.mxu1 %vm125_vm0, %v57_v26  ;;  %v42_v25 = vld [vmem:[%s2777_s0 + $0xc8] sm:$0xff]  ;;  %v512_v26 = vpack.c.bf16 %v2151_v23, %v2146_v22 }
  0x41   :  { %1764 = vmatprep.subr.msk.bf16.mxu0 %vm125_vm0, %v829_v29  ;;  %v238_v29 = vsel %vm125_vm0, %v52_v21, 0  ;;  %v61_v30 = vpack.c.bf16 %v42_v25, %v41_v11  ;;  %v29_v21 = vld [vmem:[%s2777_s0 + $0x60] sm:$0xff] }
  0x42   :  { %v1456_v11 = vld [vmem:[%s2777_s0 + $0x7a] sm:$0xff]  ;;  %v1457_v25 = vld [vmem:[%s2777_s0 + $0x82] sm:$0xff] }
  0x46   :  { %1569 = vmatmul.mubr.msk.bf16.vlgmr.msra.gmra.mrb[0].mxu1 %vm125_vm0, %v1890_v31  ;;  %v50_v31 = vpack.c.bf16 %v20_v44, %v19_v43  ;;  %v2203_v43 = vld [vmem:[%s2777_s0 + $0x4e] sm:$0xff] }
  0x47   :  { %1571 = vmatpush3.bf16.xpose.msra.mxu1 %v229_v39  ;;  %1641 = vmatmul.mubr.msk.bf16.vlgmr.msra.gmra.mrb[0].mxu0 %vm125_vm0, %v1901_v34  ;;  %v1464_v34 = vld [vmem:[%s2777_s0 + $0xba] sm:$0xff]  ;;  %v2187_v39 = vld [vmem:[%s2777_s0 + $0xc6] sm:$0xff] }
  0x48   :  { %1643 = vmatpush3.bf16.xpose.msra.mxu0 %v849_v41  ;;  %1733 = vmatprep.subr.msk.bf16.mxu1 %vm125_vm0, %v58_v40  ;;  %v232_v53 = vsel %vm125_vm0, %v50_v31, 0  ;;  %v831_v56 = vpack.c.bf16 %v1465_v52, %v1464_v34  ;;  %v2192_v40 = vld [vmem:[%s2777_s0 + $0xce] sm:$0xff]  ;;  %v53_v41 = vpack.c.bf16 %v26_v36, %v25_v35  ;;  %v44_v31 = vld [vmem:[%s2777_s0 + $0xd8] sm:$0xff]  ;;  %v827_v35 = vpack.c.bf16 %v1457_v25, %v1456_v11 }
  0x49   :  { %1765 = vmatprep.subr.msk.bf16.mxu0 %vm125_vm0, %v830_v42  ;;  %1586 = vmatprep.mubr.msk.bf16.mxu1 %vm125_vm0, %v2031_v45  ;;  %v2198_v42 = vld [vmem:[%s2777_s0 + $0x46] sm:$0xff]  ;;  %v521_v44 = vpack.c.bf16 %v2192_v40, %v2187_v39  ;;  %v62_v52 = vpack.c.bf16 %v44_v31, %v43_v47  ;;  %v47_v36 = vld [vmem:[%s2777_s0 + $0xf0] sm:$0xff] }
  0x4a   :  { %1658 = vmatprep.mubr.msk.bf16.mxu0 %vm125_vm0, %v2044_v48  ;;  %v513_v49 = vpack.c.bf16 %v2203_v43, %v2198_v42  ;;  %v241_v34 = vsel %vm125_vm0, %v53_v41, 0  ;;  %v1474_v41 = vld [vmem:[%s2777_s0 + $0x10a] sm:$0xff]  ;;  %v64_v31 = vpack.c.bf16 %v48_v37, %v47_v36  ;;  %v1338_v36 = vld [vmem:[%s2777_s0 + $0x15] sm:$0xff]  ;;  %v1339_v37 = vld [vmem:[%s2777_s0 + $0x1d] sm:$0xff] }
  0x4f   :  { %1573 = vmatpush3.bf16.xpose.msra.mxu1 %v232_v53  ;;  %v861_v53 = vsel %vm125_vm0, %v825_v46, 0  ;;  %v1475_v46 = vld [vmem:[%s2777_s0 + $0x112] sm:$0xff] }
  0x50   :  { %1645 = vmatpush3.bf16.xpose.msra.mxu0 %v852_v55  ;;  %1734 = vmatprep.subr.msk.bf16.mxu1 %vm125_vm0, %v59_v54  ;;  %v834_v54 = vpack.c.bf16 %v1471_v51, %v1470_v50  ;;  %v27_v55 = vld [vmem:[%s2777_s0 + $0x50] sm:$0xff]  ;;  %v867_v50 = vsel %vm125_vm0, %v827_v35, 0  ;;  %v836_v51 = vpack.c.bf16 %v1475_v46, %v1474_v41  ;;  %v986_v35 = vpack.c.bf16 %v2135_v20, %v2088_v62 }
  0x51   :  { %1766 = vmatprep.subr.msk.bf16.mxu0 %vm125_vm0, %v831_v56  ;;  %v28_v56 = vld [vmem:[%s2777_s0 + $0x58] sm:$0xff]  ;;  %v2391_v41 = vld [vmem:[%s2778_s1 + $0x10] sm:$0xff]  }
  0x52   :  { %v54_v63 = vpack.c.bf16 %v28_v56, %v27_v55  ;;  %v2398_v46 = vld [vmem:[%s2778_s1 + $0x30] sm:$0xff]  }
  0x54   :  { %v244_v16 = vsel %vm125_vm0, %v54_v63, 0  ;;  %v2351_v63 = vld [vmem:[%s2777_s0 + $0x9e] sm:$0xff] }
  0x57   :  { %1575 = vmatpush3.bf16.xpose.msra.mxu1 %v235_v12  ;;  %v46_v12 = vld [vmem:[%s2777_s0 + $0xe8] sm:$0xff] }
  0x58   :  { %1647 = vmatpush3.bf16.xpose.msra.mxu0 %v855_v14  ;;  %1735 = vmatprep.subr.msk.bf16.mxu1 %vm125_vm0, %v60_v13  ;;  %v514_v13 = vpack.c.bf16 %v2255_v6, %v2250_v5  ;;  %v1472_v14 = vld [vmem:[%s2777_s0 + $0xfa] sm:$0xff]  ;;  %v63_v17 = vpack.c.bf16 %v46_v12, %v45_v10  ;;  %v361_v10 = vpack.c.bf16 %v1353_v58, %v1352_v57  ;;  %v1341_v57 = vld [vmem:[%s2777_s0 + $0x2d] sm:$0xff] }
  0x59   :  { %1767 = vmatprep.subr.msk.bf16.mxu0 %vm125_vm0, %v832_v15  ;;  %v1473_v15 = vld [vmem:[%s2777_s0 + $0x102] sm:$0xff] }
  0x5a   :  { %v835_v19 = vpack.c.bf16 %v1473_v15, %v1472_v14  ;;  %v985_v14 = vpack.c.bf16 %v2083_v61, %v2351_v63  ;;  %v1336_v15 = vld [vmem:[%s2777_s0 + $0x5] sm:$0xff] }
  0x5f   :  { %1577 = vmatpush3.bf16.xpose.msra.mxu1 %v238_v29  ;;  %v55_v29 = vpack.c.bf16 %v30_v1, %v29_v21  ;;  %v1354_v21 = vld [vmem:[%s2777_s0 + $0x95] sm:$0xff]  ;;  %v1355_v1 = vld [vmem:[%s2777_s0 + $0x9d] sm:$0xff] }
  0x60   :  { %1649 = vmatpush3.bf16.xpose.msra.mxu0 %v858_v32  ;;  %1736 = vmatprep.subr.msk.bf16.mxu1 %vm125_vm0, %v61_v30  ;;  %v2302_v30 = vld [vmem:[%s2777_s0 + $0x66] sm:$0xff]  ;;  %v2307_v32 = vld [vmem:[%s2777_s0 + $0x6e] sm:$0xff]  ;;  %v362_v25 = vpack.c.bf16 %v1355_v1, %v1354_v21  ;;  %v1343_v21 = vld [vmem:[%s2777_s0 + $0x3d] sm:$0xff] }
  0x61   :  { %1768 = vmatprep.subr.msk.bf16.mxu0 %vm125_vm0, %v833_v33  ;;  %v523_v33 = vpack.c.bf16 %v2296_v28, %v2291_v27  ;;  %v515_v38 = vpack.c.bf16 %v2307_v32, %v2302_v30  ;;  %v247_v47 = vsel %vm125_vm0, %v55_v29, 0 }
  0x67   :  { %1579 = vmatpush3.bf16.xpose.msra.mxu1 %v241_v34  ;;  %v31_v34 = vld [vmem:[%s2777_s0 + $0x70] sm:$0xff] }
  0x68   :  { %1651 = vmatpush3.bf16.xpose.msra.mxu0 %v861_v53  ;;  %1737 = vmatprep.subr.msk.bf16.mxu1 %vm125_vm0, %v62_v52  ;;  %v32_v52 = vld [vmem:[%s2777_s0 + $0x78] sm:$0xff]  ;;  %v1458_v53 = vld [vmem:[%s2777_s0 + $0x8a] sm:$0xff] }
  0x69   :  { %1769 = vmatprep.subr.msk.bf16.mxu0 %vm125_vm0, %v834_v54  ;;  %v1459_v54 = vld [vmem:[%s2777_s0 + $0x92] sm:$0xff]  ;;  %v56_v55 = vpack.c.bf16 %v32_v52, %v31_v34 }
  0x6a   :  { %v828_v56 = vpack.c.bf16 %v1459_v54, %v1458_v53  ;;  %v1256_v53 = vld [vmem:[%s2779_s2 + $0x8] sm:$0xff] }
  0x6b   :  { %v250_v9 = vsel %vm125_vm0, %v56_v55, 0  ;;  %v987_v55 = vpack.c.bf16 %v2187_v39, %v2140_v0 }
  0x6c   :  { %v870_v12 = vsel %vm125_vm0, %v828_v56, 0  ;;  %v1340_v56 = vld [vmem:[%s2777_s0 + $0x25] sm:$0xff] }
  0x6d   :  { %v355_v58 = vpack.c.bf16 %v1341_v57, %v1340_v56  ;;  %v1346_v57 = vld [vmem:[%s2777_s0 + $0x55] sm:$0xff] }
  0x6f   :  { %1581 = vmatpush3.bf16.xpose.msra.mxu1 %v244_v16  ;;  %v1337_v16 = vld [vmem:[%s2777_s0 + $0xd] sm:$0xff] }
  0x70   :  { %1653 = vmatpush3.bf16.xpose.msra.mxu0 %v864_v18  ;;  %1738 = vmatprep.subr.msk.bf16.mxu1 %vm125_vm0, %v63_v17  ;;  %v2366_v17 = vld [vmem:[%s2777_s0 + $0x1e] sm:$0xff]  ;;  %v353_v18 = vpack.c.bf16 %v1337_v16, %v1336_v15 }
  0x71   :  { %1770 = vmatprep.subr.msk.bf16.mxu0 %vm125_vm0, %v835_v19  ;;  %v977_v19 = vpack.c.bf16 %v2094_v2, %v2366_v17 }
  0x72   :  { %v381_v11 = vsel %vm125_vm0, %v353_v18, 0  ;;  %v988_v18 = vpack.c.bf16 %v2239_v59, %v2192_v40 }
  0x73   :  { %v1005_v29 = vsel %vm125_vm0, %v977_v19, 0  ;;  %v1342_v19 = vld [vmem:[%s2777_s0 + $0x35] sm:$0xff] }
  0x74   :  { %v356_v1 = vpack.c.bf16 %v1343_v21, %v1342_v19 }
  0x77   :  { %1583 = vmatpush3.bf16.xpose.msra.mxu1 %v247_v47  ;;  %v354_v47 = vpack.c.bf16 %v1339_v37, %v1338_v36 }
  0x78   :  { %1655 = vmatpush3.bf16.xpose.msra.mxu0 %v867_v50  ;;  %1739 = vmatprep.subr.msk.bf16.mxu1 %vm125_vm0, %v64_v31  ;;  %v1255_v31 = vld [vmem:[%s2779_s2] sm:$0xff] }
  0x79   :  { %1771 = vmatprep.subr.msk.bf16.mxu0 %vm125_vm0, %v836_v51  ;;  %v1356_v50 = vld [vmem:[%s2777_s0 + $0xa5] sm:$0xff]  ;;  %v1798_v51 = vmov 0   ;;  %v384_v34 = vsel %vm125_vm0, %v354_v47, 0  ;;  %v989_v47 = vpack.c.bf16 %v2291_v27, %v2244_v60 }
  0x7a   :  { %1789 = vset.pattern.permute.xlu0 %v1798_v51  ;;  %v1362_v51 = vld [vmem:[%s2777_s0 + $0xd5] sm:$0xff] }
  0x7b   :  { %1259 = vperm.xlu0 %1789, %v1255_v31   ;;  %v1344_v31 = vld [vmem:[%s2777_s0 + $0x45] sm:$0xff] }
  0x7f   :  { %1585 = vmatpush3.bf16.xpose.msra.mxu1 %v250_v9  ;;  %1264 = vperm.xlu0 %1789, %v1256_v53   ;;  %v979_v9 = vpack.c.bf16 %v2198_v42, %v2151_v23  ;;  %v1542_v23 = vld [vmem:[%s2777_s0 + $0xef] sm:$0xff] }
  0x80   :  { %1657 = vmatpush3.bf16.xpose.msra.mxu0 %v870_v12  ;;  %1740 = vmatprep.subr.msk.bf16.mxu1 %vm125_vm0, %v361_v10  ;;  %v1358_v10 = vld [vmem:[%s2777_s0 + $0xb5] sm:$0xff]  ;;  %v1359_v12 = vld [vmem:[%s2777_s0 + $0xbd] sm:$0xff] }
  0x81   :  { %1772 = vmatprep.subr.msk.bf16.mxu0 %vm125_vm0, %v985_v14  ;;  %v387_v14 = vsel %vm125_vm0, %v355_v58, 0  ;;  %v364_v15 = vpack.c.bf16 %v1359_v12, %v1358_v10  ;;  %v1011_v16 = vsel %vm125_vm0, %v979_v9, 0  ;;  %v1347_v58 = vld [vmem:[%s2777_s0 + $0x5d] sm:$0xff] }
  0x82   :  { %v2500_v9 = vld [vmem:[%s2777_s0 + $0x76] sm:$0xff]  ;;  %v358_v10 = vpack.c.bf16 %v1347_v58, %v1346_v57  ;;  %v1494_v57 = vld [vmem:[%s2777_s0 + $0x8e] sm:$0xff] }
  0x83   :  { %v982_v12 = vpack.c.bf16 %v2500_v9, %v2307_v32  ;;  %v1495_v58 = vld [vmem:[%s2777_s0 + $0x96] sm:$0xff] }
  0x84   :  { %v396_v19 = vsel %vm125_vm0, %v358_v10, 0 }
  0x86   :  { %1587 = vmatmul.mubr.msk.bf16.vlgmr.msra.gmra.mrb[0].mxu1 %vm125_vm0, %v2031_v45  ;;  %v978_v45 = vpack.c.bf16 %v2146_v22, %v2099_v3  ;;  %v1540_v3 = vld [vmem:[%s2777_s0 + $0xdf] sm:$0xff] }
  0x87   :  { %1589 = vmatpush3.bf16.xpose.msra.mxu1 %v381_v11  ;;  %1659 = vmatmul.mubr.msk.bf16.vlgmr.msra.gmra.mrb[0].mxu0 %vm125_vm0, %v2044_v48  ;;  %v1357_v48 = vld [vmem:[%s2777_s0 + $0xad] sm:$0xff]  ;;  %v980_v11 = vpack.c.bf16 %v2250_v5, %v2203_v43  ;;  %v1544_v43 = vld [vmem:[%s2777_s0 + $0xff] sm:$0xff] }
  0x88   :  { %1661 = vmatpush3.bf16.xpose.msra.mxu0 %v1005_v29  ;;  %1741 = vmatprep.subr.msk.bf16.mxu1 %vm125_vm0, %v362_v25  ;;  %v363_v52 = vpack.c.bf16 %v1357_v48, %v1356_v50  ;;  %v1008_v54 = vsel %vm125_vm0, %v978_v45, 0  ;;  %v1360_v25 = vld [vmem:[%s2777_s0 + $0xc5] sm:$0xff]  ;;  %v1361_v29 = vld [vmem:[%s2777_s0 + $0xcd] sm:$0xff]  ;;  %v981_v48 = vpack.c.bf16 %v2302_v30, %v2255_v6 }
  0x89   :  { %1773 = vmatprep.subr.msk.bf16.mxu0 %vm125_vm0, %v986_v35  ;;  %1604 = vmatprep.mubr.msk.bf16.mxu1 %vm125_vm0, %v2391_v41  ;;  %v390_v35 = vsel %vm125_vm0, %v356_v1, 0  ;;  %v365_v36 = vpack.c.bf16 %v1361_v29, %v1360_v25  ;;  %v1014_v37 = vsel %vm125_vm0, %v980_v11, 0  ;;  %v1345_v45 = vld [vmem:[%s2777_s0 + $0x4d] sm:$0xff]  ;;  %v1020_v1 = vsel %vm125_vm0, %v982_v12, 0  ;;  %v1348_v25 = vld [vmem:[%s2777_s0 + $0x65] sm:$0xff] }
  0x8a   :  { %1676 = vmatprep.mubr.msk.bf16.mxu0 %vm125_vm0, %v2398_v46  ;;  %v357_v50 = vpack.c.bf16 %v1345_v45, %v1344_v31  ;;  %v1349_v29 = vld [vmem:[%s2777_s0 + $0x6d] sm:$0xff]  ;;  %v1366_v31 = vld [vmem:[%s2777_s0 + $0xf5] sm:$0xff]  ;;  %v1367_v45 = vld [vmem:[%s2777_s0 + $0xfd] sm:$0xff]  ;;  %v984_v12 = vpack.c.bf16 %v1495_v58, %v1494_v57 }
  0x8b   :  { %v1546_v6 = vld [vmem:[%s2777_s0 + $0x10f] sm:$0xff] }
  0x8c   :  { %v393_v53 = vsel %vm125_vm0, %v357_v50, 0  ;;  %v1510_v50 = vld [vmem:[%s2777_s0 + $0x10e] sm:$0xff] }
  0x8f   :  { %1591 = vmatpush3.bf16.xpose.msra.mxu1 %v384_v34  ;;  %v1363_v34 = vld [vmem:[%s2777_s0 + $0xdd] sm:$0xff] }
  0x90   :  { %1663 = vmatpush3.bf16.xpose.msra.mxu0 %v1008_v54  ;;  %1742 = vmatprep.subr.msk.bf16.mxu1 %vm125_vm0, %v363_v52  ;;  %v2485_v52 = vld [vmem:[%s2777_s0 + $0xf6] sm:$0xff]  ;;  %v366_v54 = vpack.c.bf16 %v1363_v34, %v1362_v51  ;;  %v368_v34 = vpack.c.bf16 %v1367_v45, %v1366_v31 }
  0x91   :  { %1774 = vmatprep.subr.msk.bf16.mxu0 %vm125_vm0, %v987_v55  ;;  %v1017_v55 = vsel %vm125_vm0, %v981_v48, 0  ;;  %v990_v56 = vpack.c.bf16 %v2485_v52, %v2296_v28  ;;  %v1511_v48 = vld [vmem:[%s2777_s0 + $0x116] sm:$0xff] }
  0x92   :  { %v1534_v31 = vld [vmem:[%s2777_s0 + $0xaf] sm:$0xff]  ;;  %v1535_v45 = vld [vmem:[%s2777_s0 + $0xb7] sm:$0xff] }
  0x97   :  { %1593 = vmatpush3.bf16.xpose.msra.mxu1 %v387_v14  ;;  %v1364_v14 = vld [vmem:[%s2777_s0 + $0xe5] sm:$0xff] }
  0x98   :  { %1665 = vmatpush3.bf16.xpose.msra.mxu0 %v1011_v16  ;;  %1743 = vmatprep.subr.msk.bf16.mxu1 %vm125_vm0, %v364_v15  ;;  %v1365_v15 = vld [vmem:[%s2777_s0 + $0xed] sm:$0xff]  ;;  %v2515_v16 = vld [vmem:[%s2777_s0 + $0xfe] sm:$0xff] }
  0x99   :  { %1775 = vmatprep.subr.msk.bf16.mxu0 %vm125_vm0, %v988_v18  ;;  %v1509_v18 = vld [vmem:[%s2777_s0 + $0x106] sm:$0xff]  ;;  %v367_v21 = vpack.c.bf16 %v1365_v15, %v1364_v14  ;;  %v524_v27 = vpack.c.bf16 %v2515_v16, %v2485_v52 }
  0x9a   :  { %v991_v11 = vpack.c.bf16 %v1509_v18, %v2515_v16  ;;  %v1532_v14 = vld [vmem:[%s2777_s0 + $0x9f] sm:$0xff]  ;;  %v1533_v15 = vld [vmem:[%s2777_s0 + $0xa7] sm:$0xff] }
  0x9f   :  { %1595 = vmatpush3.bf16.xpose.msra.mxu1 %v390_v35  ;;  %v2532_v35 = vld [vmem:[%s2777_s0 + $0x7e] sm:$0xff] }
  0xa0   :  { %1667 = vmatpush3.bf16.xpose.msra.mxu0 %v1014_v37  ;;  %1744 = vmatprep.subr.msk.bf16.mxu1 %vm125_vm0, %v365_v36  ;;  %v1493_v36 = vld [vmem:[%s2777_s0 + $0x86] sm:$0xff]  ;;  %v359_v37 = vpack.c.bf16 %v1349_v29, %v1348_v25  ;;  %v1373_v25 = vld [vmem:[%s2777_s0 + $0xe] sm:$0xff]  ;;  %v516_v30 = vpack.c.bf16 %v2532_v35, %v2500_v9 }
  0xa1   :  { %1776 = vmatprep.subr.msk.bf16.mxu0 %vm125_vm0, %v989_v47  ;;  %v983_v47 = vpack.c.bf16 %v1493_v36, %v2532_v35  ;;  %v1516_v29 = vld [vmem:[%s2777_s0 + $0x1f] sm:$0xff] }
  0xa2   :  { %v399_v51 = vsel %vm125_vm0, %v359_v37, 0  ;;  %v1517_v37 = vld [vmem:[%s2777_s0 + $0x27] sm:$0xff] }
  0xa7   :  { %1597 = vmatpush3.bf16.xpose.msra.mxu1 %v393_v53  ;;  %v1023_v53 = vsel %vm125_vm0, %v983_v47, 0  ;;  %v1133_v47 = vpack.c.bf16 %v1517_v37, %v1516_v29  ;;  %v1525_v29 = vld [vmem:[%s2777_s0 + $0x67] sm:$0xff]  ;;  %v549_v37 = vsel %vm125_vm0, %v513_v49, 0 }
  0xa8   :  { %1669 = vmatpush3.bf16.xpose.msra.mxu0 %v1017_v55  ;;  %1745 = vmatprep.subr.msk.bf16.mxu1 %vm125_vm0, %v366_v54  ;;  %v992_v54 = vpack.c.bf16 %v1511_v48, %v1510_v50  ;;  %v1350_v55 = vld [vmem:[%s2777_s0 + $0x75] sm:$0xff]  ;;  %v518_v48 = vpack.c.bf16 %v2351_v63, %v1495_v58  ;;  %v1536_v58 = vld [vmem:[%s2777_s0 + $0xbf] sm:$0xff]  ;;  %v1545_v49 = vld [vmem:[%s2777_s0 + $0x107] sm:$0xff] }
  0xa9   :  { %1777 = vmatprep.subr.msk.bf16.mxu0 %vm125_vm0, %v990_v56  ;;  %v1351_v56 = vld [vmem:[%s2777_s0 + $0x7d] sm:$0xff]  ;;  %v1147_v60 = vpack.c.bf16 %v1545_v49, %v1544_v43 }
  0xaa   :  { %v360_v10 = vpack.c.bf16 %v1351_v56, %v1350_v55  ;;  %v1518_v55 = vld [vmem:[%s2777_s0 + $0x2f] sm:$0xff]  ;;  %v1519_v63 = vld [vmem:[%s2777_s0 + $0x37] sm:$0xff] }
  0xab   :  { %v2618_v56 = vld [vmem:[%s2778_s1 + $0x38] sm:$0xff]  }
  0xac   :  { %v402_v18 = vsel %vm125_vm0, %v360_v10, 0  ;;  %v1537_v10 = vld [vmem:[%s2777_s0 + $0xc7] sm:$0xff] }
  0xaf   :  { %1599 = vmatpush3.bf16.xpose.msra.mxu1 %v396_v19  ;;  %v517_v19 = vpack.c.bf16 %v1494_v57, %v1493_v36  ;;  %v1134_v57 = vpack.c.bf16 %v1519_v63, %v1518_v55 }
  0xb0   :  { %1671 = vmatpush3.bf16.xpose.msra.mxu0 %v1020_v1  ;;  %1746 = vmatprep.subr.msk.bf16.mxu1 %vm125_vm0, %v367_v21  ;;  %v1026_v21 = vsel %vm125_vm0, %v984_v12, 0  ;;  %v1141_v1 = vpack.c.bf16 %v1533_v15, %v1532_v14  ;;  %v1143_v12 = vpack.c.bf16 %v1537_v10, %v1536_v58  ;;  %v1520_v14 = vld [vmem:[%s2777_s0 + $0x3f] sm:$0xff]  ;;  %v1521_v15 = vld [vmem:[%s2777_s0 + $0x47] sm:$0xff] }
  0xb1   :  { %1778 = vmatprep.subr.msk.bf16.mxu0 %vm125_vm0, %v991_v11  ;;  %v1372_v11 = vld [vmem:[%s2777_s0 + $0x6] sm:$0xff] }
  0xb2   :  { %v509_v36 = vpack.c.bf16 %v1373_v25, %v1372_v11  ;;  %v1523_v11 = vld [vmem:[%s2777_s0 + $0x57] sm:$0xff]  ;;  %v546_v25 = vsel %vm125_vm0, %v512_v26, 0 }
  0xb3   :  { %v1543_v26 = vld [vmem:[%s2777_s0 + $0xf7] sm:$0xff] }
  0xb4   :  { %v537_v50 = vsel %vm125_vm0, %v509_v36, 0  ;;  %v1146_v40 = vpack.c.bf16 %v1543_v26, %v1542_v23  ;;  %v1527_v36 = vld [vmem:[%s2777_s0 + $0x77] sm:$0xff] }
  0xb7   :  { %1601 = vmatpush3.bf16.xpose.msra.mxu1 %v399_v51  ;;  %v1161_v51 = vsel %vm125_vm0, %v1133_v47, 0  ;;  %v552_v47 = vsel %vm125_vm0, %v514_v13, 0  ;;  %v1547_v13 = vld [vmem:[%s2777_s0 + $0x117] sm:$0xff] }
  0xb8   :  { %1673 = vmatpush3.bf16.xpose.msra.mxu0 %v1023_v53  ;;  %1747 = vmatprep.subr.msk.bf16.mxu1 %vm125_vm0, %v368_v34  ;;  %v1142_v34 = vpack.c.bf16 %v1535_v45, %v1534_v31  ;;  %v1374_v53 = vld [vmem:[%s2777_s0 + $0x16] sm:$0xff]  ;;  %v1529_v31 = vld [vmem:[%s2777_s0 + $0x87] sm:$0xff]  ;;  %v555_v45 = vsel %vm125_vm0, %v515_v38, 0  ;;  %v558_v38 = vsel %vm125_vm0, %v516_v30, 0 }
  0xb9   :  { %1779 = vmatprep.subr.msk.bf16.mxu0 %vm125_vm0, %v992_v54  ;;  %v2605_v54 = vld [vmem:[%s2778_s1 + $0x18] sm:$0xff]  }
  0xbf   :  { %1603 = vmatpush3.bf16.xpose.msra.mxu1 %v402_v18  ;;  %v1135_v18 = vpack.c.bf16 %v1521_v15, %v1520_v14 }
  0xc0   :  { %1675 = vmatpush3.bf16.xpose.msra.mxu0 %v1026_v21  ;;  %1748 = vmatprep.subr.msk.bf16.mxu1 %vm125_vm0, %v517_v19  ;;  %v1538_v19 = vld [vmem:[%s2777_s0 + $0xcf] sm:$0xff]  ;;  %v1539_v21 = vld [vmem:[%s2777_s0 + $0xd7] sm:$0xff] }
  0xc1   :  { %1780 = vmatprep.subr.msk.bf16.mxu0 %vm125_vm0, %v1141_v1  ;;  %v543_v1 = vsel %vm125_vm0, %v511_v8, 0  ;;  %v1167_v61 = vsel %vm125_vm0, %v1135_v18, 0  ;;  %v1144_v62 = vpack.c.bf16 %v1539_v21, %v1538_v19  ;;  %v1541_v8 = vld [vmem:[%s2777_s0 + $0xe7] sm:$0xff] }
  0xc2   :  { %v1145_v0 = vpack.c.bf16 %v1541_v8, %v1540_v3 }
  0xc6   :  { %1605 = vmatmul.mubr.msk.bf16.vlgmr.msra.gmra.mrb[0].mxu1 %vm125_vm0, %v2391_v41  ;;  %v510_v41 = vpack.c.bf16 %v2366_v17, %v1374_v53  ;;  %v1164_v17 = vsel %vm125_vm0, %v1134_v57, 0 }
  0xc7   :  { %1607 = vmatpush3.bf16.xpose.msra.mxu1 %v537_v50  ;;  %1677 = vmatmul.mubr.msk.bf16.vlgmr.msra.gmra.mrb[0].mxu0 %vm125_vm0, %v2398_v46  ;;  %v1530_v50 = vld [vmem:[%s2777_s0 + $0x8f] sm:$0xff] }
  0xc8   :  { %1679 = vmatpush3.bf16.xpose.msra.mxu0 %v1161_v51  ;;  %1749 = vmatprep.subr.msk.bf16.mxu1 %vm125_vm0, %v518_v48  ;;  %v540_v46 = vsel %vm125_vm0, %v510_v41, 0  ;;  %v1531_v48 = vld [vmem:[%s2777_s0 + $0x97] sm:$0xff] }
  0xc9   :  { %1781 = vmatprep.subr.msk.bf16.mxu0 %vm125_vm0, %v1142_v34  ;;  %1622 = vmatprep.mubr.msk.bf16.mxu1 %vm125_vm0, %v2605_v54  ;;  %v1140_v32 = vpack.c.bf16 %v1531_v48, %v1530_v50 }
  0xca   :  { %1694 = vmatprep.mubr.msk.bf16.mxu0 %vm125_vm0, %v2618_v56 }
  0xcb   :  { %v1182_v52 = vsel %vm125_vm0, %v1140_v32, 0 }
  0xcf   :  { %1609 = vmatpush3.bf16.xpose.msra.mxu1 %v540_v46 }
  0xd0   :  { %1681 = vmatpush3.bf16.xpose.msra.mxu0 %v1164_v17  ;;  %1750 = vmatprep.subr.msk.bf16.mxu1 %vm125_vm0, %v519_v4  ;;  %v1522_v4 = vld [vmem:[%s2777_s0 + $0x4f] sm:$0xff] }
  0xd1   :  { %1782 = vmatprep.subr.msk.bf16.mxu0 %vm125_vm0, %v1143_v12  ;;  %v1136_v2 = vpack.c.bf16 %v1523_v11, %v1522_v4 }
  0xd3   :  { %v1170_v20 = vsel %vm125_vm0, %v1136_v2, 0 }
  0xd7   :  { %1611 = vmatpush3.bf16.xpose.msra.mxu1 %v543_v1 }
  0xd8   :  { %1683 = vmatpush3.bf16.xpose.msra.mxu0 %v1167_v61  ;;  %1751 = vmatprep.subr.msk.bf16.mxu1 %vm125_vm0, %v520_v24  ;;  %v1524_v24 = vld [vmem:[%s2777_s0 + $0x5f] sm:$0xff] }
  0xd9   :  { %1783 = vmatprep.subr.msk.bf16.mxu0 %vm125_vm0, %v1144_v62  ;;  %v1137_v22 = vpack.c.bf16 %v1525_v29, %v1524_v24 }
  0xdb   :  { %v1173_v39 = vsel %vm125_vm0, %v1137_v22, 0 }
  0xdf   :  { %1613 = vmatpush3.bf16.xpose.msra.mxu1 %v546_v25 }
  0xe0   :  { %1685 = vmatpush3.bf16.xpose.msra.mxu0 %v1170_v20  ;;  %1752 = vmatprep.subr.msk.bf16.mxu1 %vm125_vm0, %v521_v44  ;;  %v1526_v44 = vld [vmem:[%s2777_s0 + $0x6f] sm:$0xff] }
  0xe1   :  { %1784 = vmatprep.subr.msk.bf16.mxu0 %vm125_vm0, %v1145_v0  ;;  %v1138_v42 = vpack.c.bf16 %v1527_v36, %v1526_v44 }
  0xe3   :  { %v1176_v59 = vsel %vm125_vm0, %v1138_v42, 0 }
  0xe7   :  { %1615 = vmatpush3.bf16.xpose.msra.mxu1 %v549_v37 }
  0xe8   :  { %1687 = vmatpush3.bf16.xpose.msra.mxu0 %v1173_v39  ;;  %1753 = vmatprep.subr.msk.bf16.mxu1 %vm125_vm0, %v522_v7  ;;  %v1528_v7 = vld [vmem:[%s2777_s0 + $0x7f] sm:$0xff] }
  0xe9   :  { %1785 = vmatprep.subr.msk.bf16.mxu0 %vm125_vm0, %v1146_v40  ;;  %v1139_v5 = vpack.c.bf16 %v1529_v31, %v1528_v7 }
  0xeb   :  { %v1179_v28 = vsel %vm125_vm0, %v1139_v5, 0 }
  0xef   :  { %1617 = vmatpush3.bf16.xpose.msra.mxu1 %v552_v47 }
  0xf0   :  { %1689 = vmatpush3.bf16.xpose.msra.mxu0 %v1176_v59  ;;  %1754 = vmatprep.subr.msk.bf16.mxu1 %vm125_vm0, %v523_v33  ;;  %v1148_v33 = vpack.c.bf16 %v1547_v13, %v1546_v6 }
  0xf1   :  { %1786 = vmatprep.subr.msk.bf16.mxu0 %vm125_vm0, %v1147_v60 }
  0xf7   :  { %1619 = vmatpush3.bf16.xpose.msra.mxu1 %v555_v45 }
  0xf8   :  { %1691 = vmatpush3.bf16.xpose.msra.mxu0 %v1179_v28  ;;  %1755 = vmatprep.subr.msk.bf16.mxu1 %vm125_vm0, %v524_v27 }
  0xf9   :  { %1787 = vmatprep.subr.msk.bf16.mxu0 %vm125_vm0, %v1148_v33 }
  0xfa   :  { %v1260_v16 = vpop.permute.xlu0 %1259 }
  0xfe   :  { %v1265_v17 = vpop.permute.xlu0 %1264 }
  0xff   :  { %1621 = vmatpush3.bf16.xpose.msra.mxu1 %v558_v38 }
 0x100   :  { %1693 = vmatpush3.bf16.xpose.msra.mxu0 %v1182_v52 }
 0x106   :  { %1623 = vmatmul.mubr.msk.bf16.vlgmr.msra.gmra.mrb[0].mxu1 %vm125_vm0, %v2605_v54 }
 0x107   :  { %1695 = vmatmul.mubr.msk.bf16.vlgmr.msra.gmra.mrb[0].mxu0 %vm125_vm0, %v2618_v56 }
 0x1d9   :  { %v618_v51 = vpop.f32.mrb[0].mxu1 }
 0x1da   :  { %v1242_v34 = vpop.f32.mrb[0].mxu0  ;;  %v620_v53 = vpop.f32.mrb[1].mxu1 }
 0x1db   :  { %v1696_v9 = vadd.f32 %v1242_v34, %v618_v51  ;;  %v1244_v35 = vpop.f32.mrb[1].mxu0  ;;  %v622_v55 = vpop.f32.mrb[2].mxu1 }
 0x1dc   :  { %v1697_v63 = vadd.f32 %v1244_v35, %v620_v53  ;;  %v1246_v41 = vpop.f32.mrb[2].mxu0  ;;  %v624_v57 = vpop.f32.mrb[3].mxu1 }
 0x1dd   :  { %v1267_v58 = vadd.f32 %v1696_v9, %v1260_v16  ;;  %v1698_v10 = vadd.f32 %v1246_v41, %v622_v55  ;;  %v1248_v46 = vpop.f32.mrb[3].mxu0 }
 0x1de   :  { %v1268_v12 = vadd.f32 %v1697_v63, %v1260_v16  ;;  %v1699_v14 = vadd.f32 %v1248_v46, %v624_v57 }
 0x1df   :  { %vm1271_vm1 = vcmp.ge.f32.partialorder %v1267_v58, 0.0  ;;  %v1275_v54 = vmul.f32 0.01, %v1267_v58  ;;  %v1269_v15 = vadd.f32 %v1698_v10, %v1265_v17 }
 0x1e0   :  { %vm1272_vm2 = vcmp.ge.f32.partialorder %v1268_v12, 0.0  ;;  %v1276_v56 = vmul.f32 0.01, %v1268_v12  ;;  %v1270_v18 = vadd.f32 %v1699_v14, %v1265_v17 }
 0x1e1   :  { %v1279_v19 = vsel %vm1271_vm1, %v1267_v58, %v1275_v54  ;;  %vm1273_vm3 = vcmp.ge.f32.partialorder %v1269_v15, 0.0  ;;  %v1277_v21 = vmul.f32 0.01, %v1269_v15 }
 0x1e2   :  { %1283 = vst [vmem:[%s2780_s3] sm:$0xff] %v1279_v19  ;;  %v1280_v1 = vsel %vm1272_vm2, %v1268_v12, %v1276_v56  ;;  %vm1274_vm4 = vcmp.ge.f32.partialorder %v1270_v18, 0.0  ;;  %v1278_v61 = vmul.f32 0.01, %v1270_v18 }
 0x1e3   :  { %1284 = vst [vmem:[%s2780_s3 + $0x8] sm:$0xff] %v1280_v1  ;;  %v1281_v62 = vsel %vm1273_vm3, %v1269_v15, %v1277_v21 }
 0x1e4   :  { %1285 = vst [vmem:[%s2780_s3 + $0x10] sm:$0xff] %v1281_v62  ;;  %v1282_v4 = vsel %vm1274_vm4, %v1270_v18, %v1278_v61 }
 0x1e5   :  { %1286 = vst [vmem:[%s2780_s3 + $0x18] sm:$0xff] %v1282_v4 }

// kernel: video_encoder_forward.7
= control target key start
LH: loop header
LB: loop body
LE: loop exit
PB: predicated region body
PF: predicated region fallthrough
CT: control target
= control target key end

     0   :  { %v1045_v0 = vmov 0.0   ;;  %vm1046_vm0 = vmmov 0   ;;  %s1628_s0 = inlined_call_operand.vmem [shape: f32[141,128], index: 0, kind: input, shape index: {}]   ;;  %s1629_s1 = inlined_call_operand.vmem [shape: bf16[8,16,128], index: 1, kind: input, shape index: {}]   ;;  %s1630_s2 = inlined_call_operand.vmem [shape: f32[16,1], index: 2, kind: input, shape index: {}]   ;;  %s1631_s3 = inlined_call_operand.vmem [shape: f32[16,128], index: 3, kind: output, shape index: {}]  }
   0x1   :  { %873 = vmatprep.subr.bf16.mxu0 %v1045_v0  ;;  %893 = vmatprep.subr.bf16.mxu1 %v1045_v0  ;;  %v667_v1 = vld [vmem:[%s1628_s0 + $0x1] sm:$0xff]  ;;  %v1076_v2 = vld [vmem:[%s1628_s0 + $0x9] sm:$0xff]  ;;  %v1088_v6 = vld [vmem:[%s1628_s0 + $0x11] sm:$0xff] }
   0x2   :  { %v17_v3 = vld [vmem:[%s1628_s0] sm:$0xff]  ;;  %v61_v4 = vpack.c.bf16 %v1076_v2, %v667_v1  ;;  %v18_v5 = vld [vmem:[%s1628_s0 + $0x8] sm:$0xff]  ;;  %889 = vmatprep.mubr.msk.bf16.mxu0 %vm1046_vm0, %v1045_v0  ;;  %909 = vmatprep.mubr.msk.bf16.mxu1 %vm1046_vm0, %v1045_v0  ;;  %v340_v8 = vpack.c.bf16 %v1088_v6, %v1076_v2  ;;  %v19_v11 = vld [vmem:[%s1628_s0 + $0x10] sm:$0xff] }
   0x3   :  { %v33_v7 = vpack.c.bf16 %v18_v5, %v17_v3  ;;  %v1100_v9 = vld [vmem:[%s1628_s0 + $0x19] sm:$0xff]  ;;  %v1105_v10 = vld [vmem:[%s1628_s0 + $0x21] sm:$0xff]  ;;  %v1122_v16 = vld [vmem:[%s1628_s0 + $0x29] sm:$0xff] }
   0x4   :  { %874 = vmatpush3.bf16.xpose.msra.mxu0 %v61_v4  ;;  %v20_v12 = vld [vmem:[%s1628_s0 + $0x18] sm:$0xff]  ;;  %v341_v13 = vpack.c.bf16 %v1105_v10, %v1100_v9  ;;  %v62_v14 = vpack.c.bf16 %v1100_v9, %v1088_v6  ;;  %v21_v18 = vld [vmem:[%s1628_s0 + $0x20] sm:$0xff]  ;;  %v22_v19 = vld [vmem:[%s1628_s0 + $0x28] sm:$0xff]  ;;  %v63_v21 = vpack.c.bf16 %v1122_v16, %v1105_v10 }
   0x5   :  { %894 = vmatpush3.bf16.xpose.msra.mxu1 %v33_v7  ;;  %875 = vmatprep.subr.bf16.mxu0 %v1045_v0  ;;  %v34_v15 = vpack.c.bf16 %v20_v12, %v19_v11  ;;  %v1127_v17 = vld [vmem:[%s1628_s0 + $0x31] sm:$0xff]  ;;  %v35_v22 = vpack.c.bf16 %v22_v19, %v21_v18  ;;  %v1144_v23 = vld [vmem:[%s1628_s0 + $0x39] sm:$0xff]  ;;  %v1149_v24 = vld [vmem:[%s1628_s0 + $0x41] sm:$0xff] }
   0x6   :  { %895 = vmatprep.subr.bf16.mxu1 %v1045_v0  ;;  %v342_v20 = vpack.c.bf16 %v1127_v17, %v1122_v16  ;;  %v23_v25 = vld [vmem:[%s1628_s0 + $0x30] sm:$0xff]  ;;  %v24_v26 = vld [vmem:[%s1628_s0 + $0x38] sm:$0xff]  ;;  %v343_v27 = vpack.c.bf16 %v1149_v24, %v1144_v23  ;;  %v64_v28 = vpack.c.bf16 %v1144_v23, %v1127_v17  ;;  %v25_v31 = vld [vmem:[%s1628_s0 + $0x40] sm:$0xff] }
   0x7   :  { %v36_v29 = vpack.c.bf16 %v24_v26, %v23_v25  ;;  %v1165_v30 = vld [vmem:[%s1628_s0 + $0x49] sm:$0xff]  ;;  %v1176_v33 = vld [vmem:[%s1628_s0 + $0x51] sm:$0xff]  ;;  %v1188_v37 = vld [vmem:[%s1628_s0 + $0x59] sm:$0xff] }
   0x8   :  { %v26_v32 = vld [vmem:[%s1628_s0 + $0x48] sm:$0xff]  ;;  %v344_v34 = vpack.c.bf16 %v1176_v33, %v1165_v30  ;;  %v65_v35 = vpack.c.bf16 %v1165_v30, %v1149_v24  ;;  %v27_v39 = vld [vmem:[%s1628_s0 + $0x50] sm:$0xff]  ;;  %v28_v40 = vld [vmem:[%s1628_s0 + $0x58] sm:$0xff]  ;;  %v66_v42 = vpack.c.bf16 %v1188_v37, %v1176_v33 }
   0x9   :  { %v37_v36 = vpack.c.bf16 %v26_v32, %v25_v31  ;;  %v1193_v38 = vld [vmem:[%s1628_s0 + $0x61] sm:$0xff]  ;;  %v38_v43 = vpack.c.bf16 %v28_v40, %v27_v39  ;;  %v1210_v44 = vld [vmem:[%s1628_s0 + $0x69] sm:$0xff]  ;;  %v1215_v45 = vld [vmem:[%s1628_s0 + $0x71] sm:$0xff] }
   0xa   :  { %v345_v41 = vpack.c.bf16 %v1193_v38, %v1188_v37  ;;  %v29_v46 = vld [vmem:[%s1628_s0 + $0x60] sm:$0xff]  ;;  %v30_v47 = vld [vmem:[%s1628_s0 + $0x68] sm:$0xff]  ;;  %v346_v48 = vpack.c.bf16 %v1215_v45, %v1210_v44  ;;  %v67_v49 = vpack.c.bf16 %v1210_v44, %v1193_v38  ;;  %v31_v52 = vld [vmem:[%s1628_s0 + $0x70] sm:$0xff] }
   0xb   :  { %v39_v50 = vpack.c.bf16 %v30_v47, %v29_v46  ;;  %v1232_v51 = vld [vmem:[%s1628_s0 + $0x79] sm:$0xff]  ;;  %v687_v56 = vld [vmem:[%s1628_s0 + $0x3] sm:$0xff]  ;;  %v688_v57 = vld [vmem:[%s1628_s0 + $0xb] sm:$0xff] }
   0xc   :  { %876 = vmatpush3.bf16.xpose.msra.mxu0 %v62_v14  ;;  %v32_v53 = vld [vmem:[%s1628_s0 + $0x78] sm:$0xff]  ;;  %v68_v54 = vpack.c.bf16 %v1232_v51, %v1215_v45  ;;  %v706_v58 = vld [vmem:[%s1628_s0 + $0x4] sm:$0xff]  ;;  %v1257_v59 = vld [vmem:[%s1628_s0 + $0xc] sm:$0xff]  ;;  %v184_v62 = vpack.c.bf16 %v688_v57, %v687_v56 }
   0xd   :  { %896 = vmatpush3.bf16.xpose.msra.mxu1 %v34_v15  ;;  %877 = vmatprep.subr.bf16.mxu0 %v1045_v0  ;;  %v40_v55 = vpack.c.bf16 %v32_v53, %v31_v52  ;;  %v1037_v60 = vld [vmem:[%s1629_s1 + $0x8] sm:$0xff]   ;;  %v1038_v61 = vld [vmem:[%s1629_s1] sm:$0xff]   ;;  %v262_v63 = vpack.c.bf16 %v1257_v59, %v706_v58  ;;  %v1269_v1 = vld [vmem:[%s1628_s0 + $0x14] sm:$0xff] }
   0xe   :  { %897 = vmatprep.subr.bf16.mxu1 %v1045_v0  ;;  %v496_v3 = vpack.c.bf16 %v1269_v1, %v1257_v59  ;;  %v689_v4 = vld [vmem:[%s1628_s0 + $0x13] sm:$0xff]  ;;  %v690_v5 = vld [vmem:[%s1628_s0 + $0x1b] sm:$0xff]  ;;  %v1288_v11 = vld [vmem:[%s1628_s0 + $0x24] sm:$0xff] }
   0xf   :  { %v1283_v7 = vld [vmem:[%s1628_s0 + $0x1c] sm:$0xff]  ;;  %v185_v14 = vpack.c.bf16 %v690_v5, %v689_v4  ;;  %v692_v19 = vld [vmem:[%s1628_s0 + $0x2b] sm:$0xff]  ;;  %v1367_v52 = vld [vmem:[%s1628_s0 + $0x54] sm:$0xff] }
  0x10   :  { %v497_v12 = vpack.c.bf16 %v1288_v11, %v1283_v7  ;;  %v263_v15 = vpack.c.bf16 %v1283_v7, %v1269_v1  ;;  %v691_v18 = vld [vmem:[%s1628_s0 + $0x23] sm:$0xff]  ;;  %v694_v31 = vld [vmem:[%s1628_s0 + $0x3b] sm:$0xff]  ;;  %v696_v40 = vld [vmem:[%s1628_s0 + $0x4b] sm:$0xff] }
  0x11   :  { %v186_v26 = vpack.c.bf16 %v692_v19, %v691_v18  ;;  %v1332_v32 = vld [vmem:[%s1628_s0 + $0x3c] sm:$0xff]  ;;  %v700_v57 = vld [vmem:[%s1628_s0 + $0x6b] sm:$0xff]  ;;  %v1407_v5 = vld [vmem:[%s1628_s0 + $0x74] sm:$0xff] }
  0x12   :  { %v695_v39 = vld [vmem:[%s1628_s0 + $0x43] sm:$0xff]  ;;  %v702_v4 = vld [vmem:[%s1628_s0 + $0x7b] sm:$0xff]  ;;  %v757_v33 = vld [vmem:[%s1628_s0 + $0x72] sm:$0xff] }
  0x13   :  { %v188_v46 = vpack.c.bf16 %v696_v40, %v695_v39  ;;  %v1372_v53 = vld [vmem:[%s1628_s0 + $0x5c] sm:$0xff]  ;;  %v1387_v58 = vld [vmem:[%s1628_s0 + $0x64] sm:$0xff]  ;;  %v1047_v40 = vmov 0   ;;  %v786_v1 = vld [vmem:[%s1628_s0 + $0x2d] sm:$0xff] }
  0x14   :  { %878 = vmatpush3.bf16.xpose.msra.mxu0 %v63_v21  ;;  %v1309_v21 = vld [vmem:[%s1628_s0 + $0x2c] sm:$0xff]  ;;  %v699_v56 = vld [vmem:[%s1628_s0 + $0x63] sm:$0xff]  ;;  %v750_v9 = vld [vmem:[%s1628_s0 + $0x3a] sm:$0xff]  ;;  %1036 = vset.pattern.permute.xlu0 %v1047_v40 }
  0x15   :  { %898 = vmatpush3.bf16.xpose.msra.mxu1 %v35_v22  ;;  %879 = vmatprep.subr.bf16.mxu0 %v1045_v0  ;;  %v1314_v22 = vld [vmem:[%s1628_s0 + $0x34] sm:$0xff]  ;;  %v744_v19 = vld [vmem:[%s1628_s0 + $0xa] sm:$0xff]  ;;  %v751_v10 = vld [vmem:[%s1628_s0 + $0x42] sm:$0xff] }
  0x16   :  { %899 = vmatprep.subr.bf16.mxu1 %v1045_v0  ;;  %v498_v25 = vpack.c.bf16 %v1314_v22, %v1309_v21  ;;  %v748_v6 = vld [vmem:[%s1628_s0 + $0x2a] sm:$0xff]  ;;  %v634_v16 = vld [vmem:[%s1630_s2] sm:$0xff] }
  0x17   :  { %638 = vperm.xlu0 %1036, %v634_v16   ;;  %v752_v17 = vld [vmem:[%s1628_s0 + $0x4a] sm:$0xff]  ;;  %v754_v23 = vld [vmem:[%s1628_s0 + $0x5a] sm:$0xff]  ;;  %v755_v24 = vld [vmem:[%s1628_s0 + $0x62] sm:$0xff] }
  0x18   :  { %v756_v30 = vld [vmem:[%s1628_s0 + $0x6a] sm:$0xff]  ;;  %v740_v37 = vld [vmem:[%s1628_s0 + $0x81] sm:$0xff] }
  0x19   :  { %v758_v38 = vld [vmem:[%s1628_s0 + $0x7a] sm:$0xff]  ;;  %v347_v44 = vpack.c.bf16 %v740_v37, %v1232_v51  ;;  %v1042_v51 = vld [vmem:[%s1629_s1 + $0x28] sm:$0xff]  }
  0x1a   :  { %v788_v7 = vld [vmem:[%s1628_s0 + $0x3d] sm:$0xff] }
  0x1c   :  { %880 = vmatpush3.bf16.xpose.msra.mxu0 %v64_v28  ;;  %v264_v28 = vpack.c.bf16 %v1309_v21, %v1288_v11  ;;  %v789_v11 = vld [vmem:[%s1628_s0 + $0x45] sm:$0xff] }
  0x1d   :  { %900 = vmatpush3.bf16.xpose.msra.mxu1 %v36_v29  ;;  %881 = vmatprep.subr.bf16.mxu0 %v1045_v0  ;;  %v693_v29 = vld [vmem:[%s1628_s0 + $0x33] sm:$0xff]  ;;  %v635_v21 = vld [vmem:[%s1630_s2 + $0x8] sm:$0xff] }
  0x1e   :  { %901 = vmatprep.subr.bf16.mxu1 %v1045_v0  ;;  %643 = vperm.xlu0 %1036, %v635_v21  }
  0x24   :  { %882 = vmatpush3.bf16.xpose.msra.mxu0 %v65_v35  ;;  %v187_v35 = vpack.c.bf16 %v694_v31, %v693_v29  ;;  %v1040_v29 = vld [vmem:[%s1629_s1 + $0x18] sm:$0xff]  }
  0x25   :  { %902 = vmatpush3.bf16.xpose.msra.mxu1 %v37_v36  ;;  %883 = vmatprep.subr.bf16.mxu0 %v1045_v0  ;;  %v265_v36 = vpack.c.bf16 %v1332_v32, %v1314_v22  ;;  %v790_v22 = vld [vmem:[%s1628_s0 + $0x4d] sm:$0xff] }
  0x26   :  { %903 = vmatprep.subr.bf16.mxu1 %v1045_v0 }
  0x2c   :  { %884 = vmatpush3.bf16.xpose.msra.mxu0 %v66_v42  ;;  %v1347_v42 = vld [vmem:[%s1628_s0 + $0x44] sm:$0xff] }
  0x2d   :  { %904 = vmatpush3.bf16.xpose.msra.mxu1 %v38_v43  ;;  %885 = vmatprep.subr.bf16.mxu0 %v1045_v0  ;;  %v1352_v43 = vld [vmem:[%s1628_s0 + $0x4c] sm:$0xff] }
  0x2e   :  { %905 = vmatprep.subr.bf16.mxu1 %v1045_v0  ;;  %v266_v47 = vpack.c.bf16 %v1352_v43, %v1347_v42 }
  0x34   :  { %886 = vmatpush3.bf16.xpose.msra.mxu0 %v67_v49  ;;  %v697_v49 = vld [vmem:[%s1628_s0 + $0x53] sm:$0xff] }
  0x35   :  { %906 = vmatpush3.bf16.xpose.msra.mxu1 %v39_v50  ;;  %887 = vmatprep.subr.bf16.mxu0 %v1045_v0  ;;  %v698_v50 = vld [vmem:[%s1628_s0 + $0x5b] sm:$0xff] }
  0x36   :  { %907 = vmatprep.subr.bf16.mxu1 %v1045_v0 }
  0x3c   :  { %888 = vmatpush3.bf16.xpose.msra.mxu0 %v68_v54  ;;  %v189_v54 = vpack.c.bf16 %v698_v50, %v697_v49  ;;  %v1041_v49 = vld [vmem:[%s1629_s1 + $0x20] sm:$0xff]  }
  0x3d   :  { %908 = vmatpush3.bf16.xpose.msra.mxu1 %v40_v55  ;;  %913 = vmatprep.subr.bf16.mxu0 %v1045_v0  ;;  %v267_v55 = vpack.c.bf16 %v1372_v53, %v1367_v52 }
  0x3e   :  { %933 = vmatprep.subr.bf16.mxu1 %v1045_v0 }
  0x43   :  { %890 = vmatmul.mubr.bf16.vlgmr.msra.gmra.mrb[0].mxu0 %v1037_v60  ;;  %v1392_v60 = vld [vmem:[%s1628_s0 + $0x6c] sm:$0xff] }
  0x44   :  { %910 = vmatmul.mubr.bf16.vlgmr.msra.gmra.mrb[0].mxu1 %v1038_v61  ;;  %914 = vmatpush3.bf16.xpose.msra.mxu0 %v184_v62  ;;  %v190_v61 = vpack.c.bf16 %v700_v57, %v699_v56  ;;  %v268_v62 = vpack.c.bf16 %v1392_v60, %v1387_v58  ;;  %v577_v57 = vpack.c.bf16 %v789_v11, %v788_v7 }
  0x45   :  { %934 = vmatpush3.bf16.xpose.msra.mxu1 %v262_v63  ;;  %915 = vmatprep.subr.bf16.mxu0 %v1045_v0  ;;  %v701_v63 = vld [vmem:[%s1628_s0 + $0x73] sm:$0xff] }
  0x46   :  { %935 = vmatprep.subr.bf16.mxu1 %v1045_v0  ;;  %929 = vmatprep.mubr.msk.bf16.mxu0 %vm1046_vm0, %v1045_v0 }
  0x47   :  { %949 = vmatprep.mubr.msk.bf16.mxu1 %vm1046_vm0, %v1045_v0 }
  0x4c   :  { %916 = vmatpush3.bf16.xpose.msra.mxu0 %v185_v14  ;;  %v1412_v14 = vld [vmem:[%s1628_s0 + $0x7c] sm:$0xff] }
  0x4d   :  { %936 = vmatpush3.bf16.xpose.msra.mxu1 %v263_v15  ;;  %917 = vmatprep.subr.bf16.mxu0 %v1045_v0  ;;  %v191_v15 = vpack.c.bf16 %v702_v4, %v701_v63  ;;  %v269_v18 = vpack.c.bf16 %v1412_v14, %v1407_v5  ;;  %v501_v63 = vpack.c.bf16 %v1387_v58, %v1372_v53  ;;  %v778_v53 = vld [vmem:[%s1628_s0 + $0x84] sm:$0xff] }
  0x4e   :  { %937 = vmatprep.subr.bf16.mxu1 %v1045_v0  ;;  %v796_v58 = vld [vmem:[%s1628_s0 + $0x7d] sm:$0xff] }
  0x54   :  { %918 = vmatpush3.bf16.xpose.msra.mxu0 %v186_v26  ;;  %v745_v26 = vld [vmem:[%s1628_s0 + $0x12] sm:$0xff] }
  0x55   :  { %938 = vmatpush3.bf16.xpose.msra.mxu1 %v264_v28  ;;  %919 = vmatprep.subr.bf16.mxu0 %v1045_v0  ;;  %v1039_v28 = vld [vmem:[%s1629_s1 + $0x10] sm:$0xff]   ;;  %v418_v31 = vpack.c.bf16 %v745_v26, %v744_v19  ;;  %v797_v19 = vld [vmem:[%s1628_s0 + $0x85] sm:$0xff] }
  0x56   :  { %939 = vmatprep.subr.bf16.mxu1 %v1045_v0  ;;  %v1043_v26 = vld [vmem:[%s1629_s1 + $0x30] sm:$0xff]  }
  0x5c   :  { %920 = vmatpush3.bf16.xpose.msra.mxu0 %v187_v35  ;;  %v746_v35 = vld [vmem:[%s1628_s0 + $0x1a] sm:$0xff] }
  0x5d   :  { %940 = vmatpush3.bf16.xpose.msra.mxu1 %v265_v36  ;;  %921 = vmatprep.subr.bf16.mxu0 %v1045_v0  ;;  %v747_v36 = vld [vmem:[%s1628_s0 + $0x22] sm:$0xff] }
  0x5e   :  { %941 = vmatprep.subr.bf16.mxu1 %v1045_v0  ;;  %v419_v2 = vpack.c.bf16 %v747_v36, %v746_v35 }
  0x64   :  { %922 = vmatpush3.bf16.xpose.msra.mxu0 %v188_v46 }
  0x65   :  { %942 = vmatpush3.bf16.xpose.msra.mxu1 %v266_v47  ;;  %923 = vmatprep.subr.bf16.mxu0 %v1045_v0  ;;  %v783_v47 = vld [vmem:[%s1628_s0 + $0x15] sm:$0xff] }
  0x66   :  { %943 = vmatprep.subr.bf16.mxu1 %v1045_v0 }
  0x6c   :  { %924 = vmatpush3.bf16.xpose.msra.mxu0 %v189_v54  ;;  %v784_v54 = vld [vmem:[%s1628_s0 + $0x1d] sm:$0xff] }
  0x6d   :  { %944 = vmatpush3.bf16.xpose.msra.mxu1 %v267_v55  ;;  %925 = vmatprep.subr.bf16.mxu0 %v1045_v0  ;;  %v785_v55 = vld [vmem:[%s1628_s0 + $0x25] sm:$0xff] }
  0x6e   :  { %945 = vmatprep.subr.bf16.mxu1 %v1045_v0  ;;  %v575_v59 = vpack.c.bf16 %v785_v55, %v784_v54 }
  0x74   :  { %926 = vmatpush3.bf16.xpose.msra.mxu0 %v190_v61  ;;  %v792_v61 = vld [vmem:[%s1628_s0 + $0x5d] sm:$0xff] }
  0x75   :  { %946 = vmatpush3.bf16.xpose.msra.mxu1 %v268_v62  ;;  %927 = vmatprep.subr.bf16.mxu0 %v1045_v0  ;;  %v793_v62 = vld [vmem:[%s1628_s0 + $0x65] sm:$0xff] }
  0x76   :  { %947 = vmatprep.subr.bf16.mxu1 %v1045_v0  ;;  %v579_v4 = vpack.c.bf16 %v793_v62, %v792_v61 }
  0x7c   :  { %928 = vmatpush3.bf16.xpose.msra.mxu0 %v191_v15  ;;  %v502_v15 = vpack.c.bf16 %v1407_v5, %v1392_v60  ;;  %v503_v60 = vpack.c.bf16 %v778_v53, %v1412_v14  ;;  %v581_v5 = vpack.c.bf16 %v797_v19, %v796_v58 }
  0x7d   :  { %948 = vmatpush3.bf16.xpose.msra.mxu1 %v269_v18  ;;  %953 = vmatprep.subr.bf16.mxu0 %v1045_v0 }
  0x7e   :  { %973 = vmatprep.subr.bf16.mxu1 %v1045_v0 }
  0x83   :  { %930 = vmatmul.mubr.bf16.vlgmr.msra.gmra.mrb[4].mxu0 %v1039_v28 }
  0x84   :  { %950 = vmatmul.mubr.bf16.vlgmr.msra.gmra.mrb[4].mxu1 %v1040_v29  ;;  %954 = vmatpush3.bf16.xpose.msra.mxu0 %v340_v8  ;;  %v749_v8 = vld [vmem:[%s1628_s0 + $0x32] sm:$0xff] }
  0x85   :  { %974 = vmatpush3.bf16.xpose.msra.mxu1 %v418_v31  ;;  %955 = vmatprep.subr.bf16.mxu0 %v1045_v0  ;;  %v420_v39 = vpack.c.bf16 %v749_v8, %v748_v6 }
  0x86   :  { %975 = vmatprep.subr.bf16.mxu1 %v1045_v0  ;;  %969 = vmatprep.mubr.msk.bf16.mxu0 %vm1046_vm0, %v1045_v0 }
  0x87   :  { %989 = vmatprep.mubr.msk.bf16.mxu1 %vm1046_vm0, %v1045_v0 }
  0x8c   :  { %956 = vmatpush3.bf16.xpose.msra.mxu0 %v341_v13  ;;  %v421_v13 = vpack.c.bf16 %v751_v10, %v750_v9 }
  0x8d   :  { %976 = vmatpush3.bf16.xpose.msra.mxu1 %v419_v2  ;;  %957 = vmatprep.subr.bf16.mxu0 %v1045_v0 }
  0x8e   :  { %977 = vmatprep.subr.bf16.mxu1 %v1045_v0 }
  0x94   :  { %958 = vmatpush3.bf16.xpose.msra.mxu0 %v342_v20  ;;  %v753_v20 = vld [vmem:[%s1628_s0 + $0x52] sm:$0xff] }
  0x95   :  { %978 = vmatpush3.bf16.xpose.msra.mxu1 %v420_v39  ;;  %959 = vmatprep.subr.bf16.mxu0 %v1045_v0  ;;  %v422_v46 = vpack.c.bf16 %v753_v20, %v752_v17 }
  0x96   :  { %979 = vmatprep.subr.bf16.mxu1 %v1045_v0  ;;  %v639_v54 = vpop.permute.xlu0 %638 }
  0x9c   :  { %960 = vmatpush3.bf16.xpose.msra.mxu0 %v343_v27  ;;  %v423_v27 = vpack.c.bf16 %v755_v24, %v754_v23 }
  0x9d   :  { %980 = vmatpush3.bf16.xpose.msra.mxu1 %v421_v13  ;;  %961 = vmatprep.subr.bf16.mxu0 %v1045_v0 }
  0x9e   :  { %981 = vmatprep.subr.bf16.mxu1 %v1045_v0 }
  0xa4   :  { %962 = vmatpush3.bf16.xpose.msra.mxu0 %v344_v34  ;;  %v424_v34 = vpack.c.bf16 %v757_v33, %v756_v30 }
  0xa5   :  { %982 = vmatpush3.bf16.xpose.msra.mxu1 %v422_v46  ;;  %963 = vmatprep.subr.bf16.mxu0 %v1045_v0 }
  0xa6   :  { %983 = vmatprep.subr.bf16.mxu1 %v1045_v0 }
  0xac   :  { %964 = vmatpush3.bf16.xpose.msra.mxu0 %v345_v41  ;;  %v759_v41 = vld [vmem:[%s1628_s0 + $0x82] sm:$0xff] }
  0xad   :  { %984 = vmatpush3.bf16.xpose.msra.mxu1 %v423_v27  ;;  %965 = vmatprep.subr.bf16.mxu0 %v1045_v0  ;;  %v425_v45 = vpack.c.bf16 %v759_v41, %v758_v38 }
  0xae   :  { %985 = vmatprep.subr.bf16.mxu1 %v1045_v0 }
  0xb4   :  { %966 = vmatpush3.bf16.xpose.msra.mxu0 %v346_v48  ;;  %v782_v48 = vld [vmem:[%s1628_s0 + $0xd] sm:$0xff] }
  0xb5   :  { %986 = vmatpush3.bf16.xpose.msra.mxu1 %v424_v34  ;;  %967 = vmatprep.subr.bf16.mxu0 %v1045_v0  ;;  %v574_v50 = vpack.c.bf16 %v783_v47, %v782_v48 }
  0xb6   :  { %987 = vmatprep.subr.bf16.mxu1 %v1045_v0 }
  0xbc   :  { %968 = vmatpush3.bf16.xpose.msra.mxu0 %v347_v44 }
  0xbd   :  { %988 = vmatpush3.bf16.xpose.msra.mxu1 %v425_v45  ;;  %993 = vmatprep.subr.bf16.mxu0 %v1045_v0 }
  0xbe   :  { %1013 = vmatprep.subr.bf16.mxu1 %v1045_v0 }
  0xc3   :  { %970 = vmatmul.mubr.bf16.vlgmr.msra.gmra.mrb[8].mxu0 %v1041_v49 }
  0xc4   :  { %990 = vmatmul.mubr.bf16.vlgmr.msra.gmra.mrb[8].mxu1 %v1042_v51  ;;  %994 = vmatpush3.bf16.xpose.msra.mxu0 %v496_v3  ;;  %v787_v3 = vld [vmem:[%s1628_s0 + $0x35] sm:$0xff] }
  0xc5   :  { %1014 = vmatpush3.bf16.xpose.msra.mxu1 %v574_v50  ;;  %995 = vmatprep.subr.bf16.mxu0 %v1045_v0  ;;  %v576_v56 = vpack.c.bf16 %v787_v3, %v786_v1 }
  0xc6   :  { %1015 = vmatprep.subr.bf16.mxu1 %v1045_v0  ;;  %1009 = vmatprep.mubr.msk.bf16.mxu0 %vm1046_vm0, %v1045_v0 }
  0xc7   :  { %1029 = vmatprep.mubr.msk.bf16.mxu1 %vm1046_vm0, %v1045_v0 }
  0xcc   :  { %996 = vmatpush3.bf16.xpose.msra.mxu0 %v497_v12  ;;  %v499_v12 = vpack.c.bf16 %v1347_v42, %v1332_v32  ;;  %v500_v32 = vpack.c.bf16 %v1367_v52, %v1352_v43  ;;  %v794_v43 = vld [vmem:[%s1628_s0 + $0x6d] sm:$0xff]  ;;  %v795_v52 = vld [vmem:[%s1628_s0 + $0x75] sm:$0xff] }
  0xcd   :  { %1016 = vmatpush3.bf16.xpose.msra.mxu1 %v575_v59  ;;  %997 = vmatprep.subr.bf16.mxu0 %v1045_v0  ;;  %v580_v18 = vpack.c.bf16 %v795_v52, %v794_v43 }
  0xce   :  { %1017 = vmatprep.subr.bf16.mxu1 %v1045_v0 }
  0xd4   :  { %998 = vmatpush3.bf16.xpose.msra.mxu0 %v498_v25  ;;  %v791_v25 = vld [vmem:[%s1628_s0 + $0x55] sm:$0xff] }
  0xd5   :  { %1018 = vmatpush3.bf16.xpose.msra.mxu1 %v576_v56  ;;  %999 = vmatprep.subr.bf16.mxu0 %v1045_v0  ;;  %v578_v42 = vpack.c.bf16 %v791_v25, %v790_v22 }
  0xd6   :  { %1019 = vmatprep.subr.bf16.mxu1 %v1045_v0 }
  0xdc   :  { %1000 = vmatpush3.bf16.xpose.msra.mxu0 %v499_v12 }
  0xdd   :  { %1020 = vmatpush3.bf16.xpose.msra.mxu1 %v577_v57  ;;  %1001 = vmatprep.subr.bf16.mxu0 %v1045_v0 }
  0xde   :  { %1021 = vmatprep.subr.bf16.mxu1 %v1045_v0 }
  0xe4   :  { %1002 = vmatpush3.bf16.xpose.msra.mxu0 %v500_v32 }
  0xe5   :  { %1022 = vmatpush3.bf16.xpose.msra.mxu1 %v578_v42  ;;  %1003 = vmatprep.subr.bf16.mxu0 %v1045_v0  ;;  %v644_v42 = vpop.permute.xlu0 %643 }
  0xe6   :  { %1023 = vmatprep.subr.bf16.mxu1 %v1045_v0 }
  0xec   :  { %1004 = vmatpush3.bf16.xpose.msra.mxu0 %v501_v63 }
  0xed   :  { %1024 = vmatpush3.bf16.xpose.msra.mxu1 %v579_v4  ;;  %1005 = vmatprep.subr.bf16.mxu0 %v1045_v0 }
  0xee   :  { %1025 = vmatprep.subr.bf16.mxu1 %v1045_v0 }
  0xf4   :  { %1006 = vmatpush3.bf16.xpose.msra.mxu0 %v502_v15 }
  0xf5   :  { %1026 = vmatpush3.bf16.xpose.msra.mxu1 %v580_v18  ;;  %1007 = vmatprep.subr.bf16.mxu0 %v1045_v0 }
  0xf6   :  { %1027 = vmatprep.subr.bf16.mxu1 %v1045_v0  ;;  %v1044_v0 = vld [vmem:[%s1629_s1 + $0x38] sm:$0xff]  }
  0xfc   :  { %1008 = vmatpush3.bf16.xpose.msra.mxu0 %v503_v60 }
  0xfd   :  { %1028 = vmatpush3.bf16.xpose.msra.mxu1 %v581_v5 }
 0x103   :  { %1010 = vmatmul.mubr.bf16.vlgmr.msra.gmra.mrb[12].mxu0 %v1043_v26 }
 0x104   :  { %1030 = vmatmul.mubr.bf16.vlgmr.msra.gmra.mrb[12].mxu1 %v1044_v0 }
 0x116   :  { %v112_v28 = vpop.f32.mrb[0].mxu0 }
 0x117   :  { %v159_v29 = vpop.f32.mrb[0].mxu1  ;;  %v891_v31 = vpop.f32.mrb[1].mxu0 }
 0x118   :  { %v160_v35 = vadd.f32 %v159_v29, %v112_v28  ;;  %v911_v36 = vpop.f32.mrb[1].mxu1  ;;  %v115_v2 = vpop.f32.mrb[2].mxu0 }
 0x119   :  { %v162_v14 = vpop.f32.mrb[2].mxu1  ;;  %v892_v6 = vpop.f32.mrb[3].mxu0 }
 0x11a   :  { %v163_v8 = vadd.f32 %v162_v14, %v115_v2  ;;  %v912_v39 = vpop.f32.mrb[3].mxu1 }
 0x156   :  { %v235_v9 = vpop.f32.mrb[4].mxu0 }
 0x157   :  { %v242_v10 = vadd.f32 %v235_v9, %v160_v35  ;;  %v313_v13 = vpop.f32.mrb[4].mxu1  ;;  %v931_v40 = vpop.f32.mrb[5].mxu0 }
 0x158   :  { %v951_v16 = vpop.f32.mrb[5].mxu1  ;;  %v238_v17 = vpop.f32.mrb[6].mxu0 }
 0x159   :  { %v320_v20 = vadd.f32 %v313_v13, %v242_v10  ;;  %v243_v46 = vadd.f32 %v238_v17, %v163_v8  ;;  %v316_v23 = vpop.f32.mrb[6].mxu1  ;;  %v932_v24 = vpop.f32.mrb[7].mxu0 }
 0x15a   :  { %v952_v27 = vpop.f32.mrb[7].mxu1 }
 0x15b   :  { %v321_v30 = vadd.f32 %v316_v23, %v243_v46 }
 0x196   :  { %v391_v33 = vpop.f32.mrb[8].mxu0 }
 0x197   :  { %v398_v34 = vadd.f32 %v391_v33, %v320_v20  ;;  %v469_v37 = vpop.f32.mrb[8].mxu1  ;;  %v971_v38 = vpop.f32.mrb[9].mxu0 }
 0x198   :  { %v991_v41 = vpop.f32.mrb[9].mxu1  ;;  %v394_v44 = vpop.f32.mrb[10].mxu0 }
 0x199   :  { %v476_v45 = vadd.f32 %v469_v37, %v398_v34  ;;  %v399_v48 = vadd.f32 %v394_v44, %v321_v30  ;;  %v472_v47 = vpop.f32.mrb[10].mxu1  ;;  %v972_v49 = vpop.f32.mrb[11].mxu0 }
 0x19a   :  { %v992_v51 = vpop.f32.mrb[11].mxu1 }
 0x19b   :  { %v477_v50 = vadd.f32 %v472_v47, %v399_v48 }
 0x1d6   :  { %v547_v55 = vpop.f32.mrb[12].mxu0 }
 0x1d7   :  { %v554_v59 = vadd.f32 %v547_v55, %v476_v45  ;;  %v625_v1 = vpop.f32.mrb[12].mxu1  ;;  %v1011_v3 = vpop.f32.mrb[13].mxu0 }
 0x1d8   :  { %v1031_v56 = vpop.f32.mrb[13].mxu1  ;;  %v550_v7 = vpop.f32.mrb[14].mxu0 }
 0x1d9   :  { %v632_v11 = vadd.f32 %v625_v1, %v554_v59  ;;  %v555_v12 = vadd.f32 %v550_v7, %v477_v50  ;;  %v628_v57 = vpop.f32.mrb[14].mxu1  ;;  %v1012_v21 = vpop.f32.mrb[15].mxu0 }
 0x1da   :  { %v1032_v22 = vpop.f32.mrb[15].mxu1 }
 0x1db   :  { %v646_v25 = vadd.f32 %v639_v54, %v632_v11  ;;  %v633_v32 = vadd.f32 %v628_v57, %v555_v12 }
 0x1dd   :  { %vm648_vm1 = vcmp.ge.f32.partialorder %v646_v25, 0.0  ;;  %v650_v61 = vmul.f32 0.01, %v646_v25  ;;  %v647_v62 = vadd.f32 %v644_v42, %v633_v32 }
 0x1df   :  { %v652_v63 = vsel %vm648_vm1, %v646_v25, %v650_v61  ;;  %vm649_vm2 = vcmp.ge.f32.partialorder %v647_v62, 0.0  ;;  %v651_v4 = vmul.f32 0.01, %v647_v62 }
 0x1e0   :  { %654 = vst [vmem:[%s1631_s3] sm:$0xff] %v652_v63 }
 0x1e1   :  { %v653_v43 = vsel %vm649_vm2, %v647_v62, %v651_v4 }
 0x1e2   :  { %655 = vst [vmem:[%s1631_s3 + $0x8] sm:$0xff] %v653_v43 }

// kernel: video_encoder_forward.9
= control target key start
LH: loop header
LB: loop body
LE: loop exit
PB: predicated region body
PF: predicated region fallthrough
CT: control target
= control target key end

     0   :  { %16 = vsyncpa [#allocation3], 0  ;;  %v416_v1 = vmov 0.0   ;;  %vm417_vm0 = vmmov 0   ;;  %s558_s0 = inlined_call_operand.vmem [shape: f32[2,32], index: 0, kind: input, shape index: {}]   ;;  %s559_s1 = inlined_call_operand.vmem [shape: bf16[32,32], index: 1, kind: input, shape index: {}]   ;;  %s560_s2 = inlined_call_operand.vmem [shape: f32[1,32], index: 2, kind: input, shape index: {}]   ;;  %s561_s3 = inlined_call_operand.vmem [shape: bf16[32,8], index: 3, kind: input, shape index: {}]   ;;  %s562_s4 = inlined_call_operand.vmem [shape: f32[1,8], index: 4, kind: input, shape index: {}]   ;;  %s563_s5 = inlined_call_operand.vmem [shape: bf16[32,8], index: 5, kind: input, shape index: {}]   ;;  %s564_s6 = inlined_call_operand.vmem [shape: f32[1,8], index: 6, kind: input, shape index: {}]   ;;  %s565_s7 = inlined_call_operand.vmem [shape: f32[2,8], index: 7, kind: input, shape index: {}]   ;;  %s566_s8 = inlined_call_operand.hbm [shape: f32[2,8], index: 8, kind: output, shape index: {0}]   ;;  %s567_s9 = inlined_call_operand.hbm [shape: f32[2,8], index: 9, kind: output, shape index: {1}]   ;;  %s568_s10 = inlined_call_operand.hbm [shape: f32[2,8], index: 10, kind: output, shape index: {2}]  }
   0x1   :  { %v338_v0 = vld [vmem:[%s559_s1] sm:$0xff]   ;;  %309 = vmatprep.subr.bf16.mxu0 %v416_v1  ;;  %317 = vmatprep.subr.bf16.mxu1 %v416_v1  ;;  %v339_v2 = vld [vmem:[%s559_s1 + $0x8] sm:$0xff]  }
   0x2   :  { %310 = vmatpush3.bf16.msra.mxu0 %v338_v0  ;;  %313 = vmatprep.mubr.msk.bf16.mxu0 %vm417_vm0, %v416_v1  ;;  %v35_v3 = vld [vmem:[%s558_s0] sm:$0x3] }
   0x3   :  { %311 = vmatprep.subr.bf16.mxu0 %v416_v1  ;;  %321 = vmatprep.mubr.msk.bf16.mxu1 %vm417_vm0, %v416_v1  ;;  %v36_v4 = vpack.c.bf16 %v35_v3, %v35_v3 }
   0x4   :  { %17 = vsyncpa [#allocation5], 0  ;;  %vm60_vm1 = vcmask 261120   ;;  %v340_v5 = vld [vmem:[%s563_s5] sm:$0xff]   ;;  %v342_v7 = vld [vmem:[%s563_s5 + $0x8] sm:$0xff]   ;;  %s419_s30 = smov [#allocation6]  }
   0x5   :  { %v341_v6 = vld [vmem:[%s561_s3] sm:$0xff]   ;;  %v343_v8 = vld [vmem:[%s561_s3 + $0x8] sm:$0xff]   ;;  %s273_s11 = sshll.u32 %s419_s30, 4  ;;  %vm243_vm3 = vcmask 58368   ;;  %s509_s11 = int_to_ptr.vmem [resolvable:$true] %s273_s11 }
   0x6   :  { %312 = vmatpush3.bf16.msra.mxu0 %v339_v2  ;;  %318 = vmatpush3.bf16.msra.mxu1 %v341_v6  ;;  %v288_v9 = vld [vmem:[%s560_s2] ss:$0 sm:$0xff]  ;;  %s418_s2 = smov [#allocation4]  }
   0x7   :  { %325 = vmatprep.subr.bf16.mxu0 %v416_v1  ;;  %319 = vmatprep.subr.bf16.mxu1 %v416_v1  ;;  %v292_v18 = vld [vmem:[%s562_s4] ss:$0 sm:$0xff]  ;;  %s263_s29 = sshll.u32 %s418_s2, 4  ;;  %s264_s29 = int_to_ptr.vmem [resolvable:$true] %s263_s29 }
   0x8   :  { %v296_v19 = vld [vmem:[%s564_s6] ss:$0 sm:$0xff]  ;;  %s346_s4 = scalar_lea.vmem %s264_s29, 32  ;;  %p351_p1 = scmp.lt.s32.totalorder %s264_s29, %s264_s29 }
   0x9   :  { %314 = vmatmul.mubr.msk.bf16.vlgmr.msra.gmra.mrb[0].mxu0 %vm60_vm1, %v36_v4  ;;  %p347_p0 = scmp.ne.s32.totalorder %s264_s29, %s346_s4  ;;  %p352_p2 = scmp.lt.s32.totalorder %s346_s4, %s346_s4 }
   0xa   :  { %329 = vmatprep.mubr.msk.bf16.mxu0 %vm417_vm0, %v416_v1  ;;  %326 = vmatpush3.bf16.msra.mxu0 %v340_v5 }
   0xb   :  { %327 = vmatprep.subr.bf16.mxu0 %v416_v1  ;;  %320 = vmatpush3.bf16.msra.mxu1 %v343_v8  ;;  %p353_p3 = por %p352_p2, %p351_p1 }
   0xd   :  { %p354_p4 = pnand %p353_p3, %p347_p0 }
   0xe   :  { %328 = vmatpush3.bf16.msra.mxu0 %v342_v7 }
  0xdc   :  { %v98_v10 = vpop.f32.mrb[0].mxu0 }
  0xdd   :  { %v99_v11 = vadd.f32 %v288_v9, %v98_v10  ;;  %v315_v12 = vpop.f32.mrb[1].mxu0 }
  0xde   :  { %v101_v13 = vpop.f32.mrb[2].mxu0 }
  0xdf   :  { %vm104_vm2 = vcmp.ge.f32.partialorder %v99_v11, 0.0  ;;  %v105_v14 = vmul.f32 0.01, %v99_v11  ;;  %v316_v15 = vpop.f32.mrb[3].mxu0 }
  0xe1   :  { %v106_v16 = vsel %vm104_vm2, %v99_v11, %v105_v14 }
  0xe2   :  { %v107_v17 = vpack.c.bf16 %v106_v16, %v106_v16 }
  0xe4   :  { %322 = vmatmul.mubr.msk.bf16.vlgmr.msra.gmra.mrb[0].mxu1 %vm60_vm1, %v107_v17  ;;  %330 = vmatmul.mubr.msk.bf16.vlgmr.msra.gmra.mrb[4].mxu0 %vm60_vm1, %v107_v17 }
 0x1b7   :  { %v168_v20 = vpop.f32.mrb[0].mxu1  ;;  %v231_v21 = vpop.f32.mrb[4].mxu0 }
 0x1b8   :  { %v169_v22 = vadd.f32 %v292_v18, %v168_v20  ;;  %v232_v23 = vadd.f32 %v296_v19, %v231_v21  ;;  %v323_v24 = vpop.f32.mrb[1].mxu1  ;;  %v331_v25 = vpop.f32.mrb[5].mxu0 }
 0x1b9   :  { %v171_v26 = vpop.f32.mrb[2].mxu1  ;;  %v234_v27 = vpop.f32.mrb[6].mxu0 }
 0x1ba   :  { %v238_v28 = vmul.f32 0.5, %v232_v23  ;;  %v324_v29 = vpop.f32.mrb[3].mxu1  ;;  %v332_v30 = vpop.f32.mrb[7].mxu0  ;;  %245 = vst.msk [vmem:[#allocation4] sm:$0x3] %vm243_vm3, %v169_v22 }
 0x1bb   :  { %246 = vst.msk [vmem:[#allocation6] sm:$0x3] %vm243_vm3, %v232_v23 }
 0x1bc   :  { %357 = shalt.err (!%p354_p4)
}
 0x1bd   :  { %s358_s13 = scalar_lea.hbm %s567_s9, 32 }
 0x1be   :  { %p359_p5 = scmp.ne.s32.totalorder %s567_s9, %s358_s13  ;;  %p362_p6 = scmp.lt.u32.totalorder %s358_s13, %s567_s9 }
 0x1c0   :  { %p364_p7 = pnand %p362_p6, %p359_p5 }
 0x1c2   :  { %367 = shalt.err (!%p364_p7)
}
 0x1c3   :  { %266 = dma.vmem_to_hbm [thread:$0]  %s264_s29, 32, %s567_s9, [#allocation5]   ;;  %v239_v31 = vmul.f32 1.442695, %v238_v28 }
 0x1c4   :  { %s368_s20 = scalar_lea.vmem %s509_s11, 32  ;;  %p373_p9 = scmp.lt.s32.totalorder %s509_s11, %s509_s11 }
 0x1c5   :  { %p369_p8 = scmp.ne.s32.totalorder %s509_s11, %s368_s20  ;;  %p374_p10 = scmp.lt.s32.totalorder %s368_s20, %s368_s20 }
 0x1c7   :  { %p375_p11 = por %p374_p10, %p373_p9 }
 0x1c9   :  { %p376_p12 = pnand %p375_p11, %p369_p8 }
 0x1cb   :  { %379 = shalt.err (!%p376_p12)
}
 0x1cc   :  { %s380_s0 = scalar_lea.hbm %s568_s10, 32 }
 0x1cd   :  { %p381_p13 = scmp.ne.s32.totalorder %s568_s10, %s380_s0  ;;  %p384_p0 = scmp.lt.u32.totalorder %s380_s0, %s568_s10 }
 0x1cf   :  { %p386_p1 = pnand %p384_p0, %p381_p13 }
 0x1d1   :  { %389 = shalt.err (!%p386_p1)
}
 0x1d2   :  { %276 = dma.vmem_to_hbm [thread:$0]  %s509_s11, 32, %s568_s10, [#allocation5]   ;;  %344 = vpow2.f32 %v239_v31  ;;  %v237_v32 = vld [vmem:[%s565_s7] sm:$0x3] }
 0x1d3   :  { %s420_s27 = smov [#allocation2]  }
 0x1d4   :  { %s253_s28 = sshll.u32 %s420_s27, 4  ;;  %s254_s28 = int_to_ptr.vmem [resolvable:$true] %s253_s28 }
 0x1d5   :  { %s390_s2 = scalar_lea.vmem %s254_s28, 32  ;;  %p395_p3 = scmp.lt.s32.totalorder %s254_s28, %s254_s28 }
 0x1d6   :  { %p391_p2 = scmp.ne.s32.totalorder %s254_s28, %s390_s2  ;;  %p396_p4 = scmp.lt.s32.totalorder %s390_s2, %s390_s2 }
 0x1d8   :  { %p397_p5 = por %p396_p4, %p395_p3 }
 0x1da   :  { %p398_p6 = pnand %p397_p5, %p391_p2 }
 0x1dc   :  { %v345_v33 = vpop.eup %344 }
 0x1dd   :  { %v241_v34 = vmul.f32 %v345_v33, %v237_v32 }
 0x1df   :  { %v242_v35 = vadd.f32 %v241_v34, %v169_v22 }
 0x1e1   :  { %244 = vst.msk [vmem:[#allocation2] sm:$0x3] %vm243_vm3, %v242_v35 }
 0x1e2   :  { %401 = shalt.err (!%p398_p6)
}
 0x1e3   :  { %s402_s30 = scalar_lea.hbm %s566_s8, 32 }
 0x1e4   :  { %p403_p7 = scmp.ne.s32.totalorder %s566_s8, %s402_s30  ;;  %p406_p8 = scmp.lt.u32.totalorder %s402_s30, %s566_s8 }
 0x1e6   :  { %p408_p9 = pnand %p406_p8, %p403_p7 }
 0x1e8   :  { %411 = shalt.err (!%p408_p9)
}
 0x1e9   :  { %256 = dma.vmem_to_hbm [thread:$0]  %s254_s28, 32, %s566_s8, [#allocation3]  }
 0x1ea   :  { %412 = dma.done.wait [#allocation3], 32  }
 0x1eb   :  { %413 = vsyncadd [#allocation3], 4294967264 }
 0x1ec   :  { %414 = dma.done.wait [#allocation5], 64  }
 0x1ed   :  { %415 = vsyncadd [#allocation5], 4294967232 }
 0x1ee   :  { %286 = vsyncpa [#allocation3], 1 }
 0x1ef   :  { %287 = vsyncpa [#allocation5], 1 }

// kernel: video_encoder_forward.8
= control target key start
LH: loop header
LB: loop body
LE: loop exit
PB: predicated region body
PF: predicated region fallthrough
CT: control target
= control target key end

     0   :  { %s1749_s0 = inlined_call_operand.vmem [shape: f32[135,128], index: 0, kind: input, shape index: {}]   ;;  %s1750_s1 = inlined_call_operand.vmem [shape: bf16[8,32,128], index: 1, kind: input, shape index: {}]   ;;  %s1751_s2 = inlined_call_operand.vmem [shape: f32[32,1], index: 2, kind: input, shape index: {}]   ;;  %s1752_s3 = inlined_call_operand.vmem [shape: f32[32,128], index: 3, kind: output, shape index: {}]  }
   0x1   :  { %v829_v0 = vld [vmem:[%s1749_s0 + $0x1] sm:$0xff]  ;;  %v830_v1 = vld [vmem:[%s1749_s0 + $0x9] sm:$0xff]  ;;  %v831_v5 = vld [vmem:[%s1749_s0 + $0x11] sm:$0xff] }
   0x2   :  { %v897_v2 = vld [vmem:[%s1749_s0 + $0x4] sm:$0xff]  ;;  %v63_v3 = vpack.c.bf16 %v830_v1, %v829_v0  ;;  %v898_v4 = vld [vmem:[%s1749_s0 + $0xc] sm:$0xff]  ;;  %v832_v6 = vld [vmem:[%s1749_s0 + $0x19] sm:$0xff] }
   0x3   :  { %v408_v7 = vpack.c.bf16 %v898_v4, %v897_v2  ;;  %v64_v8 = vpack.c.bf16 %v832_v6, %v831_v5  ;;  %v899_v9 = vld [vmem:[%s1749_s0 + $0x14] sm:$0xff]  ;;  %v900_v10 = vld [vmem:[%s1749_s0 + $0x1c] sm:$0xff]  ;;  %v834_v13 = vld [vmem:[%s1749_s0 + $0x29] sm:$0xff] }
   0x4   :  { %1065 = vmatprep.subr.bf16.mxu1 %v63_v3  ;;  %v409_v11 = vpack.c.bf16 %v900_v10, %v899_v9  ;;  %v833_v12 = vld [vmem:[%s1749_s0 + $0x21] sm:$0xff]  ;;  %v902_v15 = vld [vmem:[%s1749_s0 + $0x2c] sm:$0xff]  ;;  %v836_v20 = vld [vmem:[%s1749_s0 + $0x39] sm:$0xff] }
   0x5   :  { %1145 = vmatprep.subr.bf16.mxu0 %v408_v7  ;;  %1066 = vmatpush3.bf16.xpose.msra.mxu1 %v63_v3  ;;  %v901_v14 = vld [vmem:[%s1749_s0 + $0x24] sm:$0xff]  ;;  %v65_v16 = vpack.c.bf16 %v834_v13, %v833_v12  ;;  %v1256_v18 = vld [vmem:[%s1750_s1 + $0x10] sm:$0xff]   ;;  %v904_v23 = vld [vmem:[%s1749_s0 + $0x3c] sm:$0xff] }
   0x6   :  { %1146 = vmatpush3.bf16.xpose.msra.mxu0 %v408_v7  ;;  %1067 = vmatprep.subr.bf16.mxu1 %v64_v8  ;;  %v410_v17 = vpack.c.bf16 %v902_v15, %v901_v14  ;;  %v835_v19 = vld [vmem:[%s1749_s0 + $0x31] sm:$0xff]  ;;  %v1257_v21 = vld [vmem:[%s1750_s1 + $0x40] sm:$0xff]   ;;  %v838_v27 = vld [vmem:[%s1749_s0 + $0x49] sm:$0xff] }
   0x7   :  { %1147 = vmatprep.subr.bf16.mxu0 %v409_v11  ;;  %v903_v22 = vld [vmem:[%s1749_s0 + $0x34] sm:$0xff]  ;;  %1081 = vmatprep.mubr.bf16.mxu1 %v1256_v18  ;;  %v66_v24 = vpack.c.bf16 %v836_v20, %v835_v19  ;;  %v837_v26 = vld [vmem:[%s1749_s0 + $0x41] sm:$0xff]  ;;  %v906_v29 = vld [vmem:[%s1749_s0 + $0x4c] sm:$0xff] }
   0x8   :  { %1161 = vmatprep.mubr.bf16.mxu0 %v1257_v21  ;;  %v411_v25 = vpack.c.bf16 %v904_v23, %v903_v22  ;;  %v905_v28 = vld [vmem:[%s1749_s0 + $0x44] sm:$0xff]  ;;  %v67_v30 = vpack.c.bf16 %v838_v27, %v837_v26  ;;  %v839_v32 = vld [vmem:[%s1749_s0 + $0x51] sm:$0xff]  ;;  %v840_v33 = vld [vmem:[%s1749_s0 + $0x59] sm:$0xff] }
   0x9   :  { %v412_v31 = vpack.c.bf16 %v906_v29, %v905_v28  ;;  %v907_v34 = vld [vmem:[%s1749_s0 + $0x54] sm:$0xff]  ;;  %v908_v35 = vld [vmem:[%s1749_s0 + $0x5c] sm:$0xff]  ;;  %v68_v36 = vpack.c.bf16 %v840_v33, %v839_v32  ;;  %v842_v39 = vld [vmem:[%s1749_s0 + $0x69] sm:$0xff] }
   0xa   :  { %v413_v37 = vpack.c.bf16 %v908_v35, %v907_v34  ;;  %v841_v38 = vld [vmem:[%s1749_s0 + $0x61] sm:$0xff]  ;;  %v910_v41 = vld [vmem:[%s1749_s0 + $0x6c] sm:$0xff]  ;;  %v844_v45 = vld [vmem:[%s1749_s0 + $0x79] sm:$0xff] }
   0xb   :  { %v909_v40 = vld [vmem:[%s1749_s0 + $0x64] sm:$0xff]  ;;  %v69_v42 = vpack.c.bf16 %v842_v39, %v841_v38  ;;  %v843_v44 = vld [vmem:[%s1749_s0 + $0x71] sm:$0xff]  ;;  %v912_v47 = vld [vmem:[%s1749_s0 + $0x7c] sm:$0xff] }
   0xc   :  { %v414_v43 = vpack.c.bf16 %v910_v41, %v909_v40  ;;  %v911_v46 = vld [vmem:[%s1749_s0 + $0x74] sm:$0xff]  ;;  %v70_v48 = vpack.c.bf16 %v844_v45, %v843_v44  ;;  %v17_v50 = vld [vmem:[%s1749_s0] sm:$0xff]  ;;  %v18_v51 = vld [vmem:[%s1749_s0 + $0x8] sm:$0xff] }
   0xd   :  { %1068 = vmatpush3.bf16.xpose.msra.mxu1 %v64_v8  ;;  %v415_v49 = vpack.c.bf16 %v912_v47, %v911_v46  ;;  %v919_v52 = vld [vmem:[%s1749_s0 + $0x5] sm:$0xff]  ;;  %v920_v53 = vld [vmem:[%s1749_s0 + $0xd] sm:$0xff]  ;;  %v33_v54 = vpack.c.bf16 %v18_v51, %v17_v50  ;;  %v20_v57 = vld [vmem:[%s1749_s0 + $0x18] sm:$0xff] }
   0xe   :  { %1148 = vmatpush3.bf16.xpose.msra.mxu0 %v409_v11  ;;  %1069 = vmatprep.subr.bf16.mxu1 %v65_v16  ;;  %v504_v55 = vpack.c.bf16 %v920_v53, %v919_v52  ;;  %v19_v56 = vld [vmem:[%s1749_s0 + $0x10] sm:$0xff]  ;;  %v1258_v58 = vld [vmem:[%s1750_s1 + $0x18] sm:$0xff]   ;;  %v1259_v61 = vld [vmem:[%s1750_s1 + $0x48] sm:$0xff]  }
   0xf   :  { %1149 = vmatprep.subr.bf16.mxu0 %v410_v17  ;;  %v921_v59 = vld [vmem:[%s1749_s0 + $0x15] sm:$0xff]  ;;  %v922_v60 = vld [vmem:[%s1749_s0 + $0x1d] sm:$0xff]  ;;  %v34_v62 = vpack.c.bf16 %v20_v57, %v19_v56  ;;  %v22_v3 = vld [vmem:[%s1749_s0 + $0x28] sm:$0xff] }
  0x10   :  { %v505_v63 = vpack.c.bf16 %v922_v60, %v921_v59  ;;  %v1260_v0 = vld [vmem:[%s1750_s1] sm:$0xff]   ;;  %v1261_v1 = vld [vmem:[%s1750_s1 + $0x50] sm:$0xff]   ;;  %v24_v9 = vld [vmem:[%s1749_s0 + $0x38] sm:$0xff]  ;;  %v1272_v60 = vmov 0  }
  0x11   :  { %v21_v2 = vld [vmem:[%s1749_s0 + $0x20] sm:$0xff]  ;;  %v924_v5 = vld [vmem:[%s1749_s0 + $0x2d] sm:$0xff]  ;;  %v925_v10 = vld [vmem:[%s1749_s0 + $0x35] sm:$0xff]  ;;  %1255 = vset.pattern.permute.xlu1 %v1272_v60  ;;  %1254 = vset.pattern.permute.xlu0 %v1272_v60 }
  0x12   :  { %v923_v4 = vld [vmem:[%s1749_s0 + $0x25] sm:$0xff]  ;;  %v35_v6 = vpack.c.bf16 %v22_v3, %v21_v2  ;;  %v23_v8 = vld [vmem:[%s1749_s0 + $0x30] sm:$0xff]  ;;  %v926_v11 = vld [vmem:[%s1749_s0 + $0x3d] sm:$0xff] }
  0x13   :  { %v506_v7 = vpack.c.bf16 %v924_v5, %v923_v4  ;;  %v36_v12 = vpack.c.bf16 %v24_v9, %v23_v8  ;;  %v507_v13 = vpack.c.bf16 %v926_v11, %v925_v10  ;;  %v25_v14 = vld [vmem:[%s1749_s0 + $0x40] sm:$0xff]  ;;  %v26_v15 = vld [vmem:[%s1749_s0 + $0x48] sm:$0xff]  ;;  %v27_v20 = vld [vmem:[%s1749_s0 + $0x50] sm:$0xff] }
  0x14   :  { %v37_v18 = vpack.c.bf16 %v26_v15, %v25_v14  ;;  %v28_v21 = vld [vmem:[%s1749_s0 + $0x58] sm:$0xff]  ;;  %v29_v26 = vld [vmem:[%s1749_s0 + $0x60] sm:$0xff]  ;;  %v30_v27 = vld [vmem:[%s1749_s0 + $0x68] sm:$0xff] }
  0x15   :  { %1070 = vmatpush3.bf16.xpose.msra.mxu1 %v65_v16  ;;  %v927_v16 = vld [vmem:[%s1749_s0 + $0x45] sm:$0xff]  ;;  %v929_v22 = vld [vmem:[%s1749_s0 + $0x55] sm:$0xff]  ;;  %v930_v23 = vld [vmem:[%s1749_s0 + $0x5d] sm:$0xff] }
  0x16   :  { %1150 = vmatpush3.bf16.xpose.msra.mxu0 %v410_v17  ;;  %1071 = vmatprep.subr.bf16.mxu1 %v66_v24  ;;  %v928_v17 = vld [vmem:[%s1749_s0 + $0x4d] sm:$0xff]  ;;  %v931_v28 = vld [vmem:[%s1749_s0 + $0x65] sm:$0xff]  ;;  %v32_v33 = vld [vmem:[%s1749_s0 + $0x78] sm:$0xff] }
  0x17   :  { %1151 = vmatprep.subr.bf16.mxu0 %v411_v25  ;;  %v508_v19 = vpack.c.bf16 %v928_v17, %v927_v16  ;;  %v932_v29 = vld [vmem:[%s1749_s0 + $0x6d] sm:$0xff]  ;;  %v933_v34 = vld [vmem:[%s1749_s0 + $0x75] sm:$0xff]  ;;  %v934_v35 = vld [vmem:[%s1749_s0 + $0x7d] sm:$0xff] }
  0x18   :  { %v31_v32 = vld [vmem:[%s1749_s0 + $0x70] sm:$0xff]  ;;  %v853_v38 = vld [vmem:[%s1749_s0 + $0x2] sm:$0xff]  ;;  %v856_v45 = vld [vmem:[%s1749_s0 + $0x1a] sm:$0xff] }
  0x19   :  { %v854_v39 = vld [vmem:[%s1749_s0 + $0xa] sm:$0xff]  ;;  %v855_v44 = vld [vmem:[%s1749_s0 + $0x12] sm:$0xff]  ;;  %v1264_v52 = vld [vmem:[%s1750_s1 + $0x20] sm:$0xff]  }
  0x1a   :  { %v941_v40 = vld [vmem:[%s1749_s0 + $0x6] sm:$0xff]  ;;  %v942_v41 = vld [vmem:[%s1749_s0 + $0xe] sm:$0xff]  ;;  %v943_v47 = vld [vmem:[%s1749_s0 + $0x16] sm:$0xff]  ;;  %v217_v50 = vpack.c.bf16 %v856_v45, %v855_v44 }
  0x1b   :  { %v1262_v46 = vld [vmem:[%s1750_s1 + $0x8] sm:$0xff]   ;;  %v1265_v53 = vld [vmem:[%s1750_s1 + $0x60] sm:$0xff]   ;;  %v947_v3 = vld [vmem:[%s1749_s0 + $0x36] sm:$0xff] }
  0x1c   :  { %v858_v56 = vld [vmem:[%s1749_s0 + $0x2a] sm:$0xff]  ;;  %v774_v57 = vld [vmem:[%s1751_s2] sm:$0xff]  ;;  %v951_v15 = vld [vmem:[%s1749_s0 + $0x56] sm:$0xff] }
  0x1d   :  { %1072 = vmatpush3.bf16.xpose.msra.mxu1 %v66_v24  ;;  %v38_v24 = vpack.c.bf16 %v28_v21, %v27_v20  ;;  %v946_v59 = vld [vmem:[%s1749_s0 + $0x2e] sm:$0xff]  ;;  %780 = vperm.xlu0 %1254, %v774_v57   ;;  %v860_v2 = vld [vmem:[%s1749_s0 + $0x3a] sm:$0xff]  ;;  %v949_v9 = vld [vmem:[%s1749_s0 + $0x46] sm:$0xff] }
  0x1e   :  { %1152 = vmatpush3.bf16.xpose.msra.mxu0 %v411_v25  ;;  %1073 = vmatprep.subr.bf16.mxu1 %v67_v30  ;;  %v509_v25 = vpack.c.bf16 %v930_v23, %v929_v22  ;;  %v948_v4 = vld [vmem:[%s1749_s0 + $0x3e] sm:$0xff]  ;;  %v862_v8 = vld [vmem:[%s1749_s0 + $0x4a] sm:$0xff] }
  0x1f   :  { %1153 = vmatprep.subr.bf16.mxu0 %v412_v31  ;;  %v950_v10 = vld [vmem:[%s1749_s0 + $0x4e] sm:$0xff]  ;;  %v864_v14 = vld [vmem:[%s1749_s0 + $0x5a] sm:$0xff]  ;;  %v953_v21 = vld [vmem:[%s1749_s0 + $0x66] sm:$0xff] }
  0x20   :  { %v952_v16 = vld [vmem:[%s1749_s0 + $0x5e] sm:$0xff]  ;;  %v866_v20 = vld [vmem:[%s1749_s0 + $0x6a] sm:$0xff] }
  0x21   :  { %v954_v22 = vld [vmem:[%s1749_s0 + $0x6e] sm:$0xff] }
  0x22   :  { %v1268_v45 = vld [vmem:[%s1750_s1 + $0x30] sm:$0xff]  }
  0x23   :  { %v884_v60 = vld [vmem:[%s1749_s0 + $0x4b] sm:$0xff] }
  0x25   :  { %1074 = vmatpush3.bf16.xpose.msra.mxu1 %v67_v30  ;;  %v39_v30 = vpack.c.bf16 %v30_v27, %v29_v26  ;;  %v868_v26 = vld [vmem:[%s1749_s0 + $0x7a] sm:$0xff] }
  0x26   :  { %1154 = vmatpush3.bf16.xpose.msra.mxu0 %v412_v31  ;;  %1075 = vmatprep.subr.bf16.mxu1 %v68_v36  ;;  %v510_v31 = vpack.c.bf16 %v932_v29, %v931_v28  ;;  %v955_v27 = vld [vmem:[%s1749_s0 + $0x76] sm:$0xff]  ;;  %v956_v28 = vld [vmem:[%s1749_s0 + $0x7e] sm:$0xff] }
  0x27   :  { %1155 = vmatprep.subr.bf16.mxu0 %v413_v37 }
  0x2d   :  { %1076 = vmatpush3.bf16.xpose.msra.mxu1 %v68_v36  ;;  %v40_v36 = vpack.c.bf16 %v32_v33, %v31_v32  ;;  %v876_v32 = vld [vmem:[%s1749_s0 + $0xb] sm:$0xff] }
  0x2e   :  { %1156 = vmatpush3.bf16.xpose.msra.mxu0 %v413_v37  ;;  %1077 = vmatprep.subr.bf16.mxu1 %v69_v42  ;;  %v511_v37 = vpack.c.bf16 %v934_v35, %v933_v34  ;;  %v963_v33 = vld [vmem:[%s1749_s0 + $0x7] sm:$0xff]  ;;  %v964_v34 = vld [vmem:[%s1749_s0 + $0xf] sm:$0xff] }
  0x2f   :  { %1157 = vmatprep.subr.bf16.mxu0 %v414_v43 }
  0x35   :  { %1078 = vmatpush3.bf16.xpose.msra.mxu1 %v69_v42  ;;  %v216_v42 = vpack.c.bf16 %v854_v39, %v853_v38  ;;  %v878_v38 = vld [vmem:[%s1749_s0 + $0x1b] sm:$0xff]  ;;  %v1266_v39 = vld [vmem:[%s1750_s1 + $0x28] sm:$0xff]  }
  0x36   :  { %1158 = vmatpush3.bf16.xpose.msra.mxu0 %v414_v43  ;;  %1079 = vmatprep.subr.bf16.mxu1 %v70_v48  ;;  %v600_v43 = vpack.c.bf16 %v942_v41, %v941_v40  ;;  %v965_v40 = vld [vmem:[%s1749_s0 + $0x17] sm:$0xff]  ;;  %v966_v41 = vld [vmem:[%s1749_s0 + $0x1f] sm:$0xff] }
  0x37   :  { %1159 = vmatprep.subr.bf16.mxu0 %v415_v49  ;;  %v697_v44 = vpack.c.bf16 %v966_v41, %v965_v40 }
  0x3d   :  { %1080 = vmatpush3.bf16.xpose.msra.mxu1 %v70_v48  ;;  %v944_v48 = vld [vmem:[%s1749_s0 + $0x1e] sm:$0xff] }
  0x3e   :  { %1160 = vmatpush3.bf16.xpose.msra.mxu0 %v415_v49  ;;  %1085 = vmatprep.subr.bf16.mxu1 %v33_v54  ;;  %v1263_v49 = vld [vmem:[%s1750_s1 + $0x58] sm:$0xff]   ;;  %v601_v51 = vpack.c.bf16 %v944_v48, %v943_v47  ;;  %v879_v47 = vld [vmem:[%s1749_s0 + $0x23] sm:$0xff]  ;;  %v880_v48 = vld [vmem:[%s1749_s0 + $0x2b] sm:$0xff] }
  0x3f   :  { %1165 = vmatprep.subr.bf16.mxu0 %v504_v55 }
  0x44   :  { %1082 = vmatmul.mubr.bf16.vlgmr.msra.gmra.mrb[0].mxu1 %v1258_v58  ;;  %v945_v58 = vld [vmem:[%s1749_s0 + $0x26] sm:$0xff] }
  0x45   :  { %1086 = vmatpush3.bf16.xpose.msra.mxu1 %v33_v54  ;;  %1162 = vmatmul.mubr.bf16.vlgmr.msra.gmra.mrb[0].mxu0 %v1259_v61  ;;  %v776_v54 = vld [vmem:[%s1751_s2 + $0x10] sm:$0xff] }
  0x46   :  { %1166 = vmatpush3.bf16.xpose.msra.mxu0 %v504_v55  ;;  %1087 = vmatprep.subr.bf16.mxu1 %v34_v62  ;;  %v857_v55 = vld [vmem:[%s1749_s0 + $0x22] sm:$0xff] }
  0x47   :  { %1167 = vmatprep.subr.bf16.mxu0 %v505_v63  ;;  %1101 = vmatprep.mubr.bf16.mxu1 %v1260_v0  ;;  %v218_v61 = vpack.c.bf16 %v858_v56, %v857_v55  ;;  %v775_v0 = vld [vmem:[%s1751_s2 + $0x8] sm:$0xff]  ;;  %v969_v55 = vld [vmem:[%s1749_s0 + $0x37] sm:$0xff]  ;;  %v970_v56 = vld [vmem:[%s1749_s0 + $0x3f] sm:$0xff] }
  0x48   :  { %1181 = vmatprep.mubr.bf16.mxu0 %v1261_v1  ;;  %790 = vperm.xlu1 %1255, %v776_v54   ;;  %v859_v1 = vld [vmem:[%s1749_s0 + $0x32] sm:$0xff]  ;;  %v882_v54 = vld [vmem:[%s1749_s0 + $0x3b] sm:$0xff] }
  0x49   :  { %785 = vperm.xlu0 %1254, %v775_v0   ;;  %v219_v5 = vpack.c.bf16 %v860_v2, %v859_v1  ;;  %v885_v1 = vld [vmem:[%s1749_s0 + $0x53] sm:$0xff]  ;;  %v886_v2 = vld [vmem:[%s1749_s0 + $0x5b] sm:$0xff] }
  0x4d   :  { %1088 = vmatpush3.bf16.xpose.msra.mxu1 %v34_v62  ;;  %v777_v62 = vld [vmem:[%s1751_s2 + $0x18] sm:$0xff] }
  0x4e   :  { %1168 = vmatpush3.bf16.xpose.msra.mxu0 %v505_v63  ;;  %1089 = vmatprep.subr.bf16.mxu1 %v35_v6  ;;  %v602_v63 = vpack.c.bf16 %v946_v59, %v945_v58  ;;  %v699_v58 = vpack.c.bf16 %v970_v56, %v969_v55  ;;  %v883_v59 = vld [vmem:[%s1749_s0 + $0x43] sm:$0xff] }
  0x4f   :  { %1169 = vmatprep.subr.bf16.mxu0 %v506_v7  ;;  %795 = vperm.xlu1 %1255, %v777_v62   ;;  %v972_v62 = vld [vmem:[%s1749_s0 + $0x4f] sm:$0xff] }
  0x55   :  { %1090 = vmatpush3.bf16.xpose.msra.mxu1 %v35_v6  ;;  %v603_v6 = vpack.c.bf16 %v948_v4, %v947_v3  ;;  %v973_v3 = vld [vmem:[%s1749_s0 + $0x57] sm:$0xff]  ;;  %v974_v4 = vld [vmem:[%s1749_s0 + $0x5f] sm:$0xff] }
  0x56   :  { %1170 = vmatpush3.bf16.xpose.msra.mxu0 %v506_v7  ;;  %1091 = vmatprep.subr.bf16.mxu1 %v36_v12  ;;  %v861_v7 = vld [vmem:[%s1749_s0 + $0x42] sm:$0xff] }
  0x57   :  { %1171 = vmatprep.subr.bf16.mxu0 %v507_v13  ;;  %v220_v11 = vpack.c.bf16 %v862_v8, %v861_v7  ;;  %v887_v7 = vld [vmem:[%s1749_s0 + $0x63] sm:$0xff]  ;;  %v888_v8 = vld [vmem:[%s1749_s0 + $0x6b] sm:$0xff] }
  0x5d   :  { %1092 = vmatpush3.bf16.xpose.msra.mxu1 %v36_v12  ;;  %v604_v12 = vpack.c.bf16 %v950_v10, %v949_v9  ;;  %v975_v9 = vld [vmem:[%s1749_s0 + $0x67] sm:$0xff]  ;;  %v976_v10 = vld [vmem:[%s1749_s0 + $0x6f] sm:$0xff] }
  0x5e   :  { %1172 = vmatpush3.bf16.xpose.msra.mxu0 %v507_v13  ;;  %1093 = vmatprep.subr.bf16.mxu1 %v37_v18  ;;  %v863_v13 = vld [vmem:[%s1749_s0 + $0x52] sm:$0xff] }
  0x5f   :  { %1173 = vmatprep.subr.bf16.mxu0 %v508_v19  ;;  %v221_v17 = vpack.c.bf16 %v864_v14, %v863_v13  ;;  %v889_v13 = vld [vmem:[%s1749_s0 + $0x73] sm:$0xff]  ;;  %v890_v14 = vld [vmem:[%s1749_s0 + $0x7b] sm:$0xff] }
  0x65   :  { %1094 = vmatpush3.bf16.xpose.msra.mxu1 %v37_v18  ;;  %v605_v18 = vpack.c.bf16 %v952_v16, %v951_v15  ;;  %v977_v15 = vld [vmem:[%s1749_s0 + $0x77] sm:$0xff]  ;;  %v978_v16 = vld [vmem:[%s1749_s0 + $0x7f] sm:$0xff] }
  0x66   :  { %1174 = vmatpush3.bf16.xpose.msra.mxu0 %v508_v19  ;;  %1095 = vmatprep.subr.bf16.mxu1 %v38_v24  ;;  %v865_v19 = vld [vmem:[%s1749_s0 + $0x62] sm:$0xff] }
  0x67   :  { %1175 = vmatprep.subr.bf16.mxu0 %v509_v25  ;;  %v222_v23 = vpack.c.bf16 %v866_v20, %v865_v19  ;;  %v1270_v19 = vld [vmem:[%s1750_s1 + $0x38] sm:$0xff]  }
  0x68   :  { %v1271_v20 = vld [vmem:[%s1750_s1 + $0x78] sm:$0xff]  }
  0x6d   :  { %1096 = vmatpush3.bf16.xpose.msra.mxu1 %v38_v24  ;;  %v606_v24 = vpack.c.bf16 %v954_v22, %v953_v21 }
  0x6e   :  { %1176 = vmatpush3.bf16.xpose.msra.mxu0 %v509_v25  ;;  %1097 = vmatprep.subr.bf16.mxu1 %v39_v30  ;;  %v867_v25 = vld [vmem:[%s1749_s0 + $0x72] sm:$0xff] }
  0x6f   :  { %1177 = vmatprep.subr.bf16.mxu0 %v510_v31  ;;  %v223_v29 = vpack.c.bf16 %v868_v26, %v867_v25 }
  0x75   :  { %1098 = vmatpush3.bf16.xpose.msra.mxu1 %v39_v30  ;;  %v607_v30 = vpack.c.bf16 %v956_v28, %v955_v27 }
  0x76   :  { %1178 = vmatpush3.bf16.xpose.msra.mxu0 %v510_v31  ;;  %1099 = vmatprep.subr.bf16.mxu1 %v40_v36  ;;  %v875_v31 = vld [vmem:[%s1749_s0 + $0x3] sm:$0xff] }
  0x77   :  { %1179 = vmatprep.subr.bf16.mxu0 %v511_v37  ;;  %v312_v35 = vpack.c.bf16 %v876_v32, %v875_v31 }
  0x7d   :  { %1100 = vmatpush3.bf16.xpose.msra.mxu1 %v40_v36  ;;  %v696_v36 = vpack.c.bf16 %v964_v34, %v963_v33 }
  0x7e   :  { %1180 = vmatpush3.bf16.xpose.msra.mxu0 %v511_v37  ;;  %1105 = vmatprep.subr.bf16.mxu1 %v216_v42  ;;  %v877_v37 = vld [vmem:[%s1749_s0 + $0x13] sm:$0xff] }
  0x7f   :  { %1185 = vmatprep.subr.bf16.mxu0 %v600_v43 }
  0x84   :  { %1102 = vmatmul.mubr.bf16.vlgmr.msra.gmra.mrb[0].mxu1 %v1262_v46  ;;  %v1269_v46 = vld [vmem:[%s1750_s1 + $0x70] sm:$0xff]  }
  0x85   :  { %1106 = vmatpush3.bf16.xpose.msra.mxu1 %v216_v42  ;;  %1182 = vmatmul.mubr.bf16.vlgmr.msra.gmra.mrb[0].mxu0 %v1263_v49  ;;  %v1267_v42 = vld [vmem:[%s1750_s1 + $0x68] sm:$0xff]  }
  0x86   :  { %1186 = vmatpush3.bf16.xpose.msra.mxu0 %v600_v43  ;;  %1107 = vmatprep.subr.bf16.mxu1 %v217_v50  ;;  %v313_v43 = vpack.c.bf16 %v878_v38, %v877_v37  ;;  %v967_v49 = vld [vmem:[%s1749_s0 + $0x27] sm:$0xff] }
  0x87   :  { %1187 = vmatprep.subr.bf16.mxu0 %v601_v51  ;;  %1121 = vmatprep.mubr.bf16.mxu1 %v1264_v52 }
  0x88   :  { %1201 = vmatprep.mubr.bf16.mxu0 %v1265_v53  ;;  %v881_v53 = vld [vmem:[%s1749_s0 + $0x33] sm:$0xff] }
  0x89   :  { %v315_v57 = vpack.c.bf16 %v882_v54, %v881_v53 }
  0x8d   :  { %1108 = vmatpush3.bf16.xpose.msra.mxu1 %v217_v50  ;;  %v968_v50 = vld [vmem:[%s1749_s0 + $0x2f] sm:$0xff] }
  0x8e   :  { %1188 = vmatpush3.bf16.xpose.msra.mxu0 %v601_v51  ;;  %1109 = vmatprep.subr.bf16.mxu1 %v218_v61  ;;  %v314_v51 = vpack.c.bf16 %v880_v48, %v879_v47  ;;  %v698_v52 = vpack.c.bf16 %v968_v50, %v967_v49 }
  0x8f   :  { %1189 = vmatprep.subr.bf16.mxu0 %v602_v63 }
  0x95   :  { %1110 = vmatpush3.bf16.xpose.msra.mxu1 %v218_v61  ;;  %v971_v61 = vld [vmem:[%s1749_s0 + $0x47] sm:$0xff] }
  0x96   :  { %1190 = vmatpush3.bf16.xpose.msra.mxu0 %v602_v63  ;;  %1111 = vmatprep.subr.bf16.mxu1 %v219_v5  ;;  %v316_v63 = vpack.c.bf16 %v884_v60, %v883_v59  ;;  %v700_v0 = vpack.c.bf16 %v972_v62, %v971_v61 }
  0x97   :  { %1191 = vmatprep.subr.bf16.mxu0 %v603_v6 }
  0x9c   :  { %v781_v22 = vpop.permute.xlu0 %780 }
  0x9d   :  { %1112 = vmatpush3.bf16.xpose.msra.mxu1 %v219_v5  ;;  %v317_v5 = vpack.c.bf16 %v886_v2, %v885_v1 }
  0x9e   :  { %1192 = vmatpush3.bf16.xpose.msra.mxu0 %v603_v6  ;;  %1113 = vmatprep.subr.bf16.mxu1 %v220_v11  ;;  %v701_v6 = vpack.c.bf16 %v974_v4, %v973_v3 }
  0x9f   :  { %1193 = vmatprep.subr.bf16.mxu0 %v604_v12 }
  0xa5   :  { %1114 = vmatpush3.bf16.xpose.msra.mxu1 %v220_v11  ;;  %v318_v11 = vpack.c.bf16 %v888_v8, %v887_v7 }
  0xa6   :  { %1194 = vmatpush3.bf16.xpose.msra.mxu0 %v604_v12  ;;  %1115 = vmatprep.subr.bf16.mxu1 %v221_v17  ;;  %v702_v12 = vpack.c.bf16 %v976_v10, %v975_v9 }
  0xa7   :  { %1195 = vmatprep.subr.bf16.mxu0 %v605_v18 }
  0xad   :  { %1116 = vmatpush3.bf16.xpose.msra.mxu1 %v221_v17  ;;  %v319_v17 = vpack.c.bf16 %v890_v14, %v889_v13 }
  0xae   :  { %1196 = vmatpush3.bf16.xpose.msra.mxu0 %v605_v18  ;;  %1117 = vmatprep.subr.bf16.mxu1 %v222_v23  ;;  %v703_v18 = vpack.c.bf16 %v978_v16, %v977_v15 }
  0xaf   :  { %1197 = vmatprep.subr.bf16.mxu0 %v606_v24 }
  0xb5   :  { %1118 = vmatpush3.bf16.xpose.msra.mxu1 %v222_v23 }
  0xb6   :  { %1198 = vmatpush3.bf16.xpose.msra.mxu0 %v606_v24  ;;  %1119 = vmatprep.subr.bf16.mxu1 %v223_v29 }
  0xb7   :  { %1199 = vmatprep.subr.bf16.mxu0 %v607_v30 }
  0xbd   :  { %1120 = vmatpush3.bf16.xpose.msra.mxu1 %v223_v29 }
  0xbe   :  { %1200 = vmatpush3.bf16.xpose.msra.mxu0 %v607_v30  ;;  %1125 = vmatprep.subr.bf16.mxu1 %v312_v35 }
  0xbf   :  { %1205 = vmatprep.subr.bf16.mxu0 %v696_v36 }
  0xc4   :  { %1122 = vmatmul.mubr.bf16.vlgmr.msra.gmra.mrb[0].mxu1 %v1266_v39 }
  0xc5   :  { %1126 = vmatpush3.bf16.xpose.msra.mxu1 %v312_v35  ;;  %1202 = vmatmul.mubr.bf16.vlgmr.msra.gmra.mrb[0].mxu0 %v1267_v42 }
  0xc6   :  { %1206 = vmatpush3.bf16.xpose.msra.mxu0 %v696_v36  ;;  %1127 = vmatprep.subr.bf16.mxu1 %v313_v43 }
  0xc7   :  { %1207 = vmatprep.subr.bf16.mxu0 %v697_v44  ;;  %1141 = vmatprep.mubr.bf16.mxu1 %v1268_v45  ;;  %v791_v21 = vpop.permute.xlu1 %790 }
  0xc8   :  { %1221 = vmatprep.mubr.bf16.mxu0 %v1269_v46  ;;  %v786_v39 = vpop.permute.xlu0 %785 }
  0xcd   :  { %1128 = vmatpush3.bf16.xpose.msra.mxu1 %v313_v43 }
  0xce   :  { %1208 = vmatpush3.bf16.xpose.msra.mxu0 %v697_v44  ;;  %1129 = vmatprep.subr.bf16.mxu1 %v314_v51  ;;  %v796_v35 = vpop.permute.xlu1 %795 }
  0xcf   :  { %1209 = vmatprep.subr.bf16.mxu0 %v698_v52 }
  0xd5   :  { %1130 = vmatpush3.bf16.xpose.msra.mxu1 %v314_v51 }
  0xd6   :  { %1210 = vmatpush3.bf16.xpose.msra.mxu0 %v698_v52  ;;  %1131 = vmatprep.subr.bf16.mxu1 %v315_v57 }
  0xd7   :  { %1211 = vmatprep.subr.bf16.mxu0 %v699_v58 }
  0xdd   :  { %1132 = vmatpush3.bf16.xpose.msra.mxu1 %v315_v57 }
  0xde   :  { %1212 = vmatpush3.bf16.xpose.msra.mxu0 %v699_v58  ;;  %1133 = vmatprep.subr.bf16.mxu1 %v316_v63 }
  0xdf   :  { %1213 = vmatprep.subr.bf16.mxu0 %v700_v0 }
  0xe5   :  { %1134 = vmatpush3.bf16.xpose.msra.mxu1 %v316_v63 }
  0xe6   :  { %1214 = vmatpush3.bf16.xpose.msra.mxu0 %v700_v0  ;;  %1135 = vmatprep.subr.bf16.mxu1 %v317_v5 }
  0xe7   :  { %1215 = vmatprep.subr.bf16.mxu0 %v701_v6 }
  0xed   :  { %1136 = vmatpush3.bf16.xpose.msra.mxu1 %v317_v5 }
  0xee   :  { %1216 = vmatpush3.bf16.xpose.msra.mxu0 %v701_v6  ;;  %1137 = vmatprep.subr.bf16.mxu1 %v318_v11 }
  0xef   :  { %1217 = vmatprep.subr.bf16.mxu0 %v702_v12 }
  0xf5   :  { %1138 = vmatpush3.bf16.xpose.msra.mxu1 %v318_v11 }
  0xf6   :  { %1218 = vmatpush3.bf16.xpose.msra.mxu0 %v702_v12  ;;  %1139 = vmatprep.subr.bf16.mxu1 %v319_v17 }
  0xf7   :  { %1219 = vmatprep.subr.bf16.mxu0 %v703_v18 }
  0xfd   :  { %1140 = vmatpush3.bf16.xpose.msra.mxu1 %v319_v17 }
  0xfe   :  { %1220 = vmatpush3.bf16.xpose.msra.mxu0 %v703_v18 }
 0x104   :  { %1142 = vmatmul.mubr.bf16.vlgmr.msra.gmra.mrb[0].mxu1 %v1270_v19 }
 0x105   :  { %1222 = vmatmul.mubr.bf16.vlgmr.msra.gmra.mrb[0].mxu0 %v1271_v20 }
 0x1d7   :  { %v1143_v23 = vpop.f32.mrb[0].mxu1 }
 0x1d8   :  { %v1223_v24 = vpop.f32.mrb[0].mxu0  ;;  %v371_v25 = vpop.f32.mrb[1].mxu1 }
 0x1d9   :  { %v1225_v26 = vadd.f32 %v1223_v24, %v1143_v23  ;;  %v755_v27 = vpop.f32.mrb[1].mxu0  ;;  %v1144_v28 = vpop.f32.mrb[2].mxu1 }
 0x1da   :  { %v1226_v29 = vadd.f32 %v755_v27, %v371_v25  ;;  %v1224_v30 = vpop.f32.mrb[2].mxu0  ;;  %v374_v31 = vpop.f32.mrb[3].mxu1 }
 0x1db   :  { %v800_v32 = vadd.f32 %v1225_v26, %v791_v21  ;;  %v1227_v33 = vadd.f32 %v1224_v30, %v1144_v28  ;;  %v758_v34 = vpop.f32.mrb[3].mxu0 }
 0x1dc   :  { %v798_v36 = vadd.f32 %v1226_v29, %v781_v22  ;;  %v1228_v37 = vadd.f32 %v758_v34, %v374_v31 }
 0x1dd   :  { %vm804_vm0 = vcmp.ge.f32.partialorder %v800_v32, 0.0  ;;  %v808_v38 = vmul.f32 0.01, %v800_v32  ;;  %v801_v40 = vadd.f32 %v1227_v33, %v796_v35 }
 0x1de   :  { %vm802_vm1 = vcmp.ge.f32.partialorder %v798_v36, 0.0  ;;  %v806_v41 = vmul.f32 0.01, %v798_v36  ;;  %v799_v42 = vadd.f32 %v1228_v37, %v786_v39 }
 0x1df   :  { %v812_v43 = vsel %vm804_vm0, %v800_v32, %v808_v38  ;;  %vm805_vm2 = vcmp.ge.f32.partialorder %v801_v40, 0.0  ;;  %v809_v44 = vmul.f32 0.01, %v801_v40 }
 0x1e0   :  { %816 = vst [vmem:[%s1752_s3 + $0x10] sm:$0xff] %v812_v43  ;;  %v810_v45 = vsel %vm802_vm1, %v798_v36, %v806_v41  ;;  %vm803_vm3 = vcmp.ge.f32.partialorder %v799_v42, 0.0  ;;  %v807_v46 = vmul.f32 0.01, %v799_v42 }
 0x1e1   :  { %814 = vst [vmem:[%s1752_s3] sm:$0xff] %v810_v45  ;;  %v813_v47 = vsel %vm805_vm2, %v801_v40, %v809_v44 }
 0x1e2   :  { %817 = vst [vmem:[%s1752_s3 + $0x18] sm:$0xff] %v813_v47  ;;  %v811_v48 = vsel %vm803_vm3, %v799_v42, %v807_v46 }
 0x1e3   :  { %815 = vst [vmem:[%s1752_s3 + $0x8] sm:$0xff] %v811_v48 }

</bundles_post_ra>
